<compile_context>
chip_gen: v7x
topology: tpu7x:2x2x1
jax: 0.10.0
libtpu: 0.0.40
codegen_flags: <defaults>
</compile_context>

<pallas_src>
import functools

import jax
import jax.numpy as jnp
from jax.experimental import pallas as pl
from jax.experimental.pallas import tpu as pltpu


def _round_up(x, m):
    return ((x + m - 1) // m) * m


def _vmem_need_bytes(tm, in_f, seg):
    f32 = 4
    x_bufs = 2 * 2 * tm * in_f * f32           # x_re, x_im: double-buffered
    w_bufs = 2 * 1 * in_f * (4 * seg) * f32    # W_top, W_bot: single-buffered
    b_buf = 8 * (4 * seg) * f32                # bias (sublane-padded)
    o_bufs = 2 * 2 * tm * seg * f32            # out_re, out_im: double-buffered
    temps = 3 * tm * (4 * seg) * f32           # matmul result + VPU temporaries
    return x_bufs + w_bufs + b_buf + o_bufs + temps


def _pick_tm(n, in_f, seg, tm_max):
    # >= 2 grid steps when possible (v7x has 2 TensorCores); rows per block
    # must be a multiple of 8 (f32 sublane).
    tm = _round_up(max(_round_up(n, 8) // 2, 8), 8)
    tm = min(tm, tm_max)
    # Shrink until the working set fits comfortably in scoped VMEM
    # (v7x: 64 MiB physical / 32 MiB default scoped; v5e/v6e have 128 MiB).
    while tm > 64 and _vmem_need_bytes(tm, in_f, seg) > (40 << 20):
        tm = _round_up(tm // 2, 8)
    return max(tm, 8)


def _gabor_kernel(xr_ref, xi_ref, wt_ref, wb_ref, b_ref, ore_ref, oim_ref,
                  *, omega0, sigma0_sq, seg):
    # p = [lin_re | lin_im | sy_re | sy_im], each block `seg` lanes wide.
    p = (jnp.dot(xr_ref[...], wt_ref[...], preferred_element_type=jnp.float32)
         + jnp.dot(xi_ref[...], wb_ref[...], preferred_element_type=jnp.float32)
         + b_ref[...])

    # seg % 128 == 0 -> these slices are lane-aligned vreg views (free).
    lin_re = p[:, 0 * seg:1 * seg]
    lin_im = p[:, 1 * seg:2 * seg]
    sy_re = p[:, 2 * seg:3 * seg]
    sy_im = p[:, 3 * seg:4 * seg]

    # arg = |lin|^2 + |sy|^2  (real)
    arg = lin_re * lin_re + lin_im * lin_im + sy_re * sy_re + sy_im * sy_im

    # exp(1j*omega*lin) * exp(-sigma^2*arg)
    #   = exp(-omega*lin_im - sigma^2*arg) * (cos(omega*lin_re) + i sin(omega*lin_re))
    mag = jnp.exp(-omega0 * lin_im - sigma0_sq * arg)
    phase = omega0 * lin_re

    # Two lane-dense slab stores, no concatenate.
    ore_ref[...] = mag * jnp.cos(phase)
    oim_ref[...] = mag * jnp.sin(phase)


@functools.partial(jax.jit, static_argnames=("omega0", "sigma0", "tm_max"))
def complex_gabor_layer_2d(x_re, x_im,
                           w1_re, w1_im, b1_re, b1_im,
                           w2_re, w2_im, b2_re, b2_im,
                           *, omega0, sigma0, tm_max=1024):
    """x_*: (N, in_f) f32; w*: (in_f, out_f) f32 (pre-transposed nn.Linear
    weights); b*: (1, out_f) f32; omega0/sigma0: static Python floats.
    Returns (out_re, out_im), each (N, out_f) f32."""
    N, in_f = x_re.shape
    out_f = w1_re.shape[1]

    # Lane-align each packed column block (no-op when out_f % 128 == 0).
    seg = _round_up(out_f, 128)

    def pad_cols(a):
        return a if seg == out_f else jnp.pad(a, ((0, 0), (0, seg - out_f)))

    w1r, w1i, w2r, w2i = (pad_cols(a) for a in (w1_re, w1_im, w2_re, w2_im))
    b1r, b1i, b2r, b2i = (pad_cols(a) for a in (b1_re, b1_im, b2_re, b2_im))

    # Packed weights: p = x_re @ W_top + x_im @ W_bot + b gives
    # [lin_re | lin_im | sy_re | sy_im].  These are tiny weight-sized
    # trace-time ops; in a real layer they'd be packed once at load time.
    w_top = jnp.concatenate([w1r, w1i, w2r, w2i], axis=-1)       # (in_f, 4*seg)
    w_bot = jnp.concatenate([-w1i, w1r, -w2i, w2r], axis=-1)     # (in_f, 4*seg)
    b = jnp.concatenate([b1r, b1i, b2r, b2i], axis=-1)           # (1, 4*seg)

    tm = _pick_tm(N, in_f, seg, tm_max)
    n_pad = _round_up(N, tm)
    if n_pad != N:  # row-pad only the two thin x planes, only when needed
        x_re = jnp.pad(x_re, ((0, n_pad - N), (0, 0)))
        x_im = jnp.pad(x_im, ((0, n_pad - N), (0, 0)))

    kernel = functools.partial(_gabor_kernel,
                               omega0=float(omega0),
                               sigma0_sq=float(sigma0) * float(sigma0),
                               seg=seg)

    vmem_bytes = min(max(int(_vmem_need_bytes(tm, in_f, seg) * 1.25) + (1 << 20),
                         32 << 20), 64 << 20)

    out_re, out_im = pl.pallas_call(
        kernel,
        out_shape=(jax.ShapeDtypeStruct((n_pad, seg), jnp.float32),
                   jax.ShapeDtypeStruct((n_pad, seg), jnp.float32)),
        grid=(n_pad // tm,),
        in_specs=[
            pl.BlockSpec((tm, in_f), lambda i: (i, 0)),
            pl.BlockSpec((tm, in_f), lambda i: (i, 0)),
            pl.BlockSpec((in_f, 4 * seg), lambda i: (0, 0),
                         pipeline_mode=pl.Buffered(1)),
            pl.BlockSpec((in_f, 4 * seg), lambda i: (0, 0),
                         pipeline_mode=pl.Buffered(1)),
            pl.BlockSpec((1, 4 * seg), lambda i: (0, 0),
                         pipeline_mode=pl.Buffered(1)),
        ],
        out_specs=[
            pl.BlockSpec((tm, seg), lambda i: (i, 0)),
            pl.BlockSpec((tm, seg), lambda i: (i, 0)),
        ],
        compiler_params=pltpu.CompilerParams(
            dimension_semantics=("parallel",),
            vmem_limit_bytes=vmem_bytes),
    )(x_re, x_im, w_top, w_bot, b)

    # No-op under jit when N % tm == 0 and out_f % 128 == 0 (production
    # widths); otherwise this is the unavoidable unpad copy.
    return out_re[:N, :out_f], out_im[:N, :out_f]


def _reference(x_re, x_im, w1_re, w1_im, b1_re, b1_im,
               w2_re, w2_im, b2_re, b2_im, omega0, sigma0):
    """Plain-JAX complex reference mirroring the PyTorch forward."""
    x = x_re + 1j * x_im
    w1 = w1_re + 1j * w1_im
    w2 = w2_re + 1j * w2_im
    b1 = (b1_re + 1j * b1_im)[0]
    b2 = (b2_re + 1j * b2_im)[0]
    lin = x @ w1 + b1
    sy = x @ w2 + b2
    freq = jnp.exp(1j * omega0 * lin)
    arg = jnp.abs(lin) ** 2 + jnp.abs(sy) ** 2
    gauss = jnp.exp(-sigma0 * sigma0 * arg)
    return freq * gauss


if __name__ == "__main__":
    # Small shapes: N coordinates (flattened batch), in_features, out_features.
    N, IN_F, OUT_F = 256, 16, 32
    OMEGA0, SIGMA0 = 10.0, 10.0

    key = jax.random.PRNGKey(0)
    keys = jax.random.split(key, 10)
    # Keep magnitudes small so exp(-sigma^2*arg) is not flushed to 0 everywhere.
    scale = 0.05
    x_re = scale * jax.random.normal(keys[0], (N, IN_F), jnp.float32)
    x_im = scale * jax.random.normal(keys[1], (N, IN_F), jnp.float32)

    # nn.Linear(in, out, dtype=cfloat): weight (out, in) complex, bias (out,)
    # complex.  Stored pre-transposed to (in, out) for the kernel.
    w1_re = scale * jax.random.normal(keys[2], (IN_F, OUT_F), jnp.float32)
    w1_im = scale * jax.random.normal(keys[3], (IN_F, OUT_F), jnp.float32)
    b1_re = scale * jax.random.normal(keys[4], (1, OUT_F), jnp.float32)
    b1_im = scale * jax.random.normal(keys[5], (1, OUT_F), jnp.float32)
    w2_re = scale * jax.random.normal(keys[6], (IN_F, OUT_F), jnp.float32)
    w2_im = scale * jax.random.normal(keys[7], (IN_F, OUT_F), jnp.float32)
    b2_re = scale * jax.random.normal(keys[8], (1, OUT_F), jnp.float32)
    b2_im = scale * jax.random.normal(keys[9], (1, OUT_F), jnp.float32)

    out_re, out_im = complex_gabor_layer_2d(
        x_re, x_im, w1_re, w1_im, b1_re, b1_im,
        w2_re, w2_im, b2_re, b2_im, omega0=OMEGA0, sigma0=SIGMA0)
    jax.block_until_ready((out_re, out_im))

    ref = _reference(x_re, x_im, w1_re, w1_im, b1_re, b1_im,
                     w2_re, w2_im, b2_re, b2_im, OMEGA0, SIGMA0)
    assert out_re.shape == (N, OUT_F) and out_im.shape == (N, OUT_F)
    assert jnp.allclose(out_re, ref.real, atol=2e-5, rtol=2e-5)
    assert jnp.allclose(out_im, ref.imag, atol=2e-5, rtol=2e-5)

    print("KERNEL_OK")
</pallas_src>

<mosaic_0001>
module attributes {stable_mosaic.version = 11 : i64} {
  func.func @_gabor_kernel(%arg0: i32, %arg1: memref<128x16xf32, #tpu.memory_space<vmem>>, %arg2: memref<128x16xf32, #tpu.memory_space<vmem>>, %arg3: memref<16x512xf32, #tpu.memory_space<vmem>>, %arg4: memref<16x512xf32, #tpu.memory_space<vmem>>, %arg5: memref<1x512xf32, #tpu.memory_space<vmem>>, %arg6: memref<128x128xf32, #tpu.memory_space<vmem>>, %arg7: memref<128x128xf32, #tpu.memory_space<vmem>>) attributes {dimension_semantics = [#tpu.dimension_semantics<parallel>], iteration_bounds = array<i64: 2>, scalar_prefetch = 0 : i64, scratch_operands = 0 : i64, tpu.core_type = #tpu.core_type<tc>, window_params = [{transform_indices = @transform_0, window_bounds = array<i64: 128, 16>}, {transform_indices = @transform_1, window_bounds = array<i64: 128, 16>}, {pipeline_mode = #tpu.pipeline_mode<synchronous>, transform_indices = @transform_2, window_bounds = array<i64: 16, 512>}, {pipeline_mode = #tpu.pipeline_mode<synchronous>, transform_indices = @transform_3, window_bounds = array<i64: 16, 512>}, {pipeline_mode = #tpu.pipeline_mode<synchronous>, transform_indices = @transform_4, window_bounds = array<i64: 1, 512>}, {transform_indices = @transform_5, window_bounds = array<i64: 128, 128>}, {transform_indices = @transform_6, window_bounds = array<i64: 128, 128>}]} {
    %c0 = arith.constant 0 : index
    %c0_0 = arith.constant 0 : index
    %0 = vector.load %arg1[%c0, %c0_0] : memref<128x16xf32, #tpu.memory_space<vmem>>, vector<128x16xf32>
    %c0_1 = arith.constant 0 : index
    %c0_2 = arith.constant 0 : index
    %1 = vector.load %arg3[%c0_1, %c0_2] : memref<16x512xf32, #tpu.memory_space<vmem>>, vector<16x512xf32>
    %cst = arith.constant dense<0.000000e+00> : vector<128x512xf32>
    %2 = tpu.matmul %0, %1, %cst {dimension_numbers = #tpu.dot_dimension_numbers<[1], [0], [0], [1], [0, 0, 1, 1], [], []>} : vector<128x16xf32>, vector<16x512xf32>, vector<128x512xf32> -> vector<128x512xf32>
    %c0_3 = arith.constant 0 : index
    %c0_4 = arith.constant 0 : index
    %3 = vector.load %arg2[%c0_3, %c0_4] : memref<128x16xf32, #tpu.memory_space<vmem>>, vector<128x16xf32>
    %c0_5 = arith.constant 0 : index
    %c0_6 = arith.constant 0 : index
    %4 = vector.load %arg4[%c0_5, %c0_6] : memref<16x512xf32, #tpu.memory_space<vmem>>, vector<16x512xf32>
    %cst_7 = arith.constant dense<0.000000e+00> : vector<128x512xf32>
    %5 = tpu.matmul %3, %4, %cst_7 {dimension_numbers = #tpu.dot_dimension_numbers<[1], [0], [0], [1], [0, 0, 1, 1], [], []>} : vector<128x16xf32>, vector<16x512xf32>, vector<128x512xf32> -> vector<128x512xf32>
    %6 = arith.addf %2, %5 : vector<128x512xf32>
    %c0_8 = arith.constant 0 : index
    %c0_9 = arith.constant 0 : index
    %7 = vector.load %arg5[%c0_8, %c0_9] : memref<1x512xf32, #tpu.memory_space<vmem>>, vector<1x512xf32>
    %8 = vector.broadcast %7 : vector<1x512xf32> to vector<128x512xf32>
    %9 = arith.addf %6, %8 : vector<128x512xf32>
    %10 = vector.extract_strided_slice %9 {offsets = [0, 0], sizes = [128, 128], strides = [1, 1]} : vector<128x512xf32> to vector<128x128xf32>
    %11 = vector.extract_strided_slice %9 {offsets = [0, 128], sizes = [128, 128], strides = [1, 1]} : vector<128x512xf32> to vector<128x128xf32>
    %12 = vector.extract_strided_slice %9 {offsets = [0, 256], sizes = [128, 128], strides = [1, 1]} : vector<128x512xf32> to vector<128x128xf32>
    %13 = vector.extract_strided_slice %9 {offsets = [0, 384], sizes = [128, 128], strides = [1, 1]} : vector<128x512xf32> to vector<128x128xf32>
    %14 = arith.mulf %10, %10 : vector<128x128xf32>
    %15 = arith.mulf %11, %11 : vector<128x128xf32>
    %16 = arith.addf %14, %15 : vector<128x128xf32>
    %17 = arith.mulf %12, %12 : vector<128x128xf32>
    %18 = arith.addf %16, %17 : vector<128x128xf32>
    %19 = arith.mulf %13, %13 : vector<128x128xf32>
    %20 = arith.addf %18, %19 : vector<128x128xf32>
    %cst_10 = arith.constant -1.000000e+01 : f32
    %21 = vector.broadcast %cst_10 : f32 to vector<128x128xf32>
    %22 = arith.mulf %21, %11 : vector<128x128xf32>
    %cst_11 = arith.constant 1.000000e+02 : f32
    %23 = vector.broadcast %cst_11 : f32 to vector<128x128xf32>
    %24 = arith.mulf %23, %20 : vector<128x128xf32>
    %25 = arith.subf %22, %24 : vector<128x128xf32>
    %26 = math.exp %25 : vector<128x128xf32>
    %cst_12 = arith.constant 1.000000e+01 : f32
    %27 = vector.broadcast %cst_12 : f32 to vector<128x128xf32>
    %28 = arith.mulf %27, %10 : vector<128x128xf32>
    %29 = math.cos %28 : vector<128x128xf32>
    %30 = arith.mulf %26, %29 : vector<128x128xf32>
    %c0_13 = arith.constant 0 : index
    %c0_14 = arith.constant 0 : index
    %31 = vector.load %arg6[%c0_13, %c0_14] : memref<128x128xf32, #tpu.memory_space<vmem>>, vector<128x128xf32>
    tpu.vector_store %arg6[%c0_13, %c0_14], %30 {strides = array<i32>} : memref<128x128xf32, #tpu.memory_space<vmem>>, vector<128x128xf32>,
    %32 = math.sin %28 : vector<128x128xf32>
    %33 = arith.mulf %26, %32 : vector<128x128xf32>
    %c0_15 = arith.constant 0 : index
    %c0_16 = arith.constant 0 : index
    %34 = vector.load %arg7[%c0_15, %c0_16] : memref<128x128xf32, #tpu.memory_space<vmem>>, vector<128x128xf32>
    tpu.vector_store %arg7[%c0_15, %c0_16], %33 {strides = array<i32>} : memref<128x128xf32, #tpu.memory_space<vmem>>, vector<128x128xf32>,
    return
  }
  func.func @transform_0(%arg0: i32) -> (i32, i32) {
    %c0_i32 = arith.constant 0 : i32
    %c0_i32_0 = arith.constant 0 : i32
    return %arg0, %c0_i32 : i32, i32
  }
  func.func @transform_1(%arg0: i32) -> (i32, i32) {
    %c0_i32 = arith.constant 0 : i32
    %c0_i32_0 = arith.constant 0 : i32
    return %arg0, %c0_i32 : i32, i32
  }
  func.func @transform_2(%arg0: i32) -> (i32, i32) {
    %c0_i32 = arith.constant 0 : i32
    %c0_i32_0 = arith.constant 0 : i32
    %c0_i32_1 = arith.constant 0 : i32
    return %c0_i32, %c0_i32_0 : i32, i32
  }
  func.func @transform_3(%arg0: i32) -> (i32, i32) {
    %c0_i32 = arith.constant 0 : i32
    %c0_i32_0 = arith.constant 0 : i32
    %c0_i32_1 = arith.constant 0 : i32
    return %c0_i32, %c0_i32_0 : i32, i32
  }
  func.func @transform_4(%arg0: i32) -> (i32, i32) {
    %c0_i32 = arith.constant 0 : i32
    %c0_i32_0 = arith.constant 0 : i32
    %c0_i32_1 = arith.constant 0 : i32
    return %c0_i32, %c0_i32_0 : i32, i32
  }
  func.func @transform_5(%arg0: i32) -> (i32, i32) {
    %c0_i32 = arith.constant 0 : i32
    %c0_i32_0 = arith.constant 0 : i32
    return %arg0, %c0_i32 : i32, i32
  }
  func.func @transform_6(%arg0: i32) -> (i32, i32) {
    %c0_i32 = arith.constant 0 : i32
    %c0_i32_0 = arith.constant 0 : i32
    return %arg0, %c0_i32 : i32, i32
  }
}

</mosaic_0001>

<bundles_post_ra>
// kernel: complex_gabor_layer_2d.1
= control target key start
LH: loop header
LB: loop body
LE: loop exit
PB: predicated region body
PF: predicated region fallthrough
CT: control target
= control target key end

     0   :  { %s5364_s21 = smov 0   ;;  %s7791_s0 = inlined_call_operand.vmem [shape: f32[256,16], index: 0, kind: input, shape index: {}]   ;;  %s7792_s1 = inlined_call_operand.vmem [shape: f32[256,16], index: 1, kind: input, shape index: {}]   ;;  %s7793_s2 = inlined_call_operand.vmem [shape: f32[16,512], index: 2, kind: input, shape index: {}]   ;;  %s7794_s3 = inlined_call_operand.vmem [shape: f32[16,512], index: 3, kind: input, shape index: {}]   ;;  %s7795_s4 = inlined_call_operand.vmem [shape: f32[1,512], index: 4, kind: input, shape index: {}]   ;;  %s7796_s5 = inlined_call_operand.vmem [shape: f32[256,128], index: 5, kind: output, shape index: {0}]   ;;  %s7797_s6 = inlined_call_operand.vmem [shape: f32[256,128], index: 6, kind: output, shape index: {1}]  }
   0x1 LB: > { %s4852_s22 = sadd.s32 4294967295, %s5320_s21   ;;  %p4856_p0 = scmp.ge.s32.totalorder %s5320_s21, 1  ;;  %s5320_s21 = sphi %s5364_s21, %s17_s21  }
   0x2   : > { %p227_p1 = scmp.lt.s32.totalorder %s5320_s21, 3 }
   0x4   : > { %p228_p2 = pnand %p4856_p0, %p227_p1 }
   0x6   : > { %231 = sbr.rel (%p228_p2) target bundleno = 840 (0x348), region = 40 }
   0xd   : > { %v332_v0 = vld [vmem:[%s7794_s3 + $0x8] sm:$0xff]  ;;  %v331_v2 = vld [vmem:[%s7794_s3] sm:$0xff]  ;;  %s4857_s29 = sshll.u32 %s4852_s22, 4  ;;  %v334_v5 = vld [vmem:[%s7794_s3 + $0x18] sm:$0xff]  ;;  %v5322_v7 = vmov 0.0   ;;  %vm339_vm0 = vcmask 130048   ;;  %v1082_v57 = vlaneseq }
   0xe   : > { %v336_v1 = vld [vmem:[%s7794_s3 + $0x28] sm:$0xff]  ;;  %v335_v4 = vld [vmem:[%s7794_s3 + $0x20] sm:$0xff]  ;;  %v338_v6 = vld [vmem:[%s7794_s3 + $0x38] sm:$0xff]  ;;  %452 = vmatprep.mubr.f32.mxu0 %v5322_v7  ;;  %613 = vmatprep.mubr.f32.mxu1 %v5322_v7  ;;  %p268_p3 = scmp.lt.s32.totalorder %s4857_s29, 31 }
   0xf   : > { %v5059_v3 = vpack.c.bf16 %v336_v1, %v332_v0  ;;  %v5061_v8 = vpack.c.bf16 %v335_v4, %v331_v2  ;;  %v5063_v9 = vpack.c.bf16 %v338_v6, %v334_v5  ;;  %v333_v10 = vld [vmem:[%s7794_s3 + $0x10] sm:$0xff]  ;;  %v308_v12 = vld [vmem:[%s7793_s2 + $0x8] sm:$0xff]  ;;  %v307_v15 = vld [vmem:[%s7793_s2] sm:$0xff]  ;;  %v1083_v58 = vshrl.u32 %v1082_v57, 7 }
  0x10   : > { %v337_v11 = vld [vmem:[%s7794_s3 + $0x30] sm:$0xff]  ;;  %v312_v14 = vld [vmem:[%s7793_s2 + $0x28] sm:$0xff]  ;;  %s7892_s29 = smov (!%p268_p3, %s4857_s29), 31  ;;  %v311_v16 = vld [vmem:[%s7793_s2 + $0x20] sm:$0xff] }
  0x11   : > { %5060 = vmatprep.subr.bf16.mxu0 %v5059_v3  ;;  %v5065_v13 = vpack.c.bf16 %v337_v11, %v333_v10  ;;  %5064 = vmatprep.subr.bf16.mxu1 %v5063_v9  ;;  %v5067_v17 = vpack.c.bf16 %v312_v14, %v308_v12  ;;  %v310_v18 = vld [vmem:[%s7793_s2 + $0x18] sm:$0xff]  ;;  %v309_v20 = vld [vmem:[%s7793_s2 + $0x10] sm:$0xff]  ;;  %s5419_s8 = sshll.u32 %s7892_s29, 3  ;;  %v5069_v21 = vpack.c.bf16 %v311_v16, %v307_v15  ;;  %v1084_v59 = vsub.s32 0, %v1083_v58  ;;  %v1080_v60 = vld [vmem:[%s7795_s4] sm:$0xf] }
  0x12   : > { %5062 = vmatpush1.bf16.msra.mxu0 %v5061_v8  ;;  %v314_v19 = vld [vmem:[%s7793_s2 + $0x38] sm:$0xff]  ;;  %v313_v23 = vld [vmem:[%s7793_s2 + $0x30] sm:$0xff]  ;;  %s5428_s13 = scalar_lea.vmem %s7792_s1, %s5419_s8  ;;  %s5510_s15 = scalar_lea.vmem %s7791_s0, %s5419_s8  ;;  %v1092_v61 = vsub.s32 2, %v1083_v58  ;;  %v1088_v62 = vsub.s32 1, %v1083_v58  ;;  %v1096_v63 = vsub.s32 3, %v1083_v58 }
  0x13   : > { %5066 = vmatpush1.bf16.msra.mxu1 %v5065_v13  ;;  %v5071_v22 = vpack.c.bf16 %v314_v19, %v310_v18  ;;  %5068 = vmatprep.subr.bf16.mxu0 %v5067_v17  ;;  %v5073_v24 = vpack.c.bf16 %v313_v23, %v309_v20  ;;  %v315_v25 = vld [vmem:[%s5428_s13] sm:$0xff]  ;;  %v316_v26 = vld [vmem:[%s5428_s13 + $0x8] sm:$0xff]  ;;  %v317_v27 = vld [vmem:[%s5428_s13 + $0x10] sm:$0xff]  ;;  %v5597_v0 = vrot.slane %v1080_v60, %v1084_v59  ;;  %s5950_s20 = scalar_lea.vmem %s7796_s5, %s5419_s8  ;;  %s5956_s24 = scalar_lea.vmem %s7797_s6, %s5419_s8 }
  0x14   : > { %v318_v28 = vld [vmem:[%s5428_s13 + $0x18] sm:$0xff]  ;;  %v319_v29 = vld [vmem:[%s5428_s13 + $0x20] sm:$0xff]  ;;  %v320_v30 = vld [vmem:[%s5428_s13 + $0x28] sm:$0xff]  ;;  %v5599_v1 = vrot.slane %v1080_v60, %v1092_v61  ;;  %v5601_v2 = vrot.slane %v1080_v60, %v1088_v62  ;;  %v5603_v3 = vrot.slane %v1080_v60, %v1096_v63 }
  0x15   : > { %5072 = vmatprep.subr.bf16.mxu1 %v5071_v22  ;;  %4865 = vmatmul.mubr.msk.f32.vlgmr.msra.gmra.mrb[0].mxu0 %vm339_vm0, %v315_v25  ;;  %v321_v31 = vld [vmem:[%s5428_s13 + $0x30] sm:$0xff]  ;;  %v322_v32 = vld [vmem:[%s5428_s13 + $0x38] sm:$0xff]  ;;  %v323_v33 = vld [vmem:[%s5428_s13 + $0x40] sm:$0xff] }
  0x16   : > { %4881 = vmatmul.mubr.msk.f32.vlgmr.msra.gmra.mrb[0].mxu1 %vm339_vm0, %v315_v25  ;;  %5070 = vmatpush1.bf16.msra.mxu0 %v5069_v21  ;;  %v324_v34 = vld [vmem:[%s5428_s13 + $0x48] sm:$0xff]  ;;  %v325_v35 = vld [vmem:[%s5428_s13 + $0x50] sm:$0xff]  ;;  %v326_v36 = vld [vmem:[%s5428_s13 + $0x58] sm:$0xff] }
  0x17   : > { %458 = vmatprep.mubr.f32.mxu0 %v5322_v7  ;;  %619 = vmatprep.mubr.f32.mxu1 %v5322_v7  ;;  %v327_v37 = vld [vmem:[%s5428_s13 + $0x60] sm:$0xff]  ;;  %v328_v38 = vld [vmem:[%s5428_s13 + $0x68] sm:$0xff]  ;;  %v329_v39 = vld [vmem:[%s5428_s13 + $0x70] sm:$0xff] }
  0x18   : > { %5074 = vmatpush1.bf16.msra.mxu1 %v5073_v24  ;;  %v330_v40 = vld [vmem:[%s5428_s13 + $0x78] sm:$0xff]  ;;  %v291_v41 = vld [vmem:[%s5510_s15] sm:$0xff]  ;;  %v292_v42 = vld [vmem:[%s5510_s15 + $0x8] sm:$0xff] }
  0x19   : > { %4866 = vmatmul.mubr.msk.f32.gmra.mrb[2].mxu0 %vm339_vm0, %v316_v26  ;;  %v293_v43 = vld [vmem:[%s5510_s15 + $0x10] sm:$0xff]  ;;  %v294_v44 = vld [vmem:[%s5510_s15 + $0x18] sm:$0xff]  ;;  %v295_v45 = vld [vmem:[%s5510_s15 + $0x20] sm:$0xff] }
  0x1a   : > { %4882 = vmatmul.mubr.msk.f32.gmra.mrb[2].mxu1 %vm339_vm0, %v316_v26  ;;  %464 = vmatprep.mubr.f32.mxu0 %v5322_v7  ;;  %v296_v46 = vld [vmem:[%s5510_s15 + $0x28] sm:$0xff]  ;;  %v297_v47 = vld [vmem:[%s5510_s15 + $0x30] sm:$0xff]  ;;  %v298_v48 = vld [vmem:[%s5510_s15 + $0x38] sm:$0xff] }
  0x1b   : > { %625 = vmatprep.mubr.f32.mxu1 %v5322_v7  ;;  %v299_v49 = vld [vmem:[%s5510_s15 + $0x40] sm:$0xff]  ;;  %v300_v50 = vld [vmem:[%s5510_s15 + $0x48] sm:$0xff]  ;;  %v301_v51 = vld [vmem:[%s5510_s15 + $0x50] sm:$0xff] }
  0x1c   : > { %v302_v52 = vld [vmem:[%s5510_s15 + $0x58] sm:$0xff]  ;;  %v303_v53 = vld [vmem:[%s5510_s15 + $0x60] sm:$0xff]  ;;  %v304_v54 = vld [vmem:[%s5510_s15 + $0x68] sm:$0xff] }
  0x1d   : > { %4867 = vmatmul.mubr.msk.f32.gmra.mrb[4].mxu0 %vm339_vm0, %v317_v27  ;;  %v305_v55 = vld [vmem:[%s5510_s15 + $0x70] sm:$0xff]  ;;  %v306_v56 = vld [vmem:[%s5510_s15 + $0x78] sm:$0xff] }
  0x1e   : > { %4883 = vmatmul.mubr.msk.f32.gmra.mrb[4].mxu1 %vm339_vm0, %v317_v27  ;;  %470 = vmatprep.mubr.f32.mxu0 %v5322_v7 }
  0x1f   : > { %631 = vmatprep.mubr.f32.mxu1 %v5322_v7 }
  0x21   : > { %4868 = vmatmul.mubr.msk.f32.gmra.mrb[6].mxu0 %vm339_vm0, %v318_v28 }
  0x22   : > { %4884 = vmatmul.mubr.msk.f32.gmra.mrb[6].mxu1 %vm339_vm0, %v318_v28  ;;  %476 = vmatprep.mubr.f32.mxu0 %v5322_v7 }
  0x23   : > { %637 = vmatprep.mubr.f32.mxu1 %v5322_v7 }
  0x25   : > { %4869 = vmatmul.mubr.msk.f32.gmra.mrb[8].mxu0 %vm339_vm0, %v319_v29 }
  0x26   : > { %4885 = vmatmul.mubr.msk.f32.gmra.mrb[8].mxu1 %vm339_vm0, %v319_v29  ;;  %482 = vmatprep.mubr.f32.mxu0 %v5322_v7 }
  0x27   : > { %643 = vmatprep.mubr.f32.mxu1 %v5322_v7 }
  0x29   : > { %4870 = vmatmul.mubr.msk.f32.gmra.mrb[10].mxu0 %vm339_vm0, %v320_v30 }
  0x2a   : > { %4886 = vmatmul.mubr.msk.f32.gmra.mrb[10].mxu1 %vm339_vm0, %v320_v30  ;;  %488 = vmatprep.mubr.f32.mxu0 %v5322_v7 }
  0x2b   : > { %649 = vmatprep.mubr.f32.mxu1 %v5322_v7 }
  0x2d   : > { %4871 = vmatmul.mubr.msk.f32.gmra.mrb[12].mxu0 %vm339_vm0, %v321_v31 }
  0x2e   : > { %4887 = vmatmul.mubr.msk.f32.gmra.mrb[12].mxu1 %vm339_vm0, %v321_v31  ;;  %494 = vmatprep.mubr.f32.mxu0 %v5322_v7 }
  0x2f   : > { %655 = vmatprep.mubr.f32.mxu1 %v5322_v7 }
  0x31   : > { %4872 = vmatmul.mubr.msk.f32.gmra.mrb[14].mxu0 %vm339_vm0, %v322_v32 }
  0x32   : > { %4888 = vmatmul.mubr.msk.f32.gmra.mrb[14].mxu1 %vm339_vm0, %v322_v32  ;;  %500 = vmatprep.mubr.f32.mxu0 %v5322_v7 }
  0x33   : > { %661 = vmatprep.mubr.f32.mxu1 %v5322_v7 }
  0x35   : > { %4873 = vmatmul.mubr.msk.f32.gmra.mrb[16].mxu0 %vm339_vm0, %v323_v33 }
  0x36   : > { %4889 = vmatmul.mubr.msk.f32.gmra.mrb[16].mxu1 %vm339_vm0, %v323_v33  ;;  %506 = vmatprep.mubr.f32.mxu0 %v5322_v7 }
  0x37   : > { %667 = vmatprep.mubr.f32.mxu1 %v5322_v7 }
  0x39   : > { %4874 = vmatmul.mubr.msk.f32.gmra.mrb[18].mxu0 %vm339_vm0, %v324_v34 }
  0x3a   : > { %4890 = vmatmul.mubr.msk.f32.gmra.mrb[18].mxu1 %vm339_vm0, %v324_v34  ;;  %512 = vmatprep.mubr.f32.mxu0 %v5322_v7 }
  0x3b   : > { %673 = vmatprep.mubr.f32.mxu1 %v5322_v7 }
  0x3d   : > { %4875 = vmatmul.mubr.msk.f32.gmra.mrb[20].mxu0 %vm339_vm0, %v325_v35 }
  0x3e   : > { %4891 = vmatmul.mubr.msk.f32.gmra.mrb[20].mxu1 %vm339_vm0, %v325_v35  ;;  %518 = vmatprep.mubr.f32.mxu0 %v5322_v7 }
  0x3f   : > { %679 = vmatprep.mubr.f32.mxu1 %v5322_v7 }
  0x41   : > { %4876 = vmatmul.mubr.msk.f32.gmra.mrb[22].mxu0 %vm339_vm0, %v326_v36 }
  0x42   : > { %4892 = vmatmul.mubr.msk.f32.gmra.mrb[22].mxu1 %vm339_vm0, %v326_v36  ;;  %524 = vmatprep.mubr.f32.mxu0 %v5322_v7 }
  0x43   : > { %685 = vmatprep.mubr.f32.mxu1 %v5322_v7 }
  0x45   : > { %4877 = vmatmul.mubr.msk.f32.gmra.mrb[24].mxu0 %vm339_vm0, %v327_v37 }
  0x46   : > { %4893 = vmatmul.mubr.msk.f32.gmra.mrb[24].mxu1 %vm339_vm0, %v327_v37  ;;  %530 = vmatprep.mubr.f32.mxu0 %v5322_v7 }
  0x47   : > { %691 = vmatprep.mubr.f32.mxu1 %v5322_v7 }
  0x49   : > { %4878 = vmatmul.mubr.msk.f32.gmra.mrb[26].mxu0 %vm339_vm0, %v328_v38 }
  0x4a   : > { %4894 = vmatmul.mubr.msk.f32.gmra.mrb[26].mxu1 %vm339_vm0, %v328_v38  ;;  %536 = vmatprep.mubr.f32.mxu0 %v5322_v7 }
  0x4b   : > { %697 = vmatprep.mubr.f32.mxu1 %v5322_v7 }
  0x4d   : > { %4879 = vmatmul.mubr.msk.f32.gmra.mrb[28].mxu0 %vm339_vm0, %v329_v39 }
  0x4e   : > { %4895 = vmatmul.mubr.msk.f32.gmra.mrb[28].mxu1 %vm339_vm0, %v329_v39  ;;  %542 = vmatprep.mubr.f32.mxu0 %v5322_v7 }
  0x4f   : > { %703 = vmatprep.mubr.f32.mxu1 %v5322_v7 }
  0x51   : > { %4880 = vmatmul.mubr.msk.f32.gmra.mrb[30].mxu0 %vm339_vm0, %v330_v40 }
  0x52   : > { %4896 = vmatmul.mubr.msk.f32.gmra.mrb[30].mxu1 %vm339_vm0, %v330_v40  ;;  %822 = vmatprep.mubr.f32.mxu0 %v5322_v7 }
  0x53   : > { %983 = vmatprep.mubr.f32.mxu1 %v5322_v7 }
  0x55   : > { %4897 = vmatmul.mubr.msk.f32.vlgmr.msra.gmra.mrb[0].mxu0 %vm339_vm0, %v291_v41 }
  0x56   : > { %4913 = vmatmul.mubr.msk.f32.vlgmr.msra.gmra.mrb[0].mxu1 %vm339_vm0, %v291_v41  ;;  %828 = vmatprep.mubr.f32.mxu0 %v5322_v7 }
  0x57   : > { %989 = vmatprep.mubr.f32.mxu1 %v5322_v7 }
  0x59   : > { %4898 = vmatmul.mubr.msk.f32.gmra.mrb[2].mxu0 %vm339_vm0, %v292_v42 }
  0x5a   : > { %4914 = vmatmul.mubr.msk.f32.gmra.mrb[2].mxu1 %vm339_vm0, %v292_v42  ;;  %834 = vmatprep.mubr.f32.mxu0 %v5322_v7 }
  0x5b   : > { %995 = vmatprep.mubr.f32.mxu1 %v5322_v7 }
  0x5d   : > { %4899 = vmatmul.mubr.msk.f32.gmra.mrb[4].mxu0 %vm339_vm0, %v293_v43 }
  0x5e   : > { %4915 = vmatmul.mubr.msk.f32.gmra.mrb[4].mxu1 %vm339_vm0, %v293_v43  ;;  %840 = vmatprep.mubr.f32.mxu0 %v5322_v7 }
  0x5f   : > { %1001 = vmatprep.mubr.f32.mxu1 %v5322_v7 }
  0x61   : > { %4900 = vmatmul.mubr.msk.f32.gmra.mrb[6].mxu0 %vm339_vm0, %v294_v44 }
  0x62   : > { %4916 = vmatmul.mubr.msk.f32.gmra.mrb[6].mxu1 %vm339_vm0, %v294_v44  ;;  %846 = vmatprep.mubr.f32.mxu0 %v5322_v7 }
  0x63   : > { %1007 = vmatprep.mubr.f32.mxu1 %v5322_v7 }
  0x65   : > { %4901 = vmatmul.mubr.msk.f32.gmra.mrb[8].mxu0 %vm339_vm0, %v295_v45 }
  0x66   : > { %4917 = vmatmul.mubr.msk.f32.gmra.mrb[8].mxu1 %vm339_vm0, %v295_v45  ;;  %852 = vmatprep.mubr.f32.mxu0 %v5322_v7 }
  0x67   : > { %1013 = vmatprep.mubr.f32.mxu1 %v5322_v7 }
  0x69   : > { %4902 = vmatmul.mubr.msk.f32.gmra.mrb[10].mxu0 %vm339_vm0, %v296_v46 }
  0x6a   : > { %4918 = vmatmul.mubr.msk.f32.gmra.mrb[10].mxu1 %vm339_vm0, %v296_v46  ;;  %858 = vmatprep.mubr.f32.mxu0 %v5322_v7 }
  0x6b   : > { %1019 = vmatprep.mubr.f32.mxu1 %v5322_v7 }
  0x6d   : > { %4903 = vmatmul.mubr.msk.f32.gmra.mrb[12].mxu0 %vm339_vm0, %v297_v47 }
  0x6e   : > { %4919 = vmatmul.mubr.msk.f32.gmra.mrb[12].mxu1 %vm339_vm0, %v297_v47  ;;  %864 = vmatprep.mubr.f32.mxu0 %v5322_v7 }
  0x6f   : > { %1025 = vmatprep.mubr.f32.mxu1 %v5322_v7 }
  0x71   : > { %4904 = vmatmul.mubr.msk.f32.gmra.mrb[14].mxu0 %vm339_vm0, %v298_v48 }
  0x72   : > { %4920 = vmatmul.mubr.msk.f32.gmra.mrb[14].mxu1 %vm339_vm0, %v298_v48  ;;  %870 = vmatprep.mubr.f32.mxu0 %v5322_v7 }
  0x73   : > { %1031 = vmatprep.mubr.f32.mxu1 %v5322_v7 }
  0x75   : > { %4905 = vmatmul.mubr.msk.f32.gmra.mrb[16].mxu0 %vm339_vm0, %v299_v49 }
  0x76   : > { %4921 = vmatmul.mubr.msk.f32.gmra.mrb[16].mxu1 %vm339_vm0, %v299_v49  ;;  %876 = vmatprep.mubr.f32.mxu0 %v5322_v7 }
  0x77   : > { %1037 = vmatprep.mubr.f32.mxu1 %v5322_v7 }
  0x79   : > { %4906 = vmatmul.mubr.msk.f32.gmra.mrb[18].mxu0 %vm339_vm0, %v300_v50 }
  0x7a   : > { %4922 = vmatmul.mubr.msk.f32.gmra.mrb[18].mxu1 %vm339_vm0, %v300_v50  ;;  %882 = vmatprep.mubr.f32.mxu0 %v5322_v7 }
  0x7b   : > { %1043 = vmatprep.mubr.f32.mxu1 %v5322_v7 }
  0x7d   : > { %4907 = vmatmul.mubr.msk.f32.gmra.mrb[20].mxu0 %vm339_vm0, %v301_v51 }
  0x7e   : > { %4923 = vmatmul.mubr.msk.f32.gmra.mrb[20].mxu1 %vm339_vm0, %v301_v51  ;;  %888 = vmatprep.mubr.f32.mxu0 %v5322_v7 }
  0x7f   : > { %1049 = vmatprep.mubr.f32.mxu1 %v5322_v7 }
  0x81   : > { %4908 = vmatmul.mubr.msk.f32.gmra.mrb[22].mxu0 %vm339_vm0, %v302_v52 }
  0x82   : > { %4924 = vmatmul.mubr.msk.f32.gmra.mrb[22].mxu1 %vm339_vm0, %v302_v52  ;;  %894 = vmatprep.mubr.f32.mxu0 %v5322_v7 }
  0x83   : > { %1055 = vmatprep.mubr.f32.mxu1 %v5322_v7 }
  0x85   : > { %4909 = vmatmul.mubr.msk.f32.gmra.mrb[24].mxu0 %vm339_vm0, %v303_v53 }
  0x86   : > { %4925 = vmatmul.mubr.msk.f32.gmra.mrb[24].mxu1 %vm339_vm0, %v303_v53  ;;  %900 = vmatprep.mubr.f32.mxu0 %v5322_v7 }
  0x87   : > { %1061 = vmatprep.mubr.f32.mxu1 %v5322_v7 }
  0x89   : > { %4910 = vmatmul.mubr.msk.f32.gmra.mrb[26].mxu0 %vm339_vm0, %v304_v54 }
  0x8a   : > { %4926 = vmatmul.mubr.msk.f32.gmra.mrb[26].mxu1 %vm339_vm0, %v304_v54  ;;  %906 = vmatprep.mubr.f32.mxu0 %v5322_v7 }
  0x8b   : > { %1067 = vmatprep.mubr.f32.mxu1 %v5322_v7 }
  0x8d   : > { %4911 = vmatmul.mubr.msk.f32.gmra.mrb[28].mxu0 %vm339_vm0, %v305_v55 }
  0x8e   : > { %4927 = vmatmul.mubr.msk.f32.gmra.mrb[28].mxu1 %vm339_vm0, %v305_v55  ;;  %912 = vmatprep.mubr.f32.mxu0 %v5322_v7 }
  0x8f   : > { %1073 = vmatprep.mubr.f32.mxu1 %v5322_v7 }
  0x91   : > { %4912 = vmatmul.mubr.msk.f32.gmra.mrb[30].mxu0 %vm339_vm0, %v306_v56 }
  0x92   : > { %4928 = vmatmul.mubr.msk.f32.gmra.mrb[30].mxu1 %vm339_vm0, %v306_v56 }
 0x128   : > { %v824_v4 = vpop.f32.mrb[0].mxu0 }
 0x129   : > { %v985_v5 = vpop.f32.mrb[0].mxu1  ;;  %v1102_v6 = vadd.f32 %v5597_v0, %v824_v4  ;;  %v826_v7 = vpop.f32.mrb[1].mxu0 }
 0x12a   : > { %v987_v8 = vpop.f32.mrb[1].mxu1  ;;  %v1104_v9 = vadd.f32 %v5599_v1, %v985_v5  ;;  %v1103_v10 = vadd.f32 %v5601_v2, %v826_v7  ;;  %v7809_v7 = vmov 683565275  }
 0x12b   : > { %v1166_v11 = vmul.f32 %v1102_v6, %v1102_v6  ;;  %v5608_v12 = vmul.f32 10.0, %v1102_v6  ;;  %v1105_v13 = vadd.f32 %v5603_v3, %v987_v8 }
 0x12c   : > { %v1182_v14 = vmul.f32 %v1103_v10, %v1103_v10  ;;  %v830_v15 = vpop.f32.mrb[2].mxu0  ;;  %v1214_v21 = vmul.f32 %v1104_v9, %v1104_v9  ;;  %v5629_v46 = vmul.f32 -10.0, %v1103_v10 }
 0x12d   : > { %v991_v16 = vpop.f32.mrb[2].mxu1  ;;  %v1374_v17 = vand.u32 2147483647, %v5608_v12  ;;  %v1377_v18 = vand.u32 2139095040, %v5608_v12  ;;  %v832_v19 = vpop.f32.mrb[3].mxu0  ;;  %v1106_v23 = vadd.f32 %v5597_v0, %v830_v15  ;;  %v1246_v26 = vmul.f32 %v1105_v13, %v1105_v13 }
 0x12e   : > { %v993_v20 = vpop.f32.mrb[3].mxu1  ;;  %v1198_v22 = vadd.f32 %v1182_v14, %v1166_v11  ;;  %v1107_v24 = vadd.f32 %v5601_v2, %v832_v19  ;;  %v1108_v27 = vadd.f32 %v5599_v1, %v991_v16  ;;  %v7806_v14 = vmov 2475754826  }
 0x12f   : > { %v1378_v25 = vshrl.u32 %v1377_v18, 23  ;;  %v1381_v28 = vand.u32 8388607, %v1374_v17  ;;  %v1167_v30 = vmul.f32 %v1106_v23, %v1106_v23  ;;  %v5618_v31 = vmul.f32 10.0, %v1106_v23 }
 0x130   : > { %v1230_v29 = vadd.f32 %v1214_v21, %v1198_v22  ;;  %v836_v32 = vpop.f32.mrb[4].mxu0  ;;  %v1183_v35 = vmul.f32 %v1107_v24, %v1107_v24  ;;  %v1109_v36 = vadd.f32 %v5603_v3, %v993_v20  ;;  %v1215_v43 = vmul.f32 %v1108_v27, %v1108_v27 }
 0x131   : > { %v5620_v33 = vpop.f32.mrb[4].mxu1  ;;  %v4929_v34 = vadd.s32 4294967169, %v1378_v25  ;;  %v5623_v37 = vpop.f32.mrb[5].mxu0  ;;  %v7798_v40 = vand.u32 2147483647, %v5618_v31  ;;  %v1480_v41 = vand.u32 2139095040, %v5618_v31  ;;  %v5652_v4 = vadd.f32 %v5597_v0, %v836_v32 }
 0x132   : > { %v5625_v38 = vpop.f32.mrb[5].mxu1  ;;  %v1262_v39 = vadd.f32 %v1246_v26, %v1230_v29  ;;  %v1199_v44 = vadd.f32 %v1183_v35, %v1167_v30  ;;  %v1382_v45 = vor.u32 8388608, %v1381_v28  ;;  %v1247_v51 = vmul.f32 %v1109_v36, %v1109_v36 }
 0x133   : > { %v1384_v42 = vadd.s32 1, %v4929_v34  ;;  %v1481_v48 = vshrl.u32 %v1480_v41, 23  ;;  %v5635_v49 = vand.u32 8388607, %v7798_v40  ;;  %v5649_v63 = vmul.f32 -10.0, %v1107_v24 }
 0x134   : > { %v5631_v47 = vmul.f32 100.0, %v1262_v39  ;;  %v1231_v50 = vadd.f32 %v1215_v43, %v1199_v44  ;;  %v5637_v52 = vpop.f32.mrb[6].mxu0  ;;  %v5647_v62 = vshll.u32 %v1382_v45, 8  ;;  %v7802_v16 = vmov 2131351028  }
 0x135   : > { %vm1385_vm1 = vcmp.gt.s32.totalorder %v1384_v42, 0  ;;  %v5639_v53 = vpop.f32.mrb[6].mxu1  ;;  %v4933_v56 = vadd.s32 4294967169, %v1481_v48  ;;  %v5643_v57 = vpop.f32.mrb[7].mxu0  ;;  %v1485_v9 = vor.u32 8388608, %v5635_v49  ;;  %vm1376_vm13 = vcmp.lt.s32.totalorder %v5608_v12, 0 }
 0x136   : > { %v1386_v54 = vsel %vm1385_vm1, %v1384_v42, 0  ;;  %v1310_v55 = vsub.f32 %v5629_v46, %v5631_v47  ;;  %v5645_v58 = vpop.f32.mrb[7].mxu1  ;;  %v1263_v61 = vadd.f32 %v1247_v51, %v1231_v50  ;;  %v7804_v19 = vmov 2102212464  }
 0x137   : > { %v1387_v59 = vshrl.u32 %v1386_v54, 5  ;;  %v1388_v60 = vand.u32 31, %v1386_v54  ;;  %v1487_v10 = vadd.s32 1, %v4933_v56  ;;  %v7812_v21 = vmov 920167782  }
 0x138   : > { %v5654_v5 = vpop.f32.mrb[8].mxu0  ;;  %v7799_v29 = vmov 1326507024   ;;  %vm5763_vm14 = vcmp.le.f32.partialorder %v1374_v17, 0.7853982 }
 0x139   : > { %v1389_v6 = vsub.s32 32, %v1388_v60  ;;  %v1391_v8 = vshll.u32 %v7809_v7, %v1388_v60  ;;  %v5658_v11 = vpop.f32.mrb[8].mxu1  ;;  %v5660_v13 = vpop.f32.mrb[9].mxu0  ;;  %v1394_v15 = vshll.u32 %v7806_v14, %v1388_v60  ;;  %v1397_v18 = vshll.u32 %v7802_v16, %v1388_v60 }
 0x13a   : > { %v1400_v20 = vshll.u32 %v7804_v19, %v1388_v60  ;;  %v1403_v22 = vshll.u32 %v7812_v21, %v1388_v60  ;;  %v5666_v23 = vpop.f32.mrb[9].mxu1  ;;  %vm1406_vm2 = vcmp.lt.s32.totalorder %v1387_v59, 1  ;;  %vm1407_vm3 = vcmp.lt.s32.totalorder %v1387_v59, 2 }
 0x13b   : > { %v1392_v24 = vshrl.u32 %v7806_v14, %v1389_v6  ;;  %v1395_v25 = vshrl.u32 %v7802_v16, %v1389_v6  ;;  %v1398_v26 = vshrl.u32 %v7804_v19, %v1389_v6  ;;  %v1390_v27 = vshrl.u32 %v7809_v7, %v1389_v6 }
 0x13c   : > { %v1401_v28 = vshrl.u32 %v7812_v21, %v1389_v6  ;;  %v1404_v30 = vshrl.u32 %v7799_v29, %v1389_v6  ;;  %v5674_v32 = vpop.f32.mrb[10].mxu0  ;;  %vm1408_vm4 = vcmp.lt.s32.totalorder %v1387_v59, 3  ;;  %vm1409_vm5 = vcmp.lt.s32.totalorder %v1387_v59, 4 }
 0x13d   : > { %v5676_v34 = vpop.f32.mrb[10].mxu1  ;;  %v1393_v35 = vor.u32 %v1392_v24, %v1391_v8  ;;  %v1396_v36 = vor.u32 %v1395_v25, %v1394_v15  ;;  %v1399_v39 = vor.u32 %v1398_v26, %v1397_v18  ;;  %v5678_v41 = vpop.f32.mrb[11].mxu0  ;;  %vm1488_vm6 = vcmp.gt.s32.totalorder %v1487_v10, 0 }
 0x13e   : > { %v5680_v42 = vpop.f32.mrb[11].mxu1  ;;  %v1402_v43 = vor.u32 %v1401_v28, %v1400_v20  ;;  %v1405_v44 = vor.u32 %v1404_v30, %v1403_v22  ;;  %v1489_v60 = vsel %vm1488_vm6, %v1487_v10, 0  ;;  %v5689_v18 = vshll.u32 %v1485_v9, 8 }
 0x13f   : > { %v1410_v45 = vsel %vm1406_vm2, %v1390_v27, %v1393_v35  ;;  %v1411_v48 = vsel %vm1409_vm5, %v1399_v39, 2102212464  ;;  %v1414_v49 = vsel %vm1406_vm2, %v1393_v35, %v1396_v36  ;;  %v1418_v50 = vsel %vm1406_vm2, %v1396_v36, %v1399_v39 }
 0x140   : > { %v1412_v51 = vsel %vm1408_vm4, %v1396_v36, %v1411_v48  ;;  %v1415_v54 = vsel %vm1409_vm5, %v1402_v43, 920167782  ;;  %v1419_v56 = vsel %vm1409_vm5, %v1405_v44, 1326507024  ;;  %v1490_v24 = vshrl.u32 %v1489_v60, 5 }
 0x141   : > { %v1413_v6 = vsel %vm1407_vm3, %v1410_v45, %v1412_v51  ;;  %v1416_v8 = vsel %vm1408_vm4, %v1399_v39, %v1415_v54  ;;  %v1420_v15 = vsel %vm1408_vm4, %v1402_v43, %v1419_v56  ;;  %v1491_v25 = vand.u32 31, %v1489_v60 }
 0x142   : > { %v1417_v20 = vsel %vm1407_vm3, %v1414_v49, %v1416_v8  ;;  %v1421_v22 = vsel %vm1407_vm3, %v1418_v50, %v1420_v15  ;;  %v1429_v30 = vmul.u32 %v5647_v62, %v1413_v6  ;;  %v5703_v9 = vmul.f32 100.0, %v1263_v61  ;;  %v5721_v6 = vpop.f32.mrb[12].mxu0 }
 0x143   : > { %v5694_v26 = vmul.u32.u64.low %v5647_v62, %v1421_v22  ;;  %v5695_v27 = vmul.u32.u64.high %v5647_v62, %v1421_v22, %v5694_v26  ;;  %v5698_v10 = vmul.u32.u64.low %v5647_v62, %v1417_v20  ;;  %v5699_v28 = vmul.u32.u64.high %v5647_v62, %v1417_v20, %v5698_v10 }
 0x144   : > { %v1492_v35 = vsub.s32 32, %v1491_v25  ;;  %v5706_v36 = vmul.f32 10.0, %v5652_v4  ;;  %v1494_v59 = vshll.u32 %v7809_v7, %v1491_v25  ;;  %v1497_v39 = vshll.u32 %v7806_v14, %v1491_v25 }
 0x145   : > { %v1500_v43 = vshll.u32 %v7802_v16, %v1491_v25  ;;  %v1503_v44 = vshll.u32 %v7804_v19, %v1491_v25  ;;  %v1506_v61 = vshll.u32 %v7812_v21, %v1491_v25  ;;  %vm1431_vm7 = vc.u32 %v5695_v27, %v5698_v10 }
 0x146   : > { %v1495_v45 = vshrl.u32 %v7806_v14, %v1492_v35  ;;  %v1498_v48 = vshrl.u32 %v7802_v16, %v1492_v35  ;;  %v1501_v62 = vshrl.u32 %v7804_v19, %v1492_v35  ;;  %v1432_v49 = vadd.s32 1, %v5699_v28 }
 0x147   : > { %v1504_v50 = vshrl.u32 %v7812_v21, %v1492_v35  ;;  %vm1509_vm8 = vcmp.lt.s32.totalorder %v1490_v24, 1  ;;  %v1507_v60 = vshrl.u32 %v7799_v29, %v1492_v35  ;;  %vm1510_vm9 = vcmp.lt.s32.totalorder %v1490_v24, 2 }
 0x148   : > { %v1496_v51 = vor.u32 %v1495_v45, %v1494_v59  ;;  %v1499_v54 = vor.u32 %v1498_v48, %v1497_v39  ;;  %v1502_v56 = vor.u32 %v1501_v62, %v1500_v43  ;;  %v1433_v8 = vsel %vm1431_vm7, %v1432_v49, %v5699_v28 }
 0x149   : > { %v1505_v15 = vor.u32 %v1504_v50, %v1503_v44  ;;  %vm1512_vm10 = vcmp.lt.s32.totalorder %v1490_v24, 4  ;;  %v1434_v20 = vadd.s32 %v1433_v8, %v1429_v30  ;;  %v1493_v22 = vshrl.u32 %v7809_v7, %v1492_v35 }
 0x14a   : > { %v1508_v25 = vor.u32 %v1507_v60, %v1506_v61  ;;  %v1514_v26 = vsel %vm1512_vm10, %v1502_v56, 2102212464  ;;  %vm1511_vm11 = vcmp.lt.s32.totalorder %v1490_v24, 3  ;;  %v1517_v40 = vsel %vm1509_vm8, %v1496_v51, %v1499_v54 }
 0x14b   : > { %v1518_v59 = vsel %vm1512_vm10, %v1505_v15, 920167782  ;;  %v1521_v39 = vsel %vm1509_vm8, %v1499_v54, %v1502_v56  ;;  %v1435_v43 = vadd.s32 536870912, %v1434_v20  ;;  %v1513_v45 = vsel %vm1509_vm8, %v1493_v22, %v1496_v51 }
 0x14c   : > { %v1519_v48 = vsel %vm1511_vm11, %v1502_v56, %v1518_v59  ;;  %v1522_v62 = vsel %vm1512_vm10, %v1508_v25, 1326507024  ;;  %v1515_v28 = vsel %vm1511_vm11, %v1499_v54, %v1514_v26  ;;  %v1311_v30 = vsub.f32 %v5649_v63, %v5703_v9 }
 0x14d   : > { %v1520_v44 = vsel %vm1510_vm9, %v1517_v40, %v1519_v48  ;;  %v1523_v49 = vsel %vm1511_vm11, %v1505_v15, %v1522_v62  ;;  %v1436_v35 = vshrl.u32 %v1435_v43, 30  ;;  %v1516_v54 = vsel %vm1510_vm9, %v1513_v45, %v1515_v28 }
 0x14e   : > { %v1524_v61 = vsel %vm1510_vm9, %v1521_v39, %v1523_v49  ;;  %v5733_v50 = vmul.u32.u64.low %v5689_v18, %v1520_v44  ;;  %v5734_v60 = vmul.u32.u64.high %v5689_v18, %v1520_v44, %v5733_v50  ;;  %v1583_v40 = vand.u32 2139095040, %v5706_v36 }
 0x14f   : > { %v5737_v8 = vmul.u32.u64.low %v5689_v18, %v1524_v61  ;;  %v5738_v29 = vmul.u32.u64.high %v5689_v18, %v1524_v61, %v5737_v8  ;;  %v1437_v51 = vshll.u32 %v1436_v35, 30  ;;  %v1460_v9 = vsub.s32 4, %v1436_v35 }
 0x150   : > { %v1535_v15 = vadd.s32 1, %v5734_v60  ;;  %v1584_v63 = vshrl.u32 %v1583_v40, 23  ;;  %v1532_v22 = vmul.u32 %v5689_v18, %v1516_v54  ;;  %v7801_v59 = vand.u32 2147483647, %v5706_v36  ;;  %v5774_v8 = vpop.f32.mrb[12].mxu1 }
 0x151   : > { %v1438_v56 = vsub.s32 %v1434_v20, %v1437_v51  ;;  %vm1534_vm12 = vc.u32 %v5738_v29, %v5733_v50  ;;  %v1461_v20 = vsel %vm1376_vm13, %v1460_v9, %v1436_v35  ;;  %v1326_v45 = vmul.f32 1.442695, %v1310_v55  ;;  %v5780_v40 = vpop.f32.mrb[13].mxu1 }
 0x152   : > { %v1536_v26 = vsel %vm1534_vm12, %v1535_v15, %v5734_v60  ;;  %v4937_v43 = vadd.s32 4294967169, %v1584_v63  ;;  %v1168_v28 = vmul.f32 %v5652_v4, %v5652_v4  ;;  %v1587_v44 = vand.u32 8388607, %v7801_v59 }
 0x153   : > { %v1440_v25 = vsub.s32 0, %v1438_v56  ;;  %v1537_v39 = vadd.s32 %v1536_v26, %v1532_v22  ;;  %v5759_v49 = vadd.f32 %v5601_v2, %v5623_v37  ;;  %v1328_v47 = vmul.f32 1.442695, %v1311_v30  ;;  %v5778_v30 = vpop.f32.mrb[13].mxu0 }
 0x154   : > { %v1590_v48 = vadd.s32 1, %v4937_v43  ;;  %v1463_v4 = vsel %vm5763_vm14, 0, %v1461_v20  ;;  %5218 = vpow2.f32 %v1326_v45  ;;  %v1588_v17 = vor.u32 8388608, %v1587_v44 }
 0x155   : > { %v4930_v24 = vmin.u32 %v1440_v25, %v1438_v56  ;;  %v1538_v18 = vadd.s32 536870912, %v1537_v39  ;;  %v1184_v61 = vmul.f32 %v5759_v49, %v5759_v49  ;;  %v3147_v63 = vadd.s32 3, %v1463_v4 }
 0x156   : > { %vm1591_vm15 = vcmp.gt.s32.totalorder %v1590_v48, 0  ;;  %v1112_v22 = vadd.f32 %v5599_v1, %v5620_v33  ;;  %v1430_v25 = vadd.s32 %v5698_v10, %v5695_v27  ;;  %5220 = vpow2.f32 %v1328_v47 }
 0x157   : > { %v1442_v62 = vclz %v4930_v24  ;;  %v5767_v46 = vshrl.u32 %v1538_v18, 30  ;;  %v1592_v60 = vsel %vm1591_vm15, %v1590_v48, 0  ;;  %v5776_v54 = vadd.f32 %v1184_v61, %v1168_v28 }
 0x158   : > { %v1594_v51 = vand.u32 31, %v1592_v60  ;;  %v5788_v24 = vand.u32 3, %v1463_v4  ;;  %v1533_v20 = vadd.s32 %v5733_v50, %v5738_v29  ;;  %v1113_v28 = vadd.f32 %v5603_v3, %v5625_v38 }
 0x159   : > { %v4931_v55 = vadd.s32 4294967294, %v1442_v62  ;;  %v1540_v37 = vshll.u32 %v5767_v46, 30  ;;  %v5794_v33 = vand.u32 3, %v3147_v63  ;;  %v5797_v10 = vshll.u32 %v1588_v17, 8 }
 0x15a   : > { %v1595_v18 = vsub.s32 32, %v1594_v51  ;;  %v5799_v44 = vmul.f32 %v1112_v22, %v1112_v22  ;;  %v1563_v29 = vsub.s32 4, %v5767_v46  ;;  %v5804_v50 = vadd.f32 %v5597_v0, %v5637_v52 }
 0x15b   : > { %vm4932_vm0 = vcmp.lt.s32.totalorder %v4931_v55, 0  ;;  %v5782_v9 = vsub.s32 %v1537_v39, %v1540_v37  ;;  %v1597_v4 = vshll.u32 %v7809_v7, %v1594_v51  ;;  %v5809_v17 = vshrl.u32 %v1592_v60, 5 }
 0x15c   : > { %v1445_v15 = vsel %vm4932_vm0, 0, %v4931_v55  ;;  %v1598_v38 = vshrl.u32 %v7806_v14, %v1595_v18  ;;  %v1601_v61 = vshrl.u32 %v7802_v16, %v1595_v18  ;;  %v5812_v63 = vmul.f32 %v1113_v28, %v1113_v28 }
 0x15d   : > { %v1446_v26 = vsub.s32 32, %v1445_v15  ;;  %v1450_v43 = vsub.s32 4294967266, %v1445_v15  ;;  %v1543_v45 = vsub.s32 0, %v5782_v9  ;;  %v1447_v48 = vshll.u32 %v1438_v56, %v1445_v15 }
 0x15e   : > { %v1600_v15 = vshll.u32 %v7806_v14, %v1594_v51  ;;  %v5814_v22 = vpop.eup %5218  ;;  %v1599_v52 = vor.u32 %v1598_v38, %v1597_v4  ;;  %v7821_v28 = vmov 1326507024   ;;  %vm1479_vm2 = vcmp.lt.s32.totalorder %v5618_v31, 0  ;;  %v5827_v14 = vpop.f32.mrb[14].mxu0 }
 0x15f   : > { %v1448_v62 = vshrl.u32 %v1430_v25, %v1446_v26  ;;  %v1451_v39 = vadd.s32 127, %v1450_v43  ;;  %v4934_v27 = vmin.u32 %v1543_v45, %v5782_v9  ;;  %v1603_v43 = vshll.u32 %v7802_v16, %v1594_v51 }
 0x160   : > { %v1602_v60 = vor.u32 %v1601_v61, %v1600_v15  ;;  %v5822_v59 = vpop.eup %5220  ;;  %vm1612_vm3 = vcmp.lt.s32.totalorder %v5809_v17, 1  ;;  %vm1613_vm4 = vcmp.lt.s32.totalorder %v5809_v17, 2  ;;  %vm1614_vm5 = vcmp.lt.s32.totalorder %v5809_v17, 3 }
 0x161   : > { %v1449_v47 = vor.u32 %v1448_v62, %v1447_v48  ;;  %v1452_v55 = vshll.u32 %v1451_v39, 23  ;;  %v1545_v56 = vclz %v4934_v27  ;;  %v1604_v48 = vshrl.u32 %v7804_v19, %v1595_v18 }
 0x162   : > { %v1606_v62 = vshll.u32 %v7804_v19, %v1594_v51  ;;  %v1607_v39 = vshrl.u32 %v7812_v21, %v1595_v18  ;;  %v1609_v27 = vshll.u32 %v7812_v21, %v1594_v51  ;;  %v1596_v19 = vshrl.u32 %v7809_v7, %v1595_v18 }
 0x163   : > { %v1453_v37 = vor.u32 4788187, %v1452_v55  ;;  %v1456_v25 = vcvt.s32.f32 %v1449_v47  ;;  %v4935_v26 = vadd.s32 4294967294, %v1545_v56  ;;  %v1610_v55 = vshrl.u32 %v7821_v28, %v1595_v18 }
 0x164   : > { %v1605_v4 = vor.u32 %v1604_v48, %v1603_v43  ;;  %v1608_v38 = vor.u32 %v1607_v39, %v1606_v62  ;;  %vm1615_vm6 = vcmp.lt.s32.totalorder %v5809_v17, 4  ;;  %v7822_v18 = vand.u32 2147483647, %v5618_v31 }
 0x165   : > { %v1454_v45 = vand.u32 2147483647, %v1453_v37  ;;  %vm4936_vm1 = vcmp.lt.s32.totalorder %v4935_v26, 0  ;;  %v1611_v15 = vor.u32 %v1610_v55, %v1609_v27  ;;  %v1616_v27 = vsel %vm1612_vm3, %v1596_v19, %v1599_v52 }
 0x166   : > { %v1548_v56 = vsel %vm4936_vm1, 0, %v4935_v26  ;;  %vm5837_vm7 = vcmp.le.f32.partialorder %v7822_v18, 0.7853982  ;;  %v1617_v48 = vsel %vm1615_vm6, %v1605_v4, 2102212464  ;;  %vm1472_vm8 = vcmp.eq.s32.totalorder %v5788_v24, 2 }
 0x167   : > { %v1457_v47 = vmul.f32 %v1456_v25, %v1454_v45  ;;  %v1549_v37 = vsub.s32 32, %v1548_v56  ;;  %v1553_v16 = vsub.s32 4294967266, %v1548_v56  ;;  %v1550_v51 = vshll.u32 %v5782_v9, %v1548_v56 }
 0x168   : > { %v1620_v9 = vsel %vm1612_vm3, %v1599_v52, %v1602_v60  ;;  %v1621_v62 = vsel %vm1615_vm6, %v1608_v38, 920167782  ;;  %v1625_v56 = vsel %vm1615_vm6, %v1611_v15, 1326507024  ;;  %v1232_v15 = vadd.f32 %v5799_v44, %v5776_v54 }
 0x169   : > { %v1458_v61 = vxor.u32 2147483648, %v1457_v47  ;;  %v1551_v25 = vshrl.u32 %v1533_v20, %v1549_v37  ;;  %v1554_v26 = vadd.s32 127, %v1553_v16  ;;  %v1622_v55 = vsel %vm1614_vm5, %v1605_v4, %v1621_v62 }
 0x16a   : > { %v1623_v35 = vsel %vm1613_vm4, %v1620_v9, %v1622_v55  ;;  %v1626_v19 = vsel %vm1614_vm5, %v1608_v38, %v1625_v56  ;;  %v1564_v38 = vsel %vm1479_vm2, %v1563_v29, %v5767_v46  ;;  %vm1469_vm9 = vcmp.eq.s32.totalorder %v5788_v24, 0 }
 0x16b   : > { %v1459_v43 = vsel %vm1376_vm13, %v1458_v61, %v1457_v47  ;;  %v1552_v20 = vor.u32 %v1551_v25, %v1550_v51  ;;  %v1555_v39 = vshll.u32 %v1554_v26, 23  ;;  %v1624_v47 = vsel %vm1612_vm3, %v1602_v60, %v1605_v4 }
 0x16c   : > { %v1462_v16 = vsel %vm5763_vm14, %v5608_v12, %v1459_v43  ;;  %v1618_v61 = vsel %vm1614_vm5, %v1602_v60, %v1617_v48  ;;  %v5859_v52 = vmul.u32.u64.low %v5797_v10, %v1623_v35  ;;  %v5860_v25 = vmul.u32.u64.high %v5797_v10, %v1623_v35, %v5859_v52 }
 0x16d   : > { %5222 = vcosq.f32 %v1462_v16  ;;  %v1556_v37 = vor.u32 4788187, %v1555_v39  ;;  %v1559_v51 = vcvt.s32.f32 %v1552_v20  ;;  %v1627_v4 = vsel %vm1613_vm4, %v1624_v47, %v1626_v19 }
 0x16e   : > { %5224 = vsinq.f32 %v1462_v16  ;;  %v5868_v60 = vmul.f32 10.0, %v5804_v50  ;;  %v5877_v43 = vmul.u32.u64.low %v5797_v10, %v1627_v4  ;;  %v5878_v18 = vmul.u32.u64.high %v5797_v10, %v1627_v4, %v5877_v43 }
 0x16f   : > { %v1557_v26 = vand.u32 2147483647, %v1556_v37  ;;  %v5882_v48 = vadd.f32 %v5601_v2, %v5643_v57  ;;  %vm3150_vm10 = vcmp.eq.s32.totalorder %v5794_v33, 0  ;;  %v1619_v44 = vsel %vm1613_vm4, %v1616_v27, %v1618_v61 }
 0x170   : > { %v1264_v9 = vadd.f32 %v5812_v63, %v1232_v15  ;;  %vm1468_vm11 = vcmp.lt.s32.totalorder %v5788_v24, 2  ;;  %vm3149_vm12 = vcmp.lt.s32.totalorder %v5794_v33, 2  ;;  %vm3153_vm13 = vcmp.eq.s32.totalorder %v5794_v33, 2 }
 0x171   : > { %v1560_v54 = vmul.f32 %v1559_v51, %v1557_v26  ;;  %v1638_v46 = vadd.s32 1, %v5860_v25  ;;  %v1169_v57 = vmul.f32 %v5804_v50, %v5804_v50  ;;  %v1686_v29 = vand.u32 2139095040, %v5868_v60 }
 0x172   : > { %vm1466_vm14 = vweird.f32 %v5608_v12  ;;  %v1566_v17 = vsel %vm5837_vm7, 0, %v1564_v38  ;;  %v5900_v63 = vmul.f32 -10.0, %v5759_v49  ;;  %v5902_v16 = vmul.f32 100.0, %v1264_v9  ;;  %v5928_v9 = vpop.f32.mrb[14].mxu1 }
 0x173   : > { %v1561_v62 = vxor.u32 2147483648, %v1560_v54  ;;  %v1635_v20 = vmul.u32 %v5797_v10, %v1619_v44  ;;  %vm1637_vm15 = vc.u32 %v5878_v18, %v5859_v52  ;;  %v1687_v39 = vshrl.u32 %v1686_v29, 23  ;;  %v5934_v29 = vpop.f32.mrb[15].mxu0 }
 0x174   : > { %v1185_v50 = vmul.f32 %v5882_v48, %v5882_v48  ;;  %v1639_v55 = vsel %vm1637_vm15, %v1638_v46, %v5860_v25  ;;  %v7808_v47 = vand.u32 2147483647, %v5868_v60  ;;  %v3251_v26 = vadd.s32 3, %v1566_v17 }
 0x175   : > { %v1562_v27 = vsel %vm1479_vm2, %v1561_v62, %v1560_v54  ;;  %v1640_v37 = vadd.s32 %v1639_v55, %v1635_v20  ;;  %v4941_v61 = vadd.s32 4294967169, %v1687_v39  ;;  %v1116_v25 = vadd.f32 %v5599_v1, %v5639_v53  ;;  %v5936_v62 = vpop.f32.mrb[15].mxu1 }
 0x176   : > { %v1565_v10 = vsel %vm5837_vm7, %v5618_v31, %v1562_v27  ;;  %v1201_v35 = vadd.f32 %v1185_v50, %v1169_v57  ;;  %v5924_v54 = vand.u32 3, %v1566_v17  ;;  %v1690_v44 = vand.u32 8388607, %v7808_v47 }
 0x177   : > { %v5223_v56 = vpop.eup %5222  ;;  %5226 = vcosq.f32 %v1565_v10  ;;  %v1641_v15 = vadd.s32 536870912, %v1640_v37  ;;  %v1693_v38 = vadd.s32 1, %v4941_v61  ;;  %v3252_v39 = vand.u32 3, %v3251_v26 }
 0x178   : > { %v5225_v51 = vpop.eup %5224  ;;  %v1473_v19 = vxor.u32 2147483648, %v5223_v56  ;;  %5228 = vsinq.f32 %v1565_v10  ;;  %v1217_v33 = vmul.f32 %v1116_v25, %v1116_v25  ;;  %v1691_v12 = vor.u32 8388608, %v1690_v44 }
 0x179   : > { %v1470_v4 = vxor.u32 2147483648, %v5225_v51  ;;  %v1642_v57 = vshrl.u32 %v1641_v15, 30  ;;  %vm1694_vm0 = vcmp.gt.s32.totalorder %v1693_v38, 0  ;;  %vm1569_vm1 = vweird.f32 %v5618_v31 }
 0x17a   : > { %v1474_v43 = vsel %vm1472_vm8, %v1473_v19, %v5225_v51  ;;  %v3155_v45 = vsel %vm3153_vm13, %v1473_v19, %v5225_v51  ;;  %v1695_v50 = vsel %vm1694_vm0, %v1693_v38, 0  ;;  %vm1571_vm2 = vcmp.lt.s32.totalorder %v5924_v54, 2 }
 0x17b   : > { %v1471_v53 = vsel %vm1469_vm9, %v5223_v56, %v1470_v4  ;;  %v3152_v46 = vsel %vm3150_vm10, %v5223_v56, %v1470_v4  ;;  %v1643_v24 = vshll.u32 %v1642_v57, 30  ;;  %v1697_v61 = vand.u32 31, %v1695_v50 }
 0x17c   : > { %v1475_v17 = vsel %vm1468_vm11, %v1471_v53, %v1474_v43  ;;  %v3156_v20 = vsel %vm3149_vm12, %v3152_v46, %v3155_v45  ;;  %vm1582_vm3 = vcmp.lt.s32.totalorder %v5706_v36, 0  ;;  %v5965_v19 = vadd.f32 %v1217_v33, %v1201_v35 }
 0x17d   : > { %v1476_v27 = vsel %vm1466_vm14, nan, %v1475_v17  ;;  %v3157_v55 = vsel %vm1466_vm14, nan, %v3156_v20  ;;  %v5963_v51 = vsub.s32 %v1640_v37, %v1643_v24  ;;  %vm1572_vm4 = vcmp.eq.s32.totalorder %v5924_v54, 0 }
 0x17e   : > { %v3022_v56 = vmul.f32 %v5814_v22, %v1476_v27  ;;  %v4718_v10 = vmul.f32 %v5814_v22, %v3157_v55  ;;  %vm1575_vm5 = vcmp.eq.s32.totalorder %v5924_v54, 2  ;;  %v1666_v26 = vsub.s32 4, %v1642_v57 }
 0x17f   : > { %v1698_v22 = vsub.s32 32, %v1697_v61  ;;  %vm3253_vm6 = vcmp.lt.s32.totalorder %v3252_v39, 2  ;;  %vm3254_vm7 = vcmp.eq.s32.totalorder %v3252_v39, 0  ;;  %vm3257_vm8 = vcmp.eq.s32.totalorder %v3252_v39, 2 }
 0x180   : > { %3038 = vst [vmem:[%s5950_s20] sm:$0xff] %v3022_v56  ;;  %4734 = vst [vmem:[%s5956_s24] sm:$0xff] %v4718_v10  ;;  %v1646_v25 = vsub.s32 0, %v5963_v51  ;;  %v1636_v37 = vadd.s32 %v5859_v52, %v5878_v18  ;;  %v5974_v15 = vshll.u32 %v1691_v12, 8  ;;  %v5977_v35 = vmul.f32 -10.0, %v5882_v48 }
 0x181   : > { %v5227_v4 = vpop.eup %5226  ;;  %v1117_v38 = vadd.f32 %v5603_v3, %v5645_v58  ;;  %v5982_v53 = vshrl.u32 %v1695_v50, 5  ;;  %v7825_v46 = vmov 2475754826   ;;  %v5987_v52 = vsel %vm1582_vm3, %v1666_v26, %v1642_v57  ;;  %v6000_v26 = vpop.f32.mrb[16].mxu0 }
 0x182   : > { %v5229_v43 = vpop.eup %5228  ;;  %v1576_v45 = vxor.u32 2147483648, %v5227_v4  ;;  %v4938_v44 = vmin.u32 %v1646_v25, %v5963_v51  ;;  %v1701_v17 = vshrl.u32 %v7825_v46, %v1698_v22  ;;  %v1700_v18 = vshll.u32 %v7809_v7, %v1697_v61 }
 0x183   : > { %v1573_v20 = vxor.u32 2147483648, %v5229_v43  ;;  %v7826_v48 = vmov 2131351028   ;;  %v1703_v50 = vshll.u32 %v7825_v46, %v1697_v61  ;;  %v7827_v10 = vmov 2102212464  }
 0x184   : > { %v1704_v27 = vshrl.u32 %v7826_v48, %v1698_v22  ;;  %v1577_v58 = vsel %vm1575_vm5, %v1576_v45, %v5229_v43  ;;  %v3259_v55 = vsel %vm3257_vm8, %v1576_v45, %v5229_v43  ;;  %v1648_v24 = vclz %v4938_v44 }
 0x185   : > { %v1574_v33 = vsel %vm1572_vm4, %v5227_v4, %v1573_v20  ;;  %v3256_v56 = vsel %vm3254_vm7, %v5227_v4, %v1573_v20  ;;  %v1706_v57 = vshll.u32 %v7826_v48, %v1697_v61  ;;  %v1707_v12 = vshrl.u32 %v7827_v10, %v1698_v22 }
 0x186   : > { %v1578_v25 = vsel %vm1571_vm2, %v1574_v33, %v1577_v58  ;;  %v3260_v43 = vsel %vm3253_vm6, %v3256_v56, %v3259_v55  ;;  %v4939_v45 = vadd.s32 4294967294, %v1648_v24  ;;  %v1702_v44 = vor.u32 %v1701_v17, %v1700_v18 }
 0x187   : > { %v1579_v47 = vsel %vm1569_vm1, nan, %v1578_v25  ;;  %v3261_v4 = vsel %vm1569_vm1, nan, %v3260_v43  ;;  %v1705_v20 = vor.u32 %v1704_v27, %v1703_v50  ;;  %v1709_v49 = vshll.u32 %v7827_v10, %v1697_v61 }
 0x188   : > { %v3023_v7 = vmul.f32 %v5822_v59, %v1579_v47  ;;  %v4719_v54 = vmul.f32 %v5822_v59, %v3261_v4  ;;  %vm4940_vm9 = vcmp.lt.s32.totalorder %v4939_v45, 0  ;;  %v1710_v39 = vshrl.u32 %v7812_v21, %v1698_v22 }
 0x189   : > { %v1651_v58 = vsel %vm4940_vm9, 0, %v4939_v45  ;;  %v1708_v55 = vor.u32 %v1707_v12, %v1706_v57  ;;  %v1712_v17 = vshll.u32 %v7812_v21, %v1697_v61  ;;  %v1713_v18 = vshrl.u32 %v7821_v28, %v1698_v22 }
 0x18a   : > { %3039 = vst [vmem:[%s5950_s20 + $0x8] sm:$0xff] %v3023_v7  ;;  %4735 = vst [vmem:[%s5956_s24 + $0x8] sm:$0xff] %v4719_v54  ;;  %v1652_v31 = vsub.s32 32, %v1651_v58  ;;  %v1656_v24 = vsub.s32 4294967266, %v1651_v58  ;;  %v1711_v27 = vor.u32 %v1710_v39, %v1709_v49  ;;  %v1249_v50 = vmul.f32 %v1117_v38, %v1117_v38 }
 0x18b   : > { %v1653_v33 = vshll.u32 %v5963_v51, %v1651_v58  ;;  %v7828_v47 = vmov 683565275   ;;  %v1714_v59 = vor.u32 %v1713_v18, %v1712_v17  ;;  %vm1715_vm10 = vcmp.lt.s32.totalorder %v5982_v53, 1 }
 0x18c   : > { %v1699_v56 = vshrl.u32 %v7828_v47, %v1698_v22  ;;  %v1654_v25 = vshrl.u32 %v1636_v37, %v1652_v31  ;;  %v1657_v43 = vadd.s32 127, %v1656_v24  ;;  %vm1716_vm11 = vcmp.lt.s32.totalorder %v5982_v53, 2 }
 0x18d   : > { %vm1718_vm12 = vcmp.lt.s32.totalorder %v5982_v53, 4  ;;  %vm1717_vm13 = vcmp.lt.s32.totalorder %v5982_v53, 3  ;;  %v1723_v61 = vsel %vm1715_vm10, %v1702_v44, %v1705_v20  ;;  %v1727_v51 = vsel %vm1715_vm10, %v1705_v20, %v1708_v55 }
 0x18e   : > { %v1720_v7 = vsel %vm1718_vm12, %v1708_v55, 2102212464  ;;  %v1724_v57 = vsel %vm1718_vm12, %v1711_v27, 920167782  ;;  %v1655_v49 = vor.u32 %v1654_v25, %v1653_v33  ;;  %v1658_v38 = vshll.u32 %v1657_v43, 23 }
 0x18f   : > { %v1725_v12 = vsel %vm1717_vm13, %v1708_v55, %v1724_v57  ;;  %v1719_v45 = vsel %vm1715_vm10, %v1699_v56, %v1702_v44  ;;  %v1728_v4 = vsel %vm1718_vm12, %v1714_v59, 1326507024  ;;  %v1265_v37 = vadd.f32 %v1249_v50, %v5965_v19 }
 0x190   : > { %v1726_v22 = vsel %vm1716_vm11, %v1723_v61, %v1725_v12  ;;  %v1659_v54 = vor.u32 4788187, %v1658_v38  ;;  %v1721_v39 = vsel %vm1717_vm13, %v1705_v20, %v1720_v7  ;;  %v1729_v58 = vsel %vm1717_vm13, %v1711_v27, %v1728_v4 }
 0x191   : > { %v1118_v17 = vadd.f32 %v5597_v0, %v5654_v5  ;;  %v1730_v18 = vsel %vm1716_vm11, %v1727_v51, %v1729_v58  ;;  %v6031_v31 = vmul.u32.u64.low %v5974_v15, %v1726_v22  ;;  %v6032_v24 = vmul.u32.u64.high %v5974_v15, %v1726_v22, %v6031_v31 }
 0x192   : > { %v6035_v44 = vmul.f32 100.0, %v1265_v37  ;;  %v1660_v55 = vand.u32 2147483647, %v1659_v54  ;;  %v1662_v33 = vcvt.s32.f32 %v1655_v49  ;;  %v1722_v20 = vsel %vm1716_vm11, %v1719_v45, %v1721_v39  ;;  %v6067_v45 = vpop.f32.mrb[16].mxu1  ;;  %v6074_v54 = vpop.f32.mrb[17].mxu0 }
 0x193   : > { %v6038_v19 = vmul.u32.u64.low %v5974_v15, %v1730_v18  ;;  %v6039_v50 = vmul.u32.u64.high %v5974_v15, %v1730_v18, %v6038_v19  ;;  %v6045_v27 = vmul.f32 10.0, %v1118_v17  ;;  %v7829_v56 = vand.u32 2147483647, %v5706_v36  ;;  %7832 = vst [vmem:[#allocation2_spill] sm:$0xff] %v6067_v45  ;;  %7834 = vst [vmem:[#allocation3_spill] sm:$0xff] %v6074_v54  ;;  %v6076_v39 = vpop.f32.mrb[17].mxu1 }
 0x194   : > { %v1663_v25 = vmul.f32 %v1662_v33, %v1660_v55  ;;  %v1741_v7 = vadd.s32 1, %v6032_v24  ;;  %v1119_v53 = vadd.f32 %v5601_v2, %v5660_v13  ;;  %v1738_v57 = vmul.u32 %v5974_v15, %v1722_v20  ;;  %7835 = vst [vmem:[#allocation4_spill] sm:$0xff] %v6076_v39 }
 0x195   : > { %vm6049_vm14 = vcmp.le.f32.partialorder %v7829_v56, 0.7853982  ;;  %vm1740_vm15 = vc.u32 %v6039_v50, %v6031_v31  ;;  %v1789_v49 = vand.u32 2139095040, %v6045_v27  ;;  %v1170_v12 = vmul.f32 %v1118_v17, %v1118_v17 }
 0x196   : > { %v1669_v43 = vsel %vm6049_vm14, 0, %v5987_v52  ;;  %v1664_v61 = vxor.u32 2147483648, %v1663_v25  ;;  %v1742_v38 = vsel %vm1740_vm15, %v1741_v7, %v6032_v24  ;;  %v7811_v51 = vand.u32 2147483647, %v6045_v27 }
 0x197   : > { %v1120_v52 = vadd.f32 %v5599_v1, %v5658_v11  ;;  %v7833_v15 = vsub.f32 %v5900_v63, %v5902_v16  ;;  %v1743_v4 = vadd.s32 %v1742_v38, %v1738_v57  ;;  %v1790_v37 = vshrl.u32 %v1789_v49, 23 }
 0x198   : > { %v1665_v13 = vsel %vm1582_vm3, %v1664_v61, %v1663_v25  ;;  %v3355_v11 = vadd.s32 3, %v1669_v43  ;;  %v1186_v17 = vmul.f32 %v1119_v53, %v1119_v53  ;;  %v1121_v18 = vadd.f32 %v5603_v3, %v5666_v23 }
 0x199   : > { %v1330_v22 = vmul.f32 1.442695, %v7833_v15  ;;  %v1668_v58 = vsel %vm6049_vm14, %v5706_v36, %v1665_v13  ;;  %v6083_v24 = vand.u32 3, %v1669_v43  ;;  %v1744_v63 = vadd.s32 536870912, %v1743_v4 }
 0x19a   : > { %5230 = vcosq.f32 %v1668_v58  ;;  %v4945_v16 = vadd.s32 4294967169, %v1790_v37  ;;  %v1793_v55 = vand.u32 8388607, %v7811_v51  ;;  %v1218_v33 = vmul.f32 %v1120_v52, %v1120_v52 }
 0x19b   : > { %5232 = vsinq.f32 %v1668_v58  ;;  %v1202_v19 = vadd.f32 %v1186_v17, %v1170_v12  ;;  %v1745_v20 = vshrl.u32 %v1744_v63, 30  ;;  %v1122_v59 = vadd.f32 %v5597_v0, %v5674_v32 }
 0x19c   : > { %v1796_v56 = vadd.s32 1, %v4945_v16  ;;  %v3356_v25 = vand.u32 3, %v3355_v11  ;;  %v1250_v61 = vmul.f32 %v1121_v18, %v1121_v18  ;;  %5234 = vpow2.f32 %v1330_v22  ;;  %v6119_v18 = vpop.f32.mrb[18].mxu0 }
 0x19d   : > { %v1234_v7 = vadd.f32 %v1218_v33, %v1202_v19  ;;  %vm1685_vm0 = vcmp.lt.s32.totalorder %v5868_v60, 0  ;;  %v1746_v23 = vshll.u32 %v1745_v20, 30  ;;  %vm1675_vm2 = vcmp.eq.s32.totalorder %v6083_v24, 0  ;;  %7836 = vst [vmem:[#allocation5_spill] sm:$0xff] %v6119_v18 }
 0x19e   : > { %vm1797_vm1 = vcmp.gt.s32.totalorder %v1796_v56, 0  ;;  %vm1678_vm3 = vcmp.eq.s32.totalorder %v6083_v24, 2  ;;  %v1794_v43 = vor.u32 8388608, %v1793_v55  ;;  %vm1674_vm4 = vcmp.lt.s32.totalorder %v6083_v24, 2 }
 0x19f   : > { %v1798_v57 = vsel %vm1797_vm1, %v1796_v56, 0  ;;  %v1266_v49 = vadd.f32 %v1250_v61, %v1234_v7  ;;  %v6093_v38 = vsub.s32 %v1743_v4, %v1746_v23  ;;  %v1769_v32 = vsub.s32 4, %v1745_v20 }
 0x1a0   : > { %v1800_v12 = vand.u32 31, %v1798_v57  ;;  %v6095_v52 = vmul.f32 10.0, %v1122_v59  ;;  %vm1672_vm5 = vweird.f32 %v5706_v36  ;;  %vm3357_vm6 = vcmp.lt.s32.totalorder %v3356_v25, 2 }
 0x1a1   : > { %vm3358_vm7 = vcmp.eq.s32.totalorder %v3356_v25, 0  ;;  %vm3361_vm8 = vcmp.eq.s32.totalorder %v3356_v25, 2  ;;  %v6100_v13 = vadd.f32 %v5599_v1, %v5676_v34  ;;  %v1739_v15 = vadd.s32 %v6031_v31, %v6039_v50 }
 0x1a2   : > { %v1749_v22 = vsub.s32 0, %v6093_v38  ;;  %v1801_v4 = vsub.s32 32, %v1800_v12  ;;  %v6105_v37 = vmul.f32 -10.0, %v1119_v53  ;;  %v6107_v58 = vshll.u32 %v1794_v43, 8 }
 0x1a3   : > { %v6109_v11 = vmul.f32 %v1122_v59, %v1122_v59  ;;  %v6113_v17 = vadd.f32 %v5601_v2, %v5678_v41  ;;  %v6117_v34 = vadd.f32 %v5603_v3, %v5680_v42  ;;  %v6124_v53 = vsel %vm1685_vm0, %v1769_v32, %v1745_v20 }
 0x1a4   : > { %v5231_v31 = vpop.eup %5230  ;;  %v4942_v50 = vmin.u32 %v1749_v22, %v6093_v38  ;;  %v6126_v63 = vshrl.u32 %v1798_v57, 5  ;;  %v1892_v16 = vand.u32 2139095040, %v6095_v52  ;;  %v1803_v33 = vshll.u32 %v7828_v47, %v1800_v12 }
 0x1a5   : > { %v5233_v55 = vpop.eup %5232  ;;  %v1679_v41 = vxor.u32 2147483648, %v5231_v31  ;;  %v1804_v42 = vshrl.u32 %v7825_v46, %v1801_v4  ;;  %v6131_v19 = vmul.f32 100.0, %v1266_v49  ;;  %v1807_v7 = vshrl.u32 %v7826_v48, %v1801_v4 }
 0x1a6   : > { %v1676_v56 = vxor.u32 2147483648, %v5233_v55  ;;  %v1751_v59 = vclz %v4942_v50  ;;  %v1810_v61 = vshrl.u32 %v7827_v10, %v1801_v4  ;;  %v1806_v43 = vshll.u32 %v7825_v46, %v1800_v12  ;;  %v5235_v32 = vpop.eup %5234 }
 0x1a7   : > { %v1680_v20 = vsel %vm1678_vm3, %v1679_v41, %v5233_v55  ;;  %v3363_v23 = vsel %vm3361_vm8, %v1679_v41, %v5233_v55  ;;  %v1809_v57 = vshll.u32 %v7826_v48, %v1800_v12  ;;  %v1812_v51 = vshll.u32 %v7827_v10, %v1800_v12 }
 0x1a8   : > { %v1677_v49 = vsel %vm1675_vm2, %v5231_v31, %v1676_v56  ;;  %v3360_v22 = vsel %vm3358_vm7, %v5231_v31, %v1676_v56  ;;  %v4943_v50 = vadd.s32 4294967294, %v1751_v59  ;;  %v1805_v55 = vor.u32 %v1804_v42, %v1803_v33 }
 0x1a9   : > { %v1681_v5 = vsel %vm1674_vm4, %v1677_v49, %v1680_v20  ;;  %v3364_v21 = vsel %vm3357_vm6, %v3360_v22, %v3363_v23  ;;  %v1808_v41 = vor.u32 %v1807_v7, %v1806_v43  ;;  %v1811_v31 = vor.u32 %v1810_v61, %v1809_v57 }
 0x1aa   : > { %v1682_v18 = vsel %vm1672_vm5, nan, %v1681_v5  ;;  %v3365_v39 = vsel %vm1672_vm5, nan, %v3364_v21  ;;  %vm4944_vm9 = vcmp.lt.s32.totalorder %v4943_v50, 0  ;;  %v7837_v45 = vmov 920167782  }
 0x1ab   : > { %v3024_v56 = vmul.f32 %v5235_v32, %v1682_v18  ;;  %v4720_v59 = vmul.f32 %v5235_v32, %v3365_v39  ;;  %v1754_v54 = vsel %vm4944_vm9, 0, %v4943_v50  ;;  %v1813_v24 = vshrl.u32 %v7837_v45, %v1801_v4 }
 0x1ac   : > { %v7838_v25 = vand.u32 2147483647, %v5868_v60  ;;  %v1755_v33 = vsub.s32 32, %v1754_v54  ;;  %v1759_v42 = vsub.s32 4294967266, %v1754_v54  ;;  %v1802_v5 = vshrl.u32 %v7828_v47, %v1801_v4 }
 0x1ad   : > { %v1893_v7 = vshrl.u32 %v1892_v16, 23  ;;  %3040 = vst [vmem:[%s5950_s20 + $0x10] sm:$0xff] %v3024_v56  ;;  %4736 = vst [vmem:[%s5956_s24 + $0x10] sm:$0xff] %v4720_v59  ;;  %v1756_v21 = vshll.u32 %v6093_v38, %v1754_v54  ;;  %v1814_v36 = vor.u32 %v1813_v24, %v1812_v51  ;;  %v1815_v39 = vshll.u32 %v7837_v45, %v1800_v12 }
 0x1ae   : > { %vm6154_vm10 = vcmp.le.f32.partialorder %v7838_v25, 0.7853982  ;;  %v1816_v18 = vshrl.u32 %v7821_v28, %v1801_v4  ;;  %v1757_v61 = vshrl.u32 %v1739_v15, %v1755_v33  ;;  %v1760_v23 = vadd.s32 127, %v1759_v42 }
 0x1af   : > { %vm1818_vm11 = vcmp.lt.s32.totalorder %v6126_v63, 1  ;;  %vm1821_vm12 = vcmp.lt.s32.totalorder %v6126_v63, 4  ;;  %vm1819_vm13 = vcmp.lt.s32.totalorder %v6126_v63, 2  ;;  %vm1820_vm14 = vcmp.lt.s32.totalorder %v6126_v63, 3 }
 0x1b0   : > { %v1817_v43 = vor.u32 %v1816_v18, %v1815_v39  ;;  %v1823_v57 = vsel %vm1821_vm12, %v1811_v31, 2102212464  ;;  %v1826_v16 = vsel %vm1818_vm11, %v1805_v55, %v1808_v41  ;;  %v1758_v32 = vor.u32 %v1757_v61, %v1756_v21 }
 0x1b1   : > { %v1761_v49 = vshll.u32 %v1760_v23, 23  ;;  %v1827_v51 = vsel %vm1821_vm12, %v1814_v36, 920167782  ;;  %v1822_v54 = vsel %vm1818_vm11, %v1802_v5, %v1805_v55  ;;  %v1830_v12 = vsel %vm1818_vm11, %v1808_v41, %v1811_v31 }
 0x1b2   : > { %v1828_v38 = vsel %vm1820_vm14, %v1811_v31, %v1827_v51  ;;  %v1831_v4 = vsel %vm1821_vm12, %v1817_v43, 1326507024  ;;  %v1824_v22 = vsel %vm1820_vm14, %v1808_v41, %v1823_v57  ;;  %v1765_v59 = vcvt.s32.f32 %v1758_v32 }
 0x1b3   : > { %v1762_v15 = vor.u32 4788187, %v1761_v49  ;;  %v1829_v50 = vsel %vm1819_vm13, %v1826_v16, %v1828_v38  ;;  %v1832_v56 = vsel %vm1820_vm14, %v1814_v36, %v1831_v4  ;;  %v1314_v41 = vsub.f32 %v6105_v37, %v6131_v19 }
 0x1b4   : > { %v1833_v24 = vsel %vm1819_vm13, %v1830_v12, %v1832_v56  ;;  %v6173_v25 = vmul.u32.u64.low %v6107_v58, %v1829_v50  ;;  %v6174_v33 = vmul.u32.u64.high %v6107_v58, %v1829_v50, %v6173_v25  ;;  %v1772_v5 = vsel %vm6154_vm10, 0, %v6124_v53 }
 0x1b5   : > { %v1763_v42 = vand.u32 2147483647, %v1762_v15  ;;  %v6178_v55 = vmul.u32.u64.low %v6107_v58, %v1833_v24  ;;  %v6179_v31 = vmul.u32.u64.high %v6107_v58, %v1833_v24, %v6178_v55  ;;  %v1825_v21 = vsel %vm1819_vm13, %v1822_v54, %v1824_v22  ;;  %v6203_v54 = vpop.f32.mrb[19].mxu0 }
 0x1b6   : > { %v4949_v36 = vadd.s32 4294967169, %v1893_v7  ;;  %v1187_v39 = vmul.f32 %v6113_v17, %v6113_v17  ;;  %v1219_v61 = vmul.f32 %v6100_v13, %v6100_v13  ;;  %v1844_v23 = vadd.s32 1, %v6174_v33  ;;  %v6198_v7 = vpop.f32.mrb[18].mxu1 }
 0x1b7   : > { %v1766_v18 = vmul.f32 %v1765_v59, %v1763_v42  ;;  %v1889_v43 = vand.u32 2147483647, %v6095_v52  ;;  %v3459_v53 = vadd.s32 3, %v1772_v5  ;;  %v1841_v63 = vmul.u32 %v6107_v58, %v1825_v21  ;;  %v6205_v38 = vpop.f32.mrb[19].mxu1 }
 0x1b8   : > { %v1899_v57 = vadd.s32 1, %v4949_v36  ;;  %v1203_v16 = vadd.f32 %v1187_v39, %v6109_v11  ;;  %vm1843_vm15 = vc.u32 %v6179_v31, %v6173_v25  ;;  %v1251_v51 = vmul.f32 %v6117_v34, %v6117_v34 }
 0x1b9   : > { %v1767_v32 = vxor.u32 2147483648, %v1766_v18  ;;  %v1845_v49 = vsel %vm1843_vm15, %v1844_v23, %v6174_v33  ;;  %v7841_v15 = vsub.f32 %v5977_v35, %v6035_v44  ;;  %v6217_v34 = vand.u32 3, %v1772_v5 }
 0x1ba   : > { %vm1900_vm1 = vcmp.gt.s32.totalorder %v1899_v57, 0  ;;  %v1235_v13 = vadd.f32 %v1219_v61, %v1203_v16  ;;  %v1846_v58 = vadd.s32 %v1845_v49, %v1841_v63  ;;  %v6219_v24 = vand.u32 3, %v3459_v53 }
 0x1bb   : > { %v1768_v11 = vsel %vm1685_vm0, %v1767_v32, %v1766_v18  ;;  %v1901_v12 = vsel %vm1900_vm1, %v1899_v57, 0  ;;  %v1332_v22 = vmul.f32 1.442695, %v7841_v15  ;;  %v1896_v33 = vand.u32 8388607, %v1889_v43 }
 0x1bc   : > { %v1771_v4 = vsel %vm6154_vm10, %v5868_v60, %v1768_v11  ;;  %v1903_v50 = vand.u32 31, %v1901_v12  ;;  %v6215_v56 = vadd.f32 %v1251_v51, %v1235_v13  ;;  %v1847_v59 = vadd.s32 536870912, %v1846_v58 }
 0x1bd   : > { %5236 = vcosq.f32 %v1771_v4  ;;  %v6225_v55 = vshrl.u32 %v1901_v12, 5  ;;  %vm1781_vm0 = vcmp.eq.s32.totalorder %v6217_v34, 2  ;;  %vm1778_vm2 = vcmp.eq.s32.totalorder %v6217_v34, 0  ;;  %v6257_v12 = vpop.f32.mrb[20].mxu0 }
 0x1be   : > { %5238 = vsinq.f32 %v1771_v4  ;;  %v1904_v42 = vsub.s32 32, %v1903_v50  ;;  %v6223_v20 = vshrl.u32 %v1847_v59, 30  ;;  %v1915_v44 = vshll.u32 %v7827_v10, %v1903_v50 }
 0x1bf   : > { %5240 = vpow2.f32 %v1332_v22  ;;  %vm3462_vm3 = vcmp.eq.s32.totalorder %v6219_v24, 0  ;;  %vm3465_vm4 = vcmp.eq.s32.totalorder %v6219_v24, 2  ;;  %v1897_v18 = vor.u32 8388608, %v1896_v33 }
 0x1c0   : > { %v1907_v35 = vshrl.u32 %v7825_v46, %v1904_v42  ;;  %v1849_v5 = vshll.u32 %v6223_v20, 30  ;;  %v1910_v21 = vshrl.u32 %v7826_v48, %v1904_v42  ;;  %v1913_v36 = vshrl.u32 %v7827_v10, %v1904_v42 }
 0x1c1   : > { %v1916_v39 = vshrl.u32 %v7837_v45, %v1904_v42  ;;  %v1906_v61 = vshll.u32 %v7828_v47, %v1903_v50  ;;  %v6240_v23 = vadd.f32 %v5597_v0, %v5721_v6  ;;  %vm1777_vm5 = vcmp.lt.s32.totalorder %v6217_v34, 2 }
 0x1c2   : > { %vm3461_vm6 = vcmp.lt.s32.totalorder %v6219_v24, 2  ;;  %v6244_v57 = vsub.s32 %v1846_v58, %v1849_v5  ;;  %v1909_v16 = vshll.u32 %v7825_v46, %v1903_v50  ;;  %v1912_v32 = vshll.u32 %v7826_v48, %v1903_v50 }
 0x1c3   : > { %v1917_v53 = vor.u32 %v1916_v39, %v1915_v44  ;;  %vm1775_vm7 = vweird.f32 %v5868_v60  ;;  %v1842_v63 = vadd.s32 %v6173_v25, %v6179_v31  ;;  %v1908_v49 = vor.u32 %v1907_v35, %v1906_v61 }
 0x1c4   : > { %v1919_v6 = vshrl.u32 %v7821_v28, %v1904_v42  ;;  %v6253_v13 = vmul.f32 -10.0, %v6113_v17  ;;  %v1852_v51 = vsub.s32 0, %v6244_v57  ;;  %v1911_v11 = vor.u32 %v1910_v21, %v1909_v16 }
 0x1c5   : > { %v1914_v58 = vor.u32 %v1913_v36, %v1912_v32  ;;  %vm1924_vm8 = vcmp.lt.s32.totalorder %v6225_v55, 4  ;;  %v1918_v4 = vshll.u32 %v7837_v45, %v1903_v50  ;;  %v6262_v25 = vshll.u32 %v1897_v18, 8 }
 0x1c6   : > { %v1930_v15 = vsel %vm1924_vm8, %v1917_v53, 920167782  ;;  %v6265_v31 = vmul.f32 10.0, %v6240_v23  ;;  %v4946_v22 = vmin.u32 %v1852_v51, %v6244_v57  ;;  %v1872_v59 = vsub.s32 4, %v6223_v20 }
 0x1c7   : > { %v5237_v17 = vpop.eup %5236  ;;  %v1905_v33 = vshrl.u32 %v7828_v47, %v1904_v42  ;;  %vm1921_vm9 = vcmp.lt.s32.totalorder %v6225_v55, 1  ;;  %v1920_v50 = vor.u32 %v1919_v6, %v1918_v4  ;;  %vm1922_vm10 = vcmp.lt.s32.totalorder %v6225_v55, 2 }
 0x1c8   : > { %v5239_v35 = vpop.eup %5238  ;;  %v1782_v44 = vxor.u32 2147483648, %v5237_v17  ;;  %vm1923_vm11 = vcmp.lt.s32.totalorder %v6225_v55, 3  ;;  %v1854_v21 = vclz %v4946_v22  ;;  %v1929_v36 = vsel %vm1921_vm9, %v1908_v49, %v1911_v11 }
 0x1c9   : > { %v1779_v5 = vxor.u32 2147483648, %v5239_v35  ;;  %v1931_v39 = vsel %vm1923_vm11, %v1914_v58, %v1930_v15  ;;  %v5241_v18 = vpop.eup %5240  ;;  %v1925_v16 = vsel %vm1921_vm9, %v1905_v33, %v1908_v49  ;;  %v1926_v32 = vsel %vm1924_vm8, %v1914_v58, 2102212464 }
 0x1ca   : > { %v1783_v42 = vsel %vm1781_vm0, %v1782_v44, %v5239_v35  ;;  %v3467_v61 = vsel %vm3465_vm4, %v1782_v44, %v5239_v35  ;;  %v4947_v4 = vadd.s32 4294967294, %v1854_v21  ;;  %v1933_v15 = vsel %vm1921_vm9, %v1911_v11, %v1914_v58 }
 0x1cb   : > { %v1780_v6 = vsel %vm1778_vm2, %v5237_v17, %v1779_v5  ;;  %v3464_v51 = vsel %vm3462_vm3, %v5237_v17, %v1779_v5  ;;  %v1932_v33 = vsel %vm1922_vm10, %v1929_v36, %v1931_v39  ;;  %v1934_v35 = vsel %vm1924_vm8, %v1920_v50, 1326507024 }
 0x1cc   : > { %v1784_v22 = vsel %vm1777_vm5, %v1780_v6, %v1783_v42  ;;  %v3468_v49 = vsel %vm3461_vm6, %v3464_v51, %v3467_v61  ;;  %vm4948_vm12 = vcmp.lt.s32.totalorder %v4947_v4, 0  ;;  %v1935_v34 = vsel %vm1923_vm11, %v1917_v53, %v1934_v35  ;;  %v6339_v35 = vpop.f32.mrb[20].mxu1 }
 0x1cd   : > { %v1785_v17 = vsel %vm1775_vm7, nan, %v1784_v22  ;;  %v3469_v58 = vsel %vm1775_vm7, nan, %v3468_v49  ;;  %v1857_v5 = vsel %vm4948_vm12, 0, %v4947_v4  ;;  %v1936_v21 = vsel %vm1922_vm10, %v1933_v15, %v1935_v34 }
 0x1ce   : > { %v3025_v24 = vmul.f32 %v5241_v18, %v1785_v17  ;;  %v4721_v44 = vmul.f32 %v5241_v18, %v3469_v58  ;;  %v1858_v36 = vsub.s32 32, %v1857_v5  ;;  %v1862_v39 = vsub.s32 4294967266, %v1857_v5 }
 0x1cf   : > { %v1927_v50 = vsel %vm1923_vm11, %v1911_v11, %v1926_v32  ;;  %v6310_v42 = vmul.f32 100.0, %v6215_v56  ;;  %v6315_v60 = vmul.u32.u64.low %v6262_v25, %v1936_v21  ;;  %v6316_v61 = vmul.u32.u64.high %v6262_v25, %v1936_v21, %v6315_v60 }
 0x1d0   : > { %3041 = vst [vmem:[%s5950_s20 + $0x18] sm:$0xff] %v3025_v24  ;;  %4737 = vst [vmem:[%s5956_s24 + $0x18] sm:$0xff] %v4721_v44  ;;  %v6319_v53 = vmul.u32.u64.low %v6262_v25, %v1932_v33  ;;  %v6320_v18 = vmul.u32.u64.high %v6262_v25, %v1932_v33, %v6319_v53  ;;  %v1859_v6 = vshll.u32 %v6244_v57, %v1857_v5  ;;  %v1860_v51 = vshrl.u32 %v1842_v63, %v1858_v36  ;;  %v6346_v44 = vpop.f32.mrb[21].mxu0  ;;  %v6348_v5 = vpop.f32.mrb[21].mxu1 }
 0x1d1   : > { %v1863_v4 = vadd.s32 127, %v1862_v39  ;;  %v1928_v56 = vsel %vm1922_vm10, %v1925_v16, %v1927_v50  ;;  %v1995_v32 = vand.u32 2139095040, %v6265_v31  ;;  %vm1788_vm13 = vcmp.lt.s32.totalorder %v6045_v27, 0 }
 0x1d2   : > { %v1861_v15 = vor.u32 %v1860_v51, %v1859_v6  ;;  %vm1946_vm14 = vc.u32 %v6316_v61, %v6319_v53  ;;  %v1947_v49 = vadd.s32 1, %v6320_v18  ;;  %v1873_v33 = vsel %vm1788_vm13, %v1872_v59, %v6223_v20 }
 0x1d3   : > { %v1864_v22 = vshll.u32 %v1863_v4, 23  ;;  %v1996_v57 = vshrl.u32 %v1995_v32, 23  ;;  %v1944_v55 = vmul.u32 %v6262_v25, %v1928_v56  ;;  %v1172_v16 = vmul.f32 %v6240_v23, %v6240_v23 }
 0x1d4   : > { %v1948_v17 = vsel %vm1946_vm14, %v1947_v49, %v6320_v18  ;;  %v1128_v34 = vadd.f32 %v5599_v1, %v5774_v8  ;;  %v1127_v24 = vadd.f32 %v5601_v2, %v5778_v30  ;;  %v7842_v20 = vand.u32 2147483647, %v6045_v27 }
 0x1d5   : > { %v1865_v63 = vor.u32 4788187, %v1864_v22  ;;  %v4953_v58 = vadd.s32 4294967169, %v1996_v57  ;;  %v1868_v59 = vcvt.s32.f32 %v1861_v15  ;;  %v1949_v21 = vadd.s32 %v1948_v17, %v1944_v55 }
 0x1d6   : > { %vm6352_vm15 = vcmp.le.f32.partialorder %v7842_v20, 0.7853982  ;;  %v7814_v8 = vand.u32 2147483647, %v6265_v31  ;;  %v1188_v30 = vmul.f32 %v1127_v24, %v1127_v24  ;;  %v1334_v18 = vmul.f32 1.442695, %v1314_v41 }
 0x1d7   : > { %v1866_v23 = vand.u32 2147483647, %v1865_v63  ;;  %v1875_v36 = vsel %vm6352_vm15, 0, %v1873_v33  ;;  %v2002_v39 = vadd.s32 1, %v4953_v58  ;;  %v1950_v60 = vadd.s32 536870912, %v1949_v21 }
 0x1d8   : > { %v1220_v6 = vmul.f32 %v1128_v34, %v1128_v34  ;;  %v1204_v51 = vadd.f32 %v1188_v30, %v1172_v16  ;;  %v3563_v56 = vadd.s32 3, %v1875_v36  ;;  %v1999_v22 = vand.u32 8388607, %v7814_v8 }
 0x1d9   : > { %v1869_v50 = vmul.f32 %v1868_v59, %v1866_v23  ;;  %vm2003_vm1 = vcmp.gt.s32.totalorder %v2002_v39, 0  ;;  %v6362_v32 = vshrl.u32 %v1950_v60, 30  ;;  %5242 = vpow2.f32 %v1334_v18  ;;  %v6402_v18 = vpop.f32.mrb[22].mxu0 }
 0x1da   : > { %v2004_v15 = vsel %vm2003_vm1, %v2002_v39, 0  ;;  %v6366_v57 = vadd.f32 %v1220_v6, %v1204_v51  ;;  %v6374_v33 = vand.u32 3, %v1875_v36  ;;  %v6376_v55 = vand.u32 3, %v3563_v56  ;;  %7845 = vst [vmem:[#allocation6_spill] sm:$0xff] %v6402_v18 }
 0x1db   : > { %v1870_v4 = vxor.u32 2147483648, %v1869_v50  ;;  %v2006_v49 = vand.u32 31, %v2004_v15  ;;  %v1952_v37 = vshll.u32 %v6362_v32, 30  ;;  %v2000_v17 = vor.u32 8388608, %v1999_v22 }
 0x1dc   : > { %v1129_v34 = vadd.f32 %v5603_v3, %v5780_v40  ;;  %v6388_v59 = vadd.f32 %v5597_v0, %v5827_v14  ;;  %vm1884_vm0 = vcmp.eq.s32.totalorder %v6374_v33, 2  ;;  %vm3569_vm2 = vcmp.eq.s32.totalorder %v6376_v55, 2 }
 0x1dd   : > { %v1871_v63 = vsel %vm1788_vm13, %v1870_v4, %v1869_v50  ;;  %v2007_v41 = vsub.s32 32, %v2006_v49  ;;  %v6378_v16 = vsub.s32 %v1949_v21, %v1952_v37  ;;  %v2009_v25 = vshll.u32 %v7828_v47, %v2006_v49 }
 0x1de   : > { %v1874_v19 = vsel %vm6352_vm15, %v6045_v27, %v1871_v63  ;;  %v2012_v21 = vshll.u32 %v7825_v46, %v2006_v49  ;;  %v2018_v39 = vshll.u32 %v7827_v10, %v2006_v49  ;;  %v1945_v40 = vadd.s32 %v6319_v53, %v6316_v61 }
 0x1df   : > { %5244 = vcosq.f32 %v1874_v19  ;;  %v2010_v58 = vshrl.u32 %v7825_v46, %v2007_v41  ;;  %v1955_v20 = vsub.s32 0, %v6378_v16  ;;  %v2013_v23 = vshrl.u32 %v7826_v48, %v2007_v41 }
 0x1e0   : > { %5246 = vsinq.f32 %v1874_v19  ;;  %v2016_v36 = vshrl.u32 %v7827_v10, %v2007_v41  ;;  %v2019_v30 = vshrl.u32 %v7837_v45, %v2007_v41  ;;  %v6399_v60 = vshrl.u32 %v2004_v15, 5 }
 0x1e1   : > { %v4950_v50 = vmin.u32 %v1955_v20, %v6378_v16  ;;  %v2015_v14 = vshll.u32 %v7826_v48, %v2006_v49  ;;  %vm1881_vm3 = vcmp.eq.s32.totalorder %v6374_v33, 0  ;;  %vm3566_vm4 = vcmp.eq.s32.totalorder %v6376_v55, 0 }
 0x1e2   : > { %v2011_v6 = vor.u32 %v2010_v58, %v2009_v25  ;;  %v2014_v51 = vor.u32 %v2013_v23, %v2012_v21  ;;  %v2020_v4 = vor.u32 %v2019_v30, %v2018_v39  ;;  %v6406_v56 = vmul.f32 -10.0, %v1127_v24 }
 0x1e3   : > { %vm1880_vm5 = vcmp.lt.s32.totalorder %v6374_v33, 2  ;;  %vm3565_vm6 = vcmp.lt.s32.totalorder %v6376_v55, 2  ;;  %v1957_v61 = vclz %v4950_v50  ;;  %v2017_v53 = vor.u32 %v2016_v36, %v2015_v14  ;;  %v5243_v25 = vpop.eup %5242 }
 0x1e4   : > { %v2022_v15 = vshrl.u32 %v7821_v28, %v2007_v41  ;;  %v6411_v22 = vshll.u32 %v2000_v17, 8  ;;  %vm1878_vm7 = vweird.f32 %v6045_v27  ;;  %v1975_v63 = vsub.s32 4, %v6362_v32 }
 0x1e5   : > { %v2021_v37 = vshll.u32 %v7837_v45, %v2006_v49  ;;  %v1252_v19 = vmul.f32 %v1129_v34, %v1129_v34  ;;  %v6417_v24 = vmul.f32 10.0, %v6388_v59  ;;  %v4951_v58 = vadd.s32 4294967294, %v1957_v61 }
 0x1e6   : > { %v2008_v20 = vshrl.u32 %v7828_v47, %v2007_v41  ;;  %vm2024_vm8 = vcmp.lt.s32.totalorder %v6399_v60, 1  ;;  %vm2027_vm9 = vcmp.lt.s32.totalorder %v6399_v60, 4  ;;  %vm2026_vm10 = vcmp.lt.s32.totalorder %v6399_v60, 3 }
 0x1e7   : > { %v2023_v17 = vor.u32 %v2022_v15, %v2021_v37  ;;  %v2032_v23 = vsel %vm2024_vm8, %v2011_v6, %v2014_v51  ;;  %v2033_v49 = vsel %vm2027_vm9, %v2020_v4, 920167782  ;;  %vm1891_vm11 = vcmp.lt.s32.totalorder %v6095_v52, 0 }
 0x1e8   : > { %vm4952_vm12 = vcmp.lt.s32.totalorder %v4951_v58, 0  ;;  %vm2025_vm13 = vcmp.lt.s32.totalorder %v6399_v60, 2  ;;  %v2028_v41 = vsel %vm2024_vm8, %v2008_v20, %v2011_v6  ;;  %v2034_v21 = vsel %vm2026_vm10, %v2017_v53, %v2033_v49 }
 0x1e9   : > { %v5245_v34 = vpop.eup %5244  ;;  %v1960_v30 = vsel %vm4952_vm12, 0, %v4951_v58  ;;  %v2029_v50 = vsel %vm2027_vm9, %v2017_v53, 2102212464  ;;  %v2036_v14 = vsel %vm2024_vm8, %v2014_v51, %v2017_v53  ;;  %v2035_v8 = vsel %vm2025_vm13, %v2032_v23, %v2034_v21 }
 0x1ea   : > { %v5247_v36 = vpop.eup %5246  ;;  %v1885_v39 = vxor.u32 2147483648, %v5245_v34  ;;  %v1961_v15 = vsub.s32 32, %v1960_v30  ;;  %v1965_v37 = vsub.s32 4294967266, %v1960_v30  ;;  %vm6445_vm14 = vcmp.le.f32.partialorder %v1889_v43, 0.7853982 }
 0x1eb   : > { %v1882_v61 = vxor.u32 2147483648, %v5247_v36  ;;  %v1962_v53 = vshll.u32 %v6378_v16, %v1960_v30  ;;  %v2037_v49 = vsel %vm2027_vm9, %v2023_v17, 1326507024  ;;  %v1268_v17 = vadd.f32 %v1252_v19, %v6366_v57 }
 0x1ec   : > { %v1886_v6 = vsel %vm1884_vm0, %v1885_v39, %v5247_v36  ;;  %v3571_v20 = vsel %vm3569_vm2, %v1885_v39, %v5247_v36  ;;  %v1963_v11 = vshrl.u32 %v1945_v40, %v1961_v15  ;;  %v1966_v18 = vadd.s32 127, %v1965_v37 }
 0x1ed   : > { %v1883_v23 = vsel %vm1881_vm3, %v5245_v34, %v1882_v61  ;;  %v3568_v21 = vsel %vm3566_vm4, %v5245_v34, %v1882_v61  ;;  %v2038_v16 = vsel %vm2026_vm10, %v2020_v4, %v2037_v49  ;;  %v6469_v15 = vmul.f32 100.0, %v1268_v17 }
 0x1ee   : > { %v1887_v43 = vsel %vm1880_vm5, %v1883_v23, %v1886_v6  ;;  %v3572_v36 = vsel %vm3565_vm6, %v3568_v21, %v3571_v20  ;;  %v1964_v34 = vor.u32 %v1963_v11, %v1962_v53  ;;  %v1967_v30 = vshll.u32 %v1966_v18, 23 }
 0x1ef   : > { %v1888_v39 = vsel %vm1878_vm7, nan, %v1887_v43  ;;  %v3573_v40 = vsel %vm1878_vm7, nan, %v3572_v36  ;;  %v2039_v55 = vsel %vm2025_vm13, %v2036_v14, %v2038_v16  ;;  %v2030_v4 = vsel %vm2026_vm10, %v2014_v51, %v2029_v50  ;;  %v6508_v16 = vpop.f32.mrb[22].mxu1 }
 0x1f0   : > { %v3026_v33 = vmul.f32 %v5243_v25, %v1888_v39  ;;  %v4722_v61 = vmul.f32 %v5243_v25, %v3573_v40  ;;  %v1968_v37 = vor.u32 4788187, %v1967_v30  ;;  %v1976_v27 = vsel %vm1891_vm11, %v1975_v63, %v6362_v32  ;;  %v6511_v30 = vpop.f32.mrb[23].mxu0 }
 0x1f1   : > { %v6474_v57 = vmul.u32.u64.low %v6411_v22, %v2039_v55  ;;  %v6475_v19 = vmul.u32.u64.high %v6411_v22, %v2039_v55, %v6474_v57  ;;  %v6483_v11 = vmul.u32.u64.low %v6411_v22, %v2035_v8  ;;  %v6484_v18 = vmul.u32.u64.high %v6411_v22, %v2035_v8, %v6483_v11 }
 0x1f2   : > { %3042 = vst [vmem:[%s5950_s20 + $0x20] sm:$0xff] %v3026_v33  ;;  %4738 = vst [vmem:[%s5956_s24 + $0x20] sm:$0xff] %v4722_v61  ;;  %v1969_v14 = vand.u32 2147483647, %v1968_v37  ;;  %v1971_v6 = vcvt.s32.f32 %v1964_v34  ;;  %v1173_v51 = vmul.f32 %v6388_v59, %v6388_v59  ;;  %v2098_v50 = vand.u32 2139095040, %v6417_v24  ;;  %v6513_v33 = vpop.f32.mrb[23].mxu1 }
 0x1f3   : > { %v2031_v20 = vsel %vm2025_vm13, %v2028_v41, %v2030_v4  ;;  %v7815_v53 = vand.u32 2147483647, %v6417_v24  ;;  %v1132_v32 = vadd.f32 %v5599_v1, %v5928_v9  ;;  %v1131_v8 = vadd.f32 %v5601_v2, %v5934_v29 }
 0x1f4   : > { %v1972_v63 = vmul.f32 %v1971_v6, %v1969_v14  ;;  %v1978_v49 = vsel %vm6445_vm14, 0, %v1976_v27  ;;  %vm2049_vm15 = vc.u32 %v6475_v19, %v6483_v11  ;;  %v2099_v59 = vshrl.u32 %v2098_v50, 23 }
 0x1f5   : > { %v2050_v23 = vadd.s32 1, %v6484_v18  ;;  %v1189_v21 = vmul.f32 %v1131_v8, %v1131_v8  ;;  %v1133_v60 = vadd.f32 %v5603_v3, %v5936_v62  ;;  %v7848_v9 = vsub.f32 %v6253_v13, %v6310_v42 }
 0x1f6   : > { %v1973_v41 = vxor.u32 2147483648, %v1972_v63  ;;  %v2047_v29 = vmul.u32 %v6411_v22, %v2031_v20  ;;  %v4957_v36 = vadd.s32 4294967169, %v2099_v59  ;;  %v3667_v17 = vadd.s32 3, %v1978_v49 }
 0x1f7   : > { %v1336_v43 = vmul.f32 1.442695, %v7848_v9  ;;  %v2051_v39 = vsel %vm2049_vm15, %v2050_v23, %v6484_v18  ;;  %v1221_v40 = vmul.f32 %v1132_v32, %v1132_v32  ;;  %v1205_v34 = vadd.f32 %v1189_v21, %v1173_v51 }
 0x1f8   : > { %v1974_v62 = vsel %vm1891_vm11, %v1973_v41, %v1972_v63  ;;  %v2052_v61 = vadd.s32 %v2051_v39, %v2047_v29  ;;  %v2102_v13 = vand.u32 8388607, %v7815_v53  ;;  %v2105_v42 = vadd.s32 1, %v4957_v36 }
 0x1f9   : > { %v1977_v22 = vsel %vm6445_vm14, %v6095_v52, %v1974_v62  ;;  %v1237_v55 = vadd.f32 %v1221_v40, %v1205_v34  ;;  %v1253_v37 = vmul.f32 %v1133_v60, %v1133_v60  ;;  %v6524_v4 = vadd.f32 %v5597_v0, %v6000_v26  ;;  %v6561_v40 = vpop.f32.mrb[24].mxu0 }
 0x1fa   : > { %5248 = vcosq.f32 %v1977_v22  ;;  %v6526_v57 = vand.u32 3, %v1978_v49  ;;  %v2053_v27 = vadd.s32 536870912, %v2052_v61  ;;  %vm2106_vm1 = vcmp.gt.s32.totalorder %v2105_v42, 0  ;;  %7849 = vst [vmem:[#allocation7_spill] sm:$0xff] %v6561_v40 }
 0x1fb   : > { %5250 = vsinq.f32 %v1977_v22  ;;  %v3668_v18 = vand.u32 3, %v3667_v17  ;;  %v2107_v14 = vsel %vm2106_vm1, %v2105_v42, 0  ;;  %v1269_v6 = vadd.f32 %v1253_v37, %v1237_v55 }
 0x1fc   : > { %v6528_v51 = vshrl.u32 %v2053_v27, 30  ;;  %v2103_v50 = vor.u32 8388608, %v2102_v13  ;;  %v2109_v58 = vand.u32 31, %v2107_v14  ;;  %v6531_v20 = vmul.f32 10.0, %v6524_v4 }
 0x1fd   : > { %5252 = vpow2.f32 %v1336_v43  ;;  %vm1984_vm0 = vcmp.eq.s32.totalorder %v6526_v57, 0  ;;  %vm1987_vm2 = vcmp.eq.s32.totalorder %v6526_v57, 2  ;;  %vm3670_vm3 = vcmp.eq.s32.totalorder %v3668_v18, 0 }
 0x1fe   : > { %v2055_v26 = vshll.u32 %v6528_v51, 30  ;;  %v2110_v32 = vsub.s32 32, %v2109_v58  ;;  %vm3673_vm4 = vcmp.eq.s32.totalorder %v3668_v18, 2  ;;  %vm1983_vm5 = vcmp.lt.s32.totalorder %v6526_v57, 2 }
 0x1ff   : > { %vm3669_vm6 = vcmp.lt.s32.totalorder %v3668_v18, 2  ;;  %v6538_v63 = vadd.s32 %v6483_v11, %v6475_v19  ;;  %v6542_v59 = vshll.u32 %v2103_v50, 8  ;;  %v6544_v23 = vmul.f32 -10.0, %v1131_v8 }
 0x200   : > { %v6540_v49 = vsub.s32 %v2052_v61, %v2055_v26  ;;  %vm1981_vm7 = vweird.f32 %v6095_v52  ;;  %v6547_v21 = vshrl.u32 %v2107_v14, 5  ;;  %v2113_v60 = vshrl.u32 %v7825_v46, %v2110_v32 }
 0x201   : > { %v6550_v41 = vmul.f32 100.0, %v1269_v6  ;;  %v2116_v19 = vshrl.u32 %v7826_v48, %v2110_v32  ;;  %v2119_v11 = vshrl.u32 %v7827_v10, %v2110_v32  ;;  %v2112_v36 = vshll.u32 %v7828_v47, %v2109_v58 }
 0x202   : > { %v2058_v43 = vsub.s32 0, %v6540_v49  ;;  %v2122_v17 = vshrl.u32 %v7837_v45, %v2110_v32  ;;  %v2125_v39 = vshrl.u32 %v7821_v28, %v2110_v32  ;;  %v2115_v61 = vshll.u32 %v7825_v46, %v2109_v58 }
 0x203   : > { %v2118_v13 = vshll.u32 %v7826_v48, %v2109_v58  ;;  %v2121_v42 = vshll.u32 %v7827_v10, %v2109_v58  ;;  %v2111_v37 = vshrl.u32 %v7828_v47, %v2110_v32  ;;  %v2114_v27 = vor.u32 %v2113_v60, %v2112_v36 }
 0x204   : > { %v5249_v34 = vpop.eup %5248  ;;  %v4954_v62 = vmin.u32 %v2058_v43, %v6540_v49  ;;  %v2124_v14 = vshll.u32 %v7837_v45, %v2109_v58  ;;  %v2117_v26 = vor.u32 %v2116_v19, %v2115_v61  ;;  %vm2127_vm8 = vcmp.lt.s32.totalorder %v6547_v21, 1 }
 0x205   : > { %v5251_v22 = vpop.eup %5250  ;;  %v1988_v55 = vxor.u32 2147483648, %v5249_v34  ;;  %v2120_v53 = vor.u32 %v2119_v11, %v2118_v13  ;;  %v2123_v9 = vor.u32 %v2122_v17, %v2121_v42  ;;  %vm2128_vm9 = vcmp.lt.s32.totalorder %v6547_v21, 2 }
 0x206   : > { %v1985_v6 = vxor.u32 2147483648, %v5251_v22  ;;  %v2060_v50 = vclz %v4954_v62  ;;  %v2126_v8 = vor.u32 %v2125_v39, %v2124_v14  ;;  %vm2129_vm10 = vcmp.lt.s32.totalorder %v6547_v21, 3 }
 0x207   : > { %v1989_v43 = vsel %vm1987_vm2, %v1988_v55, %v5251_v22  ;;  %v3675_v25 = vsel %vm3673_vm4, %v1988_v55, %v5251_v22  ;;  %v5253_v29 = vpop.eup %5252  ;;  %vm2130_vm12 = vcmp.lt.s32.totalorder %v6547_v21, 4  ;;  %v2135_v52 = vsel %vm2127_vm8, %v2114_v27, %v2117_v26 }
 0x208   : > { %v1986_v40 = vsel %vm1984_vm0, %v5249_v34, %v1985_v6  ;;  %v3672_v32 = vsel %vm3670_vm3, %v5249_v34, %v1985_v6  ;;  %v4955_v60 = vadd.s32 4294967294, %v2060_v50  ;;  %v2132_v62 = vsel %vm2130_vm12, %v2120_v53, 2102212464 }
 0x209   : > { %v1990_v58 = vsel %vm1983_vm5, %v1986_v40, %v1989_v43  ;;  %v3676_v19 = vsel %vm3669_vm6, %v3672_v32, %v3675_v25  ;;  %v2131_v25 = vsel %vm2127_vm8, %v2111_v37, %v2114_v27  ;;  %v2136_v61 = vsel %vm2130_vm12, %v2123_v9, 920167782 }
 0x20a   : > { %v1991_v11 = vsel %vm1981_vm7, nan, %v1990_v58  ;;  %v3677_v36 = vsel %vm1981_vm7, nan, %v3676_v19  ;;  %vm4956_vm11 = vcmp.lt.s32.totalorder %v4955_v60, 0  ;;  %v2139_v13 = vsel %vm2127_vm8, %v2117_v26, %v2120_v53 }
 0x20b   : > { %v3027_v17 = vmul.f32 %v5253_v29, %v1991_v11  ;;  %v4723_v57 = vmul.f32 %v5253_v29, %v3677_v36  ;;  %v2063_v39 = vsel %vm4956_vm11, 0, %v4955_v60  ;;  %v2140_v42 = vsel %vm2130_vm12, %v2126_v8, 1326507024  ;;  %v6619_v60 = vpop.f32.mrb[24].mxu1 }
 0x20c   : > { %v2064_v18 = vsub.s32 32, %v2063_v39  ;;  %v2065_v40 = vshll.u32 %v6540_v49, %v2063_v39  ;;  %v2068_v34 = vsub.s32 4294967266, %v2063_v39  ;;  %v2137_v55 = vsel %vm2129_vm10, %v2120_v53, %v2136_v61  ;;  %v7856_v61 = vld [vmem:[#allocation3_spill] sm:$0xff] }
 0x20d   : > { %3043 = vst [vmem:[%s5950_s20 + $0x28] sm:$0xff] %v3027_v17  ;;  %4739 = vst [vmem:[%s5956_s24 + $0x28] sm:$0xff] %v4723_v57  ;;  %v2141_v49 = vsel %vm2129_vm10, %v2123_v9, %v2140_v42  ;;  %v2133_v37 = vsel %vm2129_vm10, %v2117_v26, %v2132_v62  ;;  %v2138_v27 = vsel %vm2128_vm9, %v2135_v52, %v2137_v55  ;;  %vm1994_vm13 = vcmp.lt.s32.totalorder %v6265_v31, 0  ;;  %v7855_v57 = vld [vmem:[#allocation2_spill] sm:$0xff] }
 0x20e   : > { %v2066_v29 = vshrl.u32 %v6538_v63, %v2064_v18  ;;  %v2069_v22 = vadd.s32 127, %v2068_v34  ;;  %v2142_v14 = vsel %vm2128_vm9, %v2139_v13, %v2141_v49  ;;  %v7850_v43 = vand.u32 2139095040, %v6531_v20  ;;  %v6634_v18 = vpop.f32.mrb[25].mxu0 }
 0x20f   : > { %v6609_v50 = vmul.u32.u64.low %v6542_v59, %v2142_v14  ;;  %v6610_v53 = vmul.u32.u64.high %v6542_v59, %v2142_v14, %v6609_v50  ;;  %v6614_v9 = vmul.u32.u64.low %v6542_v59, %v2138_v27  ;;  %v6615_v26 = vmul.u32.u64.high %v6542_v59, %v2138_v27, %v6614_v9 }
 0x210   : > { %v2067_v63 = vor.u32 %v2066_v29, %v2065_v40  ;;  %v2070_v6 = vshll.u32 %v2069_v22, 23  ;;  %v2202_v32 = vshrl.u32 %v7850_v43, 23  ;;  %v7851_v58 = vand.u32 2147483647, %v6265_v31  ;;  %v6636_v40 = vpop.f32.mrb[25].mxu1 }
 0x211   : > { %v7854_v36 = vsub.s32 4, %v6528_v51  ;;  %v1136_v39 = vadd.f32 %v5599_v1, %v7855_v57  ;;  %v2134_v34 = vsel %vm2128_vm9, %v2131_v25, %v2133_v37  ;;  %v1174_v62 = vmul.f32 %v6524_v4, %v6524_v4 }
 0x212   : > { %vm6623_vm14 = vcmp.le.f32.partialorder %v7851_v58, 0.7853982  ;;  %v2071_v11 = vor.u32 4788187, %v2070_v6  ;;  %v4961_v52 = vadd.s32 4294967169, %v2202_v32  ;;  %v1135_v13 = vadd.f32 %v5601_v2, %v7856_v61 }
 0x213   : > { %v2079_v17 = vsel %vm1994_vm13, %v7854_v36, %v6528_v51  ;;  %v2074_v29 = vcvt.s32.f32 %v2067_v63  ;;  %vm2152_vm15 = vc.u32 %v6610_v53, %v6614_v9  ;;  %v7857_v51 = vand.u32 2147483647, %v6531_v20 }
 0x214   : > { %v2072_v42 = vand.u32 2147483647, %v2071_v11  ;;  %v2081_v55 = vsel %vm6623_vm14, 0, %v2079_v17  ;;  %v2153_v21 = vadd.s32 1, %v6615_v26  ;;  %v2208_v25 = vadd.s32 1, %v4961_v52 }
 0x215   : > { %v2205_v22 = vand.u32 8388607, %v7857_v51  ;;  %v1190_v49 = vmul.f32 %v1135_v13, %v1135_v13  ;;  %v7858_v4 = vsub.f32 %v6406_v56, %v6469_v15  ;;  %v2150_v14 = vmul.u32 %v6542_v59, %v2134_v34  ;;  %v7859_v56 = vld [vmem:[#allocation4_spill] sm:$0xff] }
 0x216   : > { %v2075_v37 = vmul.f32 %v2074_v29, %v2072_v42  ;;  %v2154_v63 = vsel %vm2152_vm15, %v2153_v21, %v6615_v26  ;;  %vm2209_vm1 = vcmp.gt.s32.totalorder %v2208_v25, 0  ;;  %v1222_v6 = vmul.f32 %v1136_v39, %v1136_v39 }
 0x217   : > { %v1338_v27 = vmul.f32 1.442695, %v7858_v4  ;;  %v1206_v50 = vadd.f32 %v1190_v49, %v1174_v62  ;;  %v3771_v32 = vadd.s32 3, %v2081_v55  ;;  %v2155_v58 = vadd.s32 %v2154_v63, %v2150_v14 }
 0x218   : > { %v2076_v43 = vxor.u32 2147483648, %v2075_v37  ;;  %v2210_v11 = vsel %vm2209_vm1, %v2208_v25, 0  ;;  %v2206_v36 = vor.u32 8388608, %v2205_v22  ;;  %v1137_v15 = vadd.f32 %v5603_v3, %v7859_v56  ;;  %v7860_v25 = vld [vmem:[#allocation5_spill] sm:$0xff] }
 0x219   : > { %v2212_v17 = vand.u32 31, %v2210_v11  ;;  %v1238_v57 = vadd.f32 %v1222_v6, %v1206_v50  ;;  %v2156_v61 = vadd.s32 536870912, %v2155_v58  ;;  %5254 = vpow2.f32 %v1338_v27 }
 0x21a   : > { %v2077_v52 = vsel %vm1994_vm13, %v2076_v43, %v2075_v37  ;;  %v6662_v39 = vand.u32 3, %v2081_v55  ;;  %v6664_v34 = vand.u32 3, %v3771_v32  ;;  %v6669_v42 = vadd.s32 %v6614_v9, %v6610_v53 }
 0x21b   : > { %v2080_v59 = vsel %vm6623_vm14, %v6265_v31, %v2077_v52  ;;  %v2213_v26 = vsub.s32 32, %v2212_v17  ;;  %v6666_v62 = vshrl.u32 %v2156_v61, 30  ;;  %v6671_v29 = vshll.u32 %v2206_v36, 8 }
 0x21c   : > { %5256 = vcosq.f32 %v2080_v59  ;;  %v6673_v51 = vmul.f32 -10.0, %v1135_v13  ;;  %v1254_v21 = vmul.f32 %v1137_v15, %v1137_v15  ;;  %v1138_v55 = vadd.f32 %v5597_v0, %v7860_v25 }
 0x21d   : > { %5258 = vsinq.f32 %v2080_v59  ;;  %v2158_v19 = vshll.u32 %v6666_v62, 30  ;;  %v2225_v22 = vshrl.u32 %v7837_v45, %v2213_v26  ;;  %v2216_v49 = vshrl.u32 %v7825_v46, %v2213_v26 }
 0x21e   : > { %v2219_v37 = vshrl.u32 %v7826_v48, %v2213_v26  ;;  %v2222_v4 = vshrl.u32 %v7827_v10, %v2213_v26  ;;  %v2228_v53 = vshrl.u32 %v7821_v28, %v2213_v26  ;;  %vm2090_vm0 = vcmp.eq.s32.totalorder %v6662_v39, 2 }
 0x21f   : > { %vm3777_vm2 = vcmp.eq.s32.totalorder %v6664_v34, 2  ;;  %v6685_v9 = vsub.s32 %v2155_v58, %v2158_v19  ;;  %v2224_v13 = vshll.u32 %v7827_v10, %v2212_v17  ;;  %v2227_v27 = vshll.u32 %v7837_v45, %v2212_v17 }
 0x220   : > { %v6691_v14 = vadd.f32 %v5601_v2, %v6203_v54  ;;  %vm2087_vm3 = vcmp.eq.s32.totalorder %v6662_v39, 0  ;;  %vm3774_vm4 = vcmp.eq.s32.totalorder %v6664_v34, 0  ;;  %v6695_v63 = vshrl.u32 %v2210_v11, 5 }
 0x221   : > { %v2215_v6 = vshll.u32 %v7828_v47, %v2212_v17  ;;  %v2218_v50 = vshll.u32 %v7825_v46, %v2212_v17  ;;  %v2221_v43 = vshll.u32 %v7826_v48, %v2212_v17  ;;  %vm2086_vm5 = vcmp.lt.s32.totalorder %v6662_v39, 2 }
 0x222   : > { %vm3773_vm6 = vcmp.lt.s32.totalorder %v6664_v34, 2  ;;  %v2161_v32 = vsub.s32 0, %v6685_v9  ;;  %v2226_v54 = vor.u32 %v2225_v22, %v2224_v13  ;;  %v2229_v58 = vor.u32 %v2228_v53, %v2227_v27  ;;  %v6718_v22 = vpop.f32.mrb[26].mxu0 }
 0x223   : > { %v6705_v36 = vadd.f32 %v5599_v1, %v6198_v7  ;;  %vm2084_vm7 = vweird.f32 %v6265_v31  ;;  %v2217_v11 = vor.u32 %v2216_v49, %v2215_v6  ;;  %v2220_v52 = vor.u32 %v2219_v37, %v2218_v50  ;;  %v5255_v7 = vpop.eup %5254 }
 0x224   : > { %v2223_v61 = vor.u32 %v2222_v4, %v2221_v43  ;;  %v6708_v56 = vmul.f32 %v1138_v55, %v1138_v55  ;;  %v4958_v17 = vmin.u32 %v2161_v32, %v6685_v9  ;;  %v2214_v15 = vshrl.u32 %v7828_v47, %v2213_v26 }
 0x225   : > { %v6712_v59 = vmul.f32 10.0, %v1138_v55  ;;  %v6716_v19 = vmul.f32 %v6691_v14, %v6691_v14  ;;  %v2181_v25 = vsub.s32 4, %v6666_v62  ;;  %vm2230_vm8 = vcmp.lt.s32.totalorder %v6695_v63, 1 }
 0x226   : > { %vm2233_vm9 = vcmp.lt.s32.totalorder %v6695_v63, 4  ;;  %v1270_v49 = vadd.f32 %v1254_v21, %v1238_v57  ;;  %v5257_v37 = vpop.eup %5256  ;;  %v2163_v4 = vclz %v4958_v17  ;;  %vm2231_vm10 = vcmp.lt.s32.totalorder %v6695_v63, 2 }
 0x227   : > { %v2239_v26 = vsel %vm2233_vm9, %v2226_v54, 920167782  ;;  %v2243_v55 = vsel %vm2233_vm9, %v2229_v58, 1326507024  ;;  %v5259_v53 = vpop.eup %5258  ;;  %v2091_v13 = vxor.u32 2147483648, %v5257_v37  ;;  %vm2232_vm11 = vcmp.lt.s32.totalorder %v6695_v63, 3 }
 0x228   : > { %v2234_v27 = vsel %vm2230_vm8, %v2214_v15, %v2217_v11  ;;  %v2242_v6 = vsel %vm2230_vm8, %v2220_v52, %v2223_v61  ;;  %v2088_v50 = vxor.u32 2147483648, %v5259_v53  ;;  %v4959_v43 = vadd.s32 4294967294, %v2163_v4 }
 0x229   : > { %v2235_v32 = vsel %vm2233_vm9, %v2223_v61, 2102212464  ;;  %v2238_v57 = vsel %vm2230_vm8, %v2217_v11, %v2220_v52  ;;  %v2092_v21 = vsel %vm2090_vm0, %v2091_v13, %v5259_v53  ;;  %v3779_v58 = vsel %vm3777_vm2, %v2091_v13, %v5259_v53 }
 0x22a   : > { %v2240_v17 = vsel %vm2232_vm11, %v2223_v61, %v2239_v26  ;;  %v2244_v15 = vsel %vm2232_vm11, %v2226_v54, %v2243_v55  ;;  %v2089_v8 = vsel %vm2087_vm3, %v5257_v37, %v2088_v50  ;;  %v3776_v4 = vsel %vm3774_vm4, %v5257_v37, %v2088_v50 }
 0x22b   : > { %vm4960_vm12 = vcmp.lt.s32.totalorder %v4959_v43, 0  ;;  %v2245_v11 = vsel %vm2231_vm10, %v2242_v6, %v2244_v15  ;;  %v2093_v53 = vsel %vm2086_vm5, %v2089_v8, %v2092_v21  ;;  %v3780_v61 = vsel %vm3773_vm6, %v3776_v4, %v3779_v58 }
 0x22c   : > { %v2166_v26 = vsel %vm4960_vm12, 0, %v4959_v43  ;;  %v6749_v54 = vmul.f32 100.0, %v1270_v49  ;;  %v2094_v55 = vsel %vm2084_vm7, nan, %v2093_v53  ;;  %v3781_v37 = vsel %vm2084_vm7, nan, %v3780_v61 }
 0x22d   : > { %v2167_v13 = vsub.s32 32, %v2166_v26  ;;  %v2241_v6 = vsel %vm2231_vm10, %v2238_v57, %v2240_v17  ;;  %v3028_v39 = vmul.f32 %v5255_v7, %v2094_v55  ;;  %v4724_v50 = vmul.f32 %v5255_v7, %v3781_v37 }
 0x22e   : > { %v2171_v8 = vsub.s32 4294967266, %v2166_v26  ;;  %v2236_v49 = vsel %vm2232_vm11, %v2220_v52, %v2235_v32  ;;  %v6763_v21 = vmul.u32.u64.low %v6671_v29, %v2245_v11  ;;  %v6764_v58 = vmul.u32.u64.high %v6671_v29, %v2245_v11, %v6763_v21 }
 0x22f   : > { %v2169_v43 = vshrl.u32 %v6669_v42, %v2167_v13  ;;  %3044 = vst [vmem:[%s5950_s20 + $0x30] sm:$0xff] %v3028_v39  ;;  %4740 = vst [vmem:[%s5956_s24 + $0x30] sm:$0xff] %v4724_v50  ;;  %v2168_v31 = vshll.u32 %v6685_v9, %v2166_v26  ;;  %v6770_v7 = vmul.u32.u64.low %v6671_v29, %v2241_v6  ;;  %v6771_v17 = vmul.u32.u64.high %v6671_v29, %v2241_v6, %v6770_v7  ;;  %v6797_v13 = vpop.f32.mrb[26].mxu1 }
 0x230   : > { %v2172_v57 = vadd.s32 127, %v2171_v8  ;;  %vm2097_vm13 = vcmp.lt.s32.totalorder %v6417_v24, 0  ;;  %v2304_v42 = vand.u32 2139095040, %v6712_v59  ;;  %v2237_v32 = vsel %vm2231_vm10, %v2234_v27, %v2236_v49 }
 0x231   : > { %v2170_v15 = vor.u32 %v2169_v43, %v2168_v31  ;;  %v2182_v52 = vsel %vm2097_vm13, %v2181_v25, %v6666_v62  ;;  %v7861_v9 = vand.u32 2147483647, %v6417_v24  ;;  %vm2255_vm15 = vc.u32 %v6764_v58, %v6770_v7  ;;  %v6802_v43 = vpop.f32.mrb[27].mxu1 }
 0x232   : > { %v2173_v4 = vshll.u32 %v2172_v57, 23  ;;  %v2305_v53 = vshrl.u32 %v2304_v42, 23  ;;  %v2256_v26 = vadd.s32 1, %v6771_v17  ;;  %v1223_v55 = vmul.f32 %v6705_v36, %v6705_v36  ;;  %v6800_v36 = vpop.f32.mrb[27].mxu0 }
 0x233   : > { %vm6782_vm14 = vcmp.le.f32.partialorder %v7861_v9, 0.7853982  ;;  %v1207_v62 = vadd.f32 %v6716_v19, %v6708_v56  ;;  %v2253_v25 = vmul.u32 %v6671_v29, %v2237_v32  ;;  %v1141_v37 = vadd.f32 %v5603_v3, %v6205_v38 }
 0x234   : > { %v2174_v61 = vor.u32 4788187, %v2173_v4  ;;  %v2184_v63 = vsel %vm6782_vm14, 0, %v2182_v52  ;;  %v4965_v27 = vadd.s32 4294967169, %v2305_v53  ;;  %v2177_v39 = vcvt.s32.f32 %v2170_v15 }
 0x235   : > { %v2257_v50 = vsel %vm2255_vm15, %v2256_v26, %v6771_v17  ;;  %v1239_v8 = vadd.f32 %v1223_v55, %v1207_v62  ;;  %v7816_v19 = vand.u32 2147483647, %v6712_v59  ;;  %v1255_v29 = vmul.f32 %v1141_v37, %v1141_v37 }
 0x236   : > { %v2175_v6 = vand.u32 2147483647, %v2174_v61  ;;  %v2258_v56 = vadd.s32 %v2257_v50, %v2253_v25  ;;  %v2311_v49 = vadd.s32 1, %v4965_v27  ;;  %v7864_v38 = vsub.f32 %v6544_v23, %v6550_v41 }
 0x237   : > { %v1271_v42 = vadd.f32 %v1255_v29, %v1239_v8  ;;  %v3875_v17 = vadd.s32 3, %v2184_v63  ;;  %v2308_v32 = vand.u32 8388607, %v7816_v19  ;;  %v6820_v26 = vadd.f32 %v5597_v0, %v6257_v12 }
 0x238   : > { %v2178_v21 = vmul.f32 %v2177_v39, %v2175_v6  ;;  %v1340_v31 = vmul.f32 1.442695, %v7864_v38  ;;  %v2259_v57 = vadd.s32 536870912, %v2258_v56  ;;  %vm2312_vm1 = vcmp.gt.s32.totalorder %v2311_v49, 0 }
 0x239   : > { %v2313_v4 = vsel %vm2312_vm1, %v2311_v49, 0  ;;  %v6822_v55 = vand.u32 3, %v2184_v63  ;;  %v6824_v62 = vand.u32 3, %v3875_v17  ;;  %v6827_v25 = vadd.s32 %v6770_v7, %v6764_v58 }
 0x23a   : > { %v2179_v15 = vxor.u32 2147483648, %v2178_v21  ;;  %v6808_v52 = vshrl.u32 %v2259_v57, 30  ;;  %v2315_v9 = vand.u32 31, %v2313_v4  ;;  %5260 = vpow2.f32 %v1340_v31  ;;  %v6855_v57 = vpop.f32.mrb[28].mxu0 }
 0x23b   : > { %v2309_v11 = vor.u32 8388608, %v2308_v32  ;;  %v6835_v12 = vmul.f32 -10.0, %v6691_v14  ;;  %v6841_v58 = vmul.f32 10.0, %v6820_v26  ;;  %vm2193_vm0 = vcmp.eq.s32.totalorder %v6822_v55, 2  ;;  %7865 = vst [vmem:[#allocation2_spill] sm:$0xff] %v6855_v57 }
 0x23c   : > { %v2180_v53 = vsel %vm2097_vm13, %v2179_v15, %v2178_v21  ;;  %v2261_v41 = vshll.u32 %v6808_v52, 30  ;;  %v2316_v61 = vsub.s32 32, %v2315_v9  ;;  %v2318_v50 = vshll.u32 %v7828_v47, %v2315_v9 }
 0x23d   : > { %v2183_v23 = vsel %vm6782_vm14, %v6417_v24, %v2180_v53  ;;  %v2321_v8 = vshll.u32 %v7825_v46, %v2315_v9  ;;  %vm3881_vm2 = vcmp.eq.s32.totalorder %v6824_v62, 2  ;;  %v6845_v7 = vshrl.u32 %v2313_v4, 5 }
 0x23e   : > { %5262 = vcosq.f32 %v2183_v23  ;;  %v6829_v27 = vsub.s32 %v2258_v56, %v2261_v41  ;;  %v2319_v37 = vshrl.u32 %v7825_v46, %v2316_v61  ;;  %v2322_v6 = vshrl.u32 %v7826_v48, %v2316_v61 }
 0x23f   : > { %5264 = vsinq.f32 %v2183_v23  ;;  %v2325_v39 = vshrl.u32 %v7827_v10, %v2316_v61  ;;  %v2324_v56 = vshll.u32 %v7826_v48, %v2315_v9  ;;  %v2327_v14 = vshll.u32 %v7827_v10, %v2315_v9 }
 0x240   : > { %v2264_v63 = vsub.s32 0, %v6829_v27  ;;  %v2328_v49 = vshrl.u32 %v7837_v45, %v2316_v61  ;;  %vm2190_vm3 = vcmp.eq.s32.totalorder %v6822_v55, 0  ;;  %vm3878_vm4 = vcmp.eq.s32.totalorder %v6824_v62, 0 }
 0x241   : > { %v2320_v21 = vor.u32 %v2319_v37, %v2318_v50  ;;  %v2323_v38 = vor.u32 %v2322_v6, %v2321_v8  ;;  %v6853_v31 = vshll.u32 %v2309_v11, 8  ;;  %vm2189_vm5 = vcmp.lt.s32.totalorder %v6822_v55, 2 }
 0x242   : > { %v4962_v29 = vmin.u32 %v2264_v63, %v6829_v27  ;;  %vm3877_vm6 = vcmp.lt.s32.totalorder %v6824_v62, 2  ;;  %v2326_v15 = vor.u32 %v2325_v39, %v2324_v56  ;;  %v2329_v17 = vor.u32 %v2328_v49, %v2327_v14 }
 0x243   : > { %v2330_v4 = vshll.u32 %v7837_v45, %v2315_v9  ;;  %v2331_v32 = vshrl.u32 %v7821_v28, %v2316_v61  ;;  %vm2187_vm7 = vweird.f32 %v6417_v24  ;;  %v6862_v23 = vmul.f32 100.0, %v1271_v42 }
 0x244   : > { %v2266_v53 = vclz %v4962_v29  ;;  %v2407_v41 = vand.u32 2139095040, %v6841_v58  ;;  %v6867_v11 = vadd.f32 %v5601_v2, %v6346_v44  ;;  %v5261_v37 = vpop.eup %5260  ;;  %v2284_v6 = vsub.s32 4, %v6808_v52 }
 0x245   : > { %v2317_v39 = vshrl.u32 %v7828_v47, %v2316_v61  ;;  %v2332_v63 = vor.u32 %v2331_v32, %v2330_v4  ;;  %vm2333_vm8 = vcmp.lt.s32.totalorder %v6845_v7, 1  ;;  %vm2334_vm9 = vcmp.lt.s32.totalorder %v6845_v7, 2 }
 0x246   : > { %v4963_v9 = vadd.s32 4294967294, %v2266_v53  ;;  %vm2335_vm10 = vcmp.lt.s32.totalorder %v6845_v7, 3  ;;  %vm2336_vm11 = vcmp.lt.s32.totalorder %v6845_v7, 4  ;;  %v2341_v44 = vsel %vm2333_vm8, %v2320_v21, %v2323_v38 }
 0x247   : > { %v2337_v50 = vsel %vm2333_vm8, %v2317_v39, %v2320_v21  ;;  %v2338_v8 = vsel %vm2336_vm11, %v2326_v15, 2102212464  ;;  %v2342_v56 = vsel %vm2336_vm11, %v2329_v17, 920167782  ;;  %vm2200_vm12 = vcmp.lt.s32.totalorder %v6531_v20, 0 }
 0x248   : > { %v5263_v42 = vpop.eup %5262  ;;  %vm4964_vm13 = vcmp.lt.s32.totalorder %v4963_v9, 0  ;;  %v2345_v61 = vsel %vm2333_vm8, %v2323_v38, %v2326_v15  ;;  %v2346_v29 = vsel %vm2336_vm11, %v2332_v63, 1326507024  ;;  %v2339_v53 = vsel %vm2335_vm10, %v2323_v38, %v2338_v8 }
 0x249   : > { %v5265_v14 = vpop.eup %5264  ;;  %v2194_v49 = vxor.u32 2147483648, %v5263_v42  ;;  %v2269_v32 = vsel %vm4964_vm13, 0, %v4963_v9  ;;  %v2343_v19 = vsel %vm2335_vm10, %v2326_v15, %v2342_v56  ;;  %v7866_v38 = vand.u32 2147483647, %v6531_v20 }
 0x24a   : > { %v2191_v4 = vxor.u32 2147483648, %v5265_v14  ;;  %v2270_v34 = vsub.s32 32, %v2269_v32  ;;  %v2271_v57 = vshll.u32 %v6829_v27, %v2269_v32  ;;  %v2274_v15 = vsub.s32 4294967266, %v2269_v32 }
 0x24b   : > { %v2195_v39 = vsel %vm2193_vm0, %v2194_v49, %v5265_v14  ;;  %v3883_v21 = vsel %vm3881_vm2, %v2194_v49, %v5265_v14  ;;  %vm6891_vm14 = vcmp.le.f32.partialorder %v7866_v38, 0.7853982  ;;  %v2347_v56 = vsel %vm2335_vm10, %v2329_v17, %v2346_v29 }
 0x24c   : > { %v2192_v63 = vsel %vm2190_vm3, %v5263_v42, %v2191_v4  ;;  %v3880_v9 = vsel %vm3878_vm4, %v5263_v42, %v2191_v4  ;;  %v2272_v42 = vshrl.u32 %v6827_v25, %v2270_v34  ;;  %v2348_v49 = vsel %vm2334_vm9, %v2345_v61, %v2347_v56 }
 0x24d   : > { %v2196_v27 = vsel %vm2189_vm5, %v2192_v63, %v2195_v39  ;;  %v3884_v14 = vsel %vm3877_vm6, %v3880_v9, %v3883_v21  ;;  %v2275_v17 = vadd.s32 127, %v2274_v15  ;;  %v2344_v55 = vsel %vm2334_vm9, %v2341_v44, %v2343_v19 }
 0x24e   : > { %v2197_v4 = vsel %vm2187_vm7, nan, %v2196_v27  ;;  %v3885_v32 = vsel %vm2187_vm7, nan, %v3884_v14  ;;  %v2273_v62 = vor.u32 %v2272_v42, %v2271_v57  ;;  %v1319_v21 = vsub.f32 %v6835_v12, %v6862_v23 }
 0x24f   : > { %v3029_v29 = vmul.f32 %v5261_v37, %v2197_v4  ;;  %v4725_v39 = vmul.f32 %v5261_v37, %v3885_v32  ;;  %v2276_v34 = vshll.u32 %v2275_v17, 23  ;;  %v2408_v63 = vshrl.u32 %v2407_v41, 23  ;;  %v6950_v4 = vpop.f32.mrb[29].mxu0 }
 0x250   : > { %v6913_v25 = vmul.u32.u64.low %v6853_v31, %v2348_v49  ;;  %v6914_v61 = vmul.u32.u64.high %v6853_v31, %v2348_v49, %v6913_v25  ;;  %v6919_v24 = vmul.u32.u64.low %v6853_v31, %v2344_v55  ;;  %v6920_v9 = vmul.u32.u64.high %v6853_v31, %v2344_v55, %v6919_v24 }
 0x251   : > { %3045 = vst [vmem:[%s5950_s20 + $0x38] sm:$0xff] %v3029_v29  ;;  %4741 = vst [vmem:[%s5956_s24 + $0x38] sm:$0xff] %v4725_v39  ;;  %v1176_v19 = vmul.f32 %v6820_v26, %v6820_v26  ;;  %v1144_v57 = vadd.f32 %v5599_v1, %v6339_v35  ;;  %v2277_v37 = vor.u32 4788187, %v2276_v34  ;;  %v2285_v44 = vsel %vm2200_vm12, %v2284_v6, %v6808_v52 }
 0x252   : > { %v7817_v41 = vand.u32 2147483647, %v6841_v58  ;;  %v4969_v38 = vadd.s32 4294967169, %v2408_v63  ;;  %v7869_v15 = vsub.f32 %v6673_v51, %v6749_v54  ;;  %v2340_v27 = vsel %vm2334_vm9, %v2337_v50, %v2339_v53  ;;  %v6945_v50 = vpop.f32.mrb[28].mxu1 }
 0x253   : > { %v1192_v26 = vmul.f32 %v6867_v11, %v6867_v11  ;;  %v1145_v35 = vadd.f32 %v5603_v3, %v6348_v5  ;;  %v2278_v14 = vand.u32 2147483647, %v2277_v37  ;;  %v2280_v42 = vcvt.s32.f32 %v2273_v62  ;;  %v6952_v32 = vpop.f32.mrb[29].mxu1 }
 0x254   : > { %v1342_v56 = vmul.f32 1.442695, %v7869_v15  ;;  %vm2358_vm15 = vc.u32 %v6914_v61, %v6919_v24  ;;  %v2414_v52 = vadd.s32 1, %v4969_v38  ;;  %v2287_v6 = vsel %vm6891_vm14, 0, %v2285_v44 }
 0x255   : > { %v2359_v51 = vadd.s32 1, %v6920_v9  ;;  %v1224_v54 = vmul.f32 %v1144_v57, %v1144_v57  ;;  %v1208_v7 = vadd.f32 %v1192_v26, %v1176_v19  ;;  %v2281_v53 = vmul.f32 %v2280_v42, %v2278_v14 }
 0x256   : > { %v2356_v49 = vmul.u32 %v6853_v31, %v2340_v27  ;;  %v2411_v5 = vand.u32 8388607, %v7817_v41  ;;  %vm2415_vm1 = vcmp.gt.s32.totalorder %v2414_v52, 0  ;;  %v1256_v39 = vmul.f32 %v1145_v35, %v1145_v35 }
 0x257   : > { %v2360_v17 = vsel %vm2358_vm15, %v2359_v51, %v6920_v9  ;;  %v2416_v55 = vsel %vm2415_vm1, %v2414_v52, 0  ;;  %v1240_v29 = vadd.f32 %v1224_v54, %v1208_v7  ;;  %v2282_v62 = vxor.u32 2147483648, %v2281_v53 }
 0x258   : > { %v3979_v34 = vadd.s32 3, %v2287_v6  ;;  %v2361_v25 = vadd.s32 %v2360_v17, %v2356_v49  ;;  %v2418_v63 = vand.u32 31, %v2416_v55  ;;  %v6962_v38 = vand.u32 3, %v2287_v6 }
 0x259   : > { %v6955_v19 = vadd.f32 %v1256_v39, %v1240_v29  ;;  %v2283_v31 = vsel %vm2200_vm12, %v2282_v62, %v2281_v53  ;;  %5266 = vpow2.f32 %v1342_v56  ;;  %v2412_v27 = vor.u32 8388608, %v2411_v5  ;;  %v7870_v56 = vld [vmem:[#allocation6_spill] sm:$0xff] }
 0x25a   : > { %v2362_v57 = vadd.s32 536870912, %v2361_v25  ;;  %v2419_v37 = vsub.s32 32, %v2418_v63  ;;  %v2286_v44 = vsel %vm6891_vm14, %v6531_v20, %v2283_v31  ;;  %v6964_v9 = vand.u32 3, %v3979_v34  ;;  %v6990_v31 = vpop.f32.mrb[30].mxu0 }
 0x25b   : > { %5268 = vcosq.f32 %v2286_v44  ;;  %v2424_v8 = vshll.u32 %v7825_v46, %v2418_v63  ;;  %v2427_v52 = vshll.u32 %v7826_v48, %v2418_v63  ;;  %v6976_v6 = vadd.f32 %v5597_v0, %v7870_v56 }
 0x25c   : > { %v6966_v15 = vshrl.u32 %v2362_v57, 30  ;;  %5270 = vsinq.f32 %v2286_v44  ;;  %v2425_v26 = vshrl.u32 %v7826_v48, %v2419_v37  ;;  %v2428_v35 = vshrl.u32 %v7827_v10, %v2419_v37 }
 0x25d   : > { %v2431_v14 = vshrl.u32 %v7837_v45, %v2419_v37  ;;  %v2422_v51 = vshrl.u32 %v7825_v46, %v2419_v37  ;;  %v2430_v54 = vshll.u32 %v7827_v10, %v2418_v63  ;;  %v2433_v7 = vshll.u32 %v7837_v45, %v2418_v63 }
 0x25e   : > { %v2364_v42 = vshll.u32 %v6966_v15, 30  ;;  %v2434_v53 = vshrl.u32 %v7821_v28, %v2419_v37  ;;  %vm2296_vm0 = vcmp.eq.s32.totalorder %v6962_v38, 2  ;;  %v6985_v5 = vshrl.u32 %v2416_v55, 5 }
 0x25f   : > { %v2421_v17 = vshll.u32 %v7828_v47, %v2418_v63  ;;  %vm2293_vm2 = vcmp.eq.s32.totalorder %v6962_v38, 0  ;;  %vm3982_vm3 = vcmp.eq.s32.totalorder %v6964_v9, 0  ;;  %v2426_v29 = vor.u32 %v2425_v26, %v2424_v8 }
 0x260   : > { %v6983_v49 = vsub.s32 %v2361_v25, %v2364_v42  ;;  %v2429_v39 = vor.u32 %v2428_v35, %v2427_v52  ;;  %v2432_v62 = vor.u32 %v2431_v14, %v2430_v54  ;;  %v2435_v34 = vor.u32 %v2434_v53, %v2433_v7 }
 0x261   : > { %vm2292_vm4 = vcmp.lt.s32.totalorder %v6962_v38, 2  ;;  %vm3981_vm5 = vcmp.lt.s32.totalorder %v6964_v9, 2  ;;  %vm3985_vm6 = vcmp.eq.s32.totalorder %v6964_v9, 2  ;;  %v2357_v55 = vadd.s32 %v6919_v24, %v6914_v61 }
 0x262   : > { %v2367_v25 = vsub.s32 0, %v6983_v49  ;;  %v6999_v63 = vmul.f32 -10.0, %v6867_v11  ;;  %vm2290_vm7 = vweird.f32 %v6531_v20  ;;  %v2423_v57 = vor.u32 %v2422_v51, %v2421_v17 }
 0x263   : > { %v7002_v44 = vshll.u32 %v2412_v27, 8  ;;  %v7005_v26 = vmul.f32 10.0, %v6976_v6  ;;  %v7009_v35 = vadd.f32 %v5599_v1, %v6508_v16  ;;  %v2420_v61 = vshrl.u32 %v7828_v47, %v2419_v37  ;;  %v5267_v11 = vpop.eup %5266 }
 0x264   : > { %v4966_v14 = vmin.u32 %v2367_v25, %v6983_v49  ;;  %vm2436_vm8 = vcmp.lt.s32.totalorder %v6985_v5, 1  ;;  %vm2439_vm9 = vcmp.lt.s32.totalorder %v6985_v5, 4  ;;  %vm2438_vm10 = vcmp.lt.s32.totalorder %v6985_v5, 3 }
 0x265   : > { %v2445_v24 = vsel %vm2439_vm9, %v2432_v62, 920167782  ;;  %v2448_v27 = vsel %vm2436_vm8, %v2426_v29, %v2429_v39  ;;  %v2449_v42 = vsel %vm2439_vm9, %v2435_v34, 1326507024  ;;  %v5269_v8 = vpop.eup %5268  ;;  %v2387_v16 = vsub.s32 4, %v6966_v15 }
 0x266   : > { %v2369_v52 = vclz %v4966_v14  ;;  %vm2437_vm11 = vcmp.lt.s32.totalorder %v6985_v5, 2  ;;  %v2450_v37 = vsel %vm2438_vm10, %v2432_v62, %v2449_v42  ;;  %v5271_v56 = vpop.eup %5270  ;;  %v2297_v51 = vxor.u32 2147483648, %v5269_v8 }
 0x267   : > { %v2440_v54 = vsel %vm2436_vm8, %v2420_v61, %v2423_v57  ;;  %v2441_v7 = vsel %vm2439_vm9, %v2429_v39, 2102212464  ;;  %v2444_v53 = vsel %vm2436_vm8, %v2423_v57, %v2426_v29  ;;  %v2294_v17 = vxor.u32 2147483648, %v5271_v56 }
 0x268   : > { %v4967_v34 = vadd.s32 4294967294, %v2369_v52  ;;  %v2446_v25 = vsel %vm2438_vm10, %v2429_v39, %v2445_v24  ;;  %v2451_v14 = vsel %vm2437_vm11, %v2448_v27, %v2450_v37  ;;  %v2298_v62 = vsel %vm2296_vm0, %v2297_v51, %v5271_v56 }
 0x269   : > { %v3987_v42 = vsel %vm3985_vm6, %v2297_v51, %v5271_v56  ;;  %v7035_v61 = vmul.u32.u64.low %v7002_v44, %v2451_v14  ;;  %v7036_v41 = vmul.u32.u64.high %v7002_v44, %v2451_v14, %v7035_v61  ;;  %v2295_v57 = vsel %vm2293_vm2, %v5269_v8, %v2294_v17 }
 0x26a   : > { %v3984_v52 = vsel %vm3982_vm3, %v5269_v8, %v2294_v17  ;;  %vm4968_vm12 = vcmp.lt.s32.totalorder %v4967_v34, 0  ;;  %v7043_v39 = vmul.f32 100.0, %v6955_v19  ;;  %v2299_v24 = vsel %vm2292_vm4, %v2295_v57, %v2298_v62 }
 0x26b   : > { %v3988_v27 = vsel %vm3981_vm5, %v3984_v52, %v3987_v42  ;;  %v2372_v37 = vsel %vm4968_vm12, 0, %v4967_v34  ;;  %v2447_v56 = vsel %vm2437_vm11, %v2444_v53, %v2446_v25  ;;  %v2300_v51 = vsel %vm2290_vm7, nan, %v2299_v24 }
 0x26c   : > { %v3989_v8 = vsel %vm2290_vm7, nan, %v3988_v27  ;;  %v2373_v19 = vsub.s32 32, %v2372_v37  ;;  %v2442_v38 = vsel %vm2438_vm10, %v2426_v29, %v2441_v7  ;;  %v3030_v17 = vmul.f32 %v5267_v11, %v2300_v51  ;;  %v7091_v51 = vpop.f32.mrb[30].mxu1 }
 0x26d   : > { %v4726_v14 = vmul.f32 %v5267_v11, %v3989_v8  ;;  %v2377_v62 = vsub.s32 4294967266, %v2372_v37  ;;  %v7060_v42 = vmul.u32.u64.low %v7002_v44, %v2447_v56  ;;  %v7061_v53 = vmul.u32.u64.high %v7002_v44, %v2447_v56, %v7060_v42 }
 0x26e   : > { %v2375_v34 = vshrl.u32 %v2357_v55, %v2373_v19  ;;  %v1147_v25 = vadd.f32 %v5601_v2, %v6511_v30  ;;  %3046 = vst [vmem:[%s5950_s20 + $0x40] sm:$0xff] %v3030_v17  ;;  %vm2303_vm13 = vcmp.lt.s32.totalorder %v6712_v59, 0  ;;  %v2374_v20 = vshll.u32 %v6983_v49, %v2372_v37 }
 0x26f   : > { %4742 = vst [vmem:[%s5956_s24 + $0x40] sm:$0xff] %v4726_v14  ;;  %v2378_v29 = vadd.s32 127, %v2377_v62  ;;  %v2510_v11 = vand.u32 2139095040, %v7005_v26  ;;  %v2388_v55 = vsel %vm2303_vm13, %v2387_v16, %v6966_v15  ;;  %v2443_v7 = vsel %vm2437_vm11, %v2440_v54, %v2442_v38  ;;  %v7100_v14 = vpop.f32.mrb[31].mxu1 }
 0x270   : > { %v1177_v61 = vmul.f32 %v6976_v6, %v6976_v6  ;;  %v7818_v30 = vand.u32 2147483647, %v7005_v26  ;;  %v2376_v57 = vor.u32 %v2375_v34, %v2374_v20  ;;  %vm2461_vm14 = vc.u32 %v7036_v41, %v7060_v42  ;;  %7875 = vst [vmem:[#allocation4_spill] sm:$0xff] %v7100_v14 }
 0x271   : > { %v2379_v52 = vshll.u32 %v2378_v29, 23  ;;  %v2511_v49 = vshrl.u32 %v2510_v11, 23  ;;  %v7871_v24 = vand.u32 2147483647, %v6712_v59  ;;  %v2462_v15 = vadd.s32 1, %v7061_v53 }
 0x272   : > { %v1225_v5 = vmul.f32 %v7009_v35, %v7009_v35  ;;  %v1193_v16 = vmul.f32 %v1147_v25, %v1147_v25  ;;  %v2459_v54 = vmul.u32 %v7002_v44, %v2443_v7  ;;  %v1149_v56 = vadd.f32 %v5603_v3, %v6513_v33  ;;  %v7098_v35 = vpop.f32.mrb[31].mxu0 }
 0x273   : > { %vm7081_vm15 = vcmp.le.f32.partialorder %v7871_v24, 0.7853982  ;;  %v2380_v6 = vor.u32 4788187, %v2379_v52  ;;  %v4973_v37 = vadd.s32 4294967169, %v2511_v49  ;;  %v2463_v19 = vsel %vm2461_vm14, %v2462_v15, %v7061_v53  ;;  %7874 = vst [vmem:[#allocation3_spill] sm:$0xff] %v7098_v35 }
 0x274   : > { %v2390_v8 = vsel %vm7081_vm15, 0, %v2388_v55  ;;  %v2514_v38 = vand.u32 8388607, %v7818_v30  ;;  %v1209_v17 = vadd.f32 %v1193_v16, %v1177_v61  ;;  %v2383_v62 = vcvt.s32.f32 %v2376_v57  ;;  %v7876_v57 = vld [vmem:[#allocation7_spill] sm:$0xff] }
 0x275   : > { %v2381_v44 = vand.u32 2147483647, %v2380_v6  ;;  %v2464_v34 = vadd.s32 %v2463_v19, %v2459_v54  ;;  %v2517_v20 = vadd.s32 1, %v4973_v37  ;;  %v1257_v29 = vmul.f32 %v1149_v56, %v1149_v56 }
 0x276   : > { %v1241_v33 = vadd.f32 %v1225_v5, %v1209_v17  ;;  %v1344_v55 = vmul.f32 1.442695, %v1319_v21  ;;  %v4083_v7 = vadd.s32 3, %v2390_v8  ;;  %v2515_v15 = vor.u32 8388608, %v2514_v38 }
 0x277   : > { %v2384_v11 = vmul.f32 %v2383_v62, %v2381_v44  ;;  %v2465_v53 = vadd.s32 536870912, %v2464_v34  ;;  %vm2518_vm1 = vcmp.gt.s32.totalorder %v2517_v20, 0  ;;  %v1150_v6 = vadd.f32 %v5597_v0, %v7876_v57 }
 0x278   : > { %v2519_v52 = vsel %vm2518_vm1, %v2517_v20, 0  ;;  %v1273_v61 = vadd.f32 %v1257_v29, %v1241_v33  ;;  %5272 = vpow2.f32 %v1344_v55  ;;  %v7115_v54 = vand.u32 3, %v2390_v8 }
 0x279   : > { %v2385_v49 = vxor.u32 2147483648, %v2384_v11  ;;  %v7105_v24 = vshrl.u32 %v2465_v53, 30  ;;  %v2521_v16 = vand.u32 31, %v2519_v52  ;;  %v7117_v37 = vand.u32 3, %v4083_v7 }
 0x27a   : > { %v7120_v56 = vadd.s32 %v7060_v42, %v7036_v41  ;;  %v7124_v38 = vshll.u32 %v2515_v15, 8  ;;  %v7126_v17 = vmul.f32 -10.0, %v1147_v25  ;;  %v7130_v62 = vmul.f32 10.0, %v1150_v6 }
 0x27b   : > { %v2386_v5 = vsel %vm2303_vm13, %v2385_v49, %v2384_v11  ;;  %v2467_v12 = vshll.u32 %v7105_v24, 30  ;;  %v2522_v23 = vsub.s32 32, %v2521_v16  ;;  %v7133_v20 = vshrl.u32 %v2519_v52, 5 }
 0x27c   : > { %v2389_v21 = vsel %vm7081_vm15, %v6712_v59, %v2386_v5  ;;  %v2524_v41 = vshll.u32 %v7828_v47, %v2521_v16  ;;  %v2530_v25 = vshll.u32 %v7826_v48, %v2521_v16  ;;  %v2533_v33 = vshll.u32 %v7827_v10, %v2521_v16 }
 0x27d   : > { %5274 = vcosq.f32 %v2389_v21  ;;  %v7122_v19 = vsub.s32 %v2464_v34, %v2467_v12  ;;  %v2525_v44 = vshrl.u32 %v7825_v46, %v2522_v23  ;;  %v2528_v27 = vshrl.u32 %v7826_v48, %v2522_v23 }
 0x27e   : > { %5276 = vsinq.f32 %v2389_v21  ;;  %v2531_v42 = vshrl.u32 %v7827_v10, %v2522_v23  ;;  %v2527_v34 = vshll.u32 %v7825_v46, %v2521_v16  ;;  %v2534_v29 = vshrl.u32 %v7837_v45, %v2522_v23 }
 0x27f   : > { %v2470_v8 = vsub.s32 0, %v7122_v19  ;;  %vm2399_vm0 = vcmp.eq.s32.totalorder %v7115_v54, 2  ;;  %vm4089_vm2 = vcmp.eq.s32.totalorder %v7117_v37, 2  ;;  %v7144_v55 = vmul.f32 %v1150_v6, %v1150_v6 }
 0x280   : > { %v7148_v53 = vadd.f32 %v5599_v1, %v6619_v60  ;;  %v7152_v7 = vadd.f32 %v5601_v2, %v6634_v18  ;;  %vm2396_vm3 = vcmp.eq.s32.totalorder %v7115_v54, 0  ;;  %vm4086_vm4 = vcmp.eq.s32.totalorder %v7117_v37, 0 }
 0x281   : > { %v4970_v11 = vmin.u32 %v2470_v8, %v7122_v19  ;;  %v2526_v52 = vor.u32 %v2525_v44, %v2524_v41  ;;  %v2529_v49 = vor.u32 %v2528_v27, %v2527_v34  ;;  %v2532_v15 = vor.u32 %v2531_v42, %v2530_v25 }
 0x282   : > { %v2535_v57 = vor.u32 %v2534_v29, %v2533_v33  ;;  %vm2395_vm5 = vcmp.lt.s32.totalorder %v7115_v54, 2  ;;  %vm4085_vm6 = vcmp.lt.s32.totalorder %v7117_v37, 2  ;;  %v2536_v60 = vshll.u32 %v7837_v45, %v2521_v16  ;;  %v5273_v27 = vpop.eup %5272 }
 0x283   : > { %v2472_v6 = vclz %v4970_v11  ;;  %v2537_v5 = vshrl.u32 %v7821_v28, %v2522_v23  ;;  %v7160_v12 = vmul.f32 100.0, %v1273_v61  ;;  %vm2393_vm7 = vweird.f32 %v6712_v59 }
 0x284   : > { %v2490_v18 = vsub.s32 4, %v7105_v24  ;;  %v2523_v21 = vshrl.u32 %v7828_v47, %v2522_v23  ;;  %vm2539_vm8 = vcmp.lt.s32.totalorder %v7133_v20, 1  ;;  %v2613_v44 = vand.u32 2139095040, %v7130_v62 }
 0x285   : > { %v4971_v8 = vadd.s32 4294967294, %v2472_v6  ;;  %v2538_v41 = vor.u32 %v2537_v5, %v2536_v60  ;;  %vm2540_vm9 = vcmp.lt.s32.totalorder %v7133_v20, 2  ;;  %vm2542_vm10 = vcmp.lt.s32.totalorder %v7133_v20, 4 }
 0x286   : > { %vm2406_vm11 = vcmp.lt.s32.totalorder %v6841_v58, 0  ;;  %vm2541_vm12 = vcmp.lt.s32.totalorder %v7133_v20, 3  ;;  %v2544_v61 = vsel %vm2542_vm10, %v2532_v15, 2102212464  ;;  %v2547_v16 = vsel %vm2539_vm8, %v2526_v52, %v2529_v49 }
 0x287   : > { %v2548_v23 = vsel %vm2542_vm10, %v2535_v57, 920167782  ;;  %v5275_v42 = vpop.eup %5274  ;;  %vm4972_vm13 = vcmp.lt.s32.totalorder %v4971_v8, 0  ;;  %v2543_v34 = vsel %vm2539_vm8, %v2523_v21, %v2526_v52  ;;  %v2552_v33 = vsel %vm2542_vm10, %v2538_v41, 1326507024 }
 0x288   : > { %v2549_v25 = vsel %vm2541_vm12, %v2532_v15, %v2548_v23  ;;  %v5277_v29 = vpop.eup %5276  ;;  %v2400_v11 = vxor.u32 2147483648, %v5275_v42  ;;  %v2475_v6 = vsel %vm4972_vm13, 0, %v4971_v8  ;;  %v2545_v60 = vsel %vm2541_vm12, %v2529_v49, %v2544_v61 }
 0x289   : > { %v2551_v5 = vsel %vm2539_vm8, %v2529_v49, %v2532_v15  ;;  %v2397_v30 = vxor.u32 2147483648, %v5277_v29  ;;  %v2476_v9 = vsub.s32 32, %v2475_v6  ;;  %v2480_v14 = vsub.s32 4294967266, %v2475_v6 }
 0x28a   : > { %v2550_v35 = vsel %vm2540_vm9, %v2547_v16, %v2549_v25  ;;  %v2401_v52 = vsel %vm2399_vm0, %v2400_v11, %v5277_v29  ;;  %v4091_v21 = vsel %vm4089_vm2, %v2400_v11, %v5277_v29  ;;  %v2477_v8 = vshll.u32 %v7122_v19, %v2475_v6 }
 0x28b   : > { %v2553_v41 = vsel %vm2541_vm12, %v2535_v57, %v2552_v33  ;;  %v2398_v49 = vsel %vm2396_vm3, %v5275_v42, %v2397_v30  ;;  %v4088_v15 = vsel %vm4086_vm4, %v5275_v42, %v2397_v30  ;;  %v2478_v61 = vshrl.u32 %v7120_v56, %v2476_v9 }
 0x28c   : > { %v2481_v16 = vadd.s32 127, %v2480_v14  ;;  %v2402_v23 = vsel %vm2395_vm5, %v2398_v49, %v2401_v52  ;;  %v4092_v19 = vsel %vm4085_vm6, %v4088_v15, %v4091_v21  ;;  %v2554_v57 = vsel %vm2540_vm9, %v2551_v5, %v2553_v41 }
 0x28d   : > { %v1321_v25 = vsub.f32 %v7126_v17, %v7160_v12  ;;  %v2403_v30 = vsel %vm2393_vm7, nan, %v2402_v23  ;;  %v4093_v9 = vsel %vm2393_vm7, nan, %v4092_v19  ;;  %v2479_v14 = vor.u32 %v2478_v61, %v2477_v8 }
 0x28e   : > { %v2482_v56 = vshll.u32 %v2481_v16, 23  ;;  %v3031_v54 = vmul.f32 %v5273_v27, %v2403_v30  ;;  %v4727_v42 = vmul.f32 %v5273_v27, %v4093_v9  ;;  %v2491_v11 = vsel %vm2406_vm11, %v2490_v18, %v7105_v24 }
 0x28f   : > { %v7208_v33 = vmul.u32.u64.low %v7124_v38, %v2554_v57  ;;  %v7209_v37 = vmul.u32.u64.high %v7124_v38, %v2554_v57, %v7208_v33  ;;  %v7215_v6 = vmul.u32.u64.low %v7124_v38, %v2550_v35  ;;  %v7216_v5 = vmul.u32.u64.high %v7124_v38, %v2550_v35, %v7215_v6 }
 0x290   : > { %v2483_v29 = vor.u32 4788187, %v2482_v56  ;;  %3047 = vst [vmem:[%s5950_s20 + $0x48] sm:$0xff] %v3031_v54  ;;  %4743 = vst [vmem:[%s5956_s24 + $0x48] sm:$0xff] %v4727_v42  ;;  %v7877_v59 = vand.u32 2147483647, %v6841_v58  ;;  %v2486_v8 = vcvt.s32.f32 %v2479_v14  ;;  %v2546_v41 = vsel %vm2540_vm9, %v2543_v34, %v2545_v60 }
 0x291   : > { %v2614_v52 = vshrl.u32 %v2613_v44, 23  ;;  %v1194_v24 = vmul.f32 %v7152_v7, %v7152_v7  ;;  %vm2564_vm15 = vc.u32 %v7209_v37, %v7215_v6  ;;  %v2610_v18 = vand.u32 2147483647, %v7130_v62 }
 0x292   : > { %vm7223_vm14 = vcmp.le.f32.partialorder %v7877_v59, 0.7853982  ;;  %v2484_v21 = vand.u32 2147483647, %v2483_v29  ;;  %v2565_v44 = vadd.s32 1, %v7216_v5  ;;  %v1226_v61 = vmul.f32 %v7148_v53, %v7148_v53 }
 0x293   : > { %v2493_v35 = vsel %vm7223_vm14, 0, %v2491_v11  ;;  %v4977_v49 = vadd.s32 4294967169, %v2614_v52  ;;  %v1210_v20 = vadd.f32 %v1194_v24, %v7144_v55  ;;  %v2562_v34 = vmul.u32 %v7124_v38, %v2546_v41 }
 0x294   : > { %v2487_v15 = vmul.f32 %v2486_v8, %v2484_v21  ;;  %v1153_v16 = vadd.f32 %v5603_v3, %v6636_v40  ;;  %v4187_v19 = vadd.s32 3, %v2493_v35  ;;  %v2566_v57 = vsel %vm2564_vm15, %v2565_v44, %v7216_v5 }
 0x295   : > { %v2620_v60 = vadd.s32 1, %v4977_v49  ;;  %v1242_v30 = vadd.f32 %v1226_v61, %v1210_v20  ;;  %v7880_v9 = vsub.f32 %v6999_v63, %v7043_v39  ;;  %v2567_v56 = vadd.s32 %v2566_v57, %v2562_v34 }
 0x296   : > { %v2488_v23 = vxor.u32 2147483648, %v2487_v15  ;;  %v2617_v38 = vand.u32 8388607, %v2610_v18  ;;  %v1258_v54 = vmul.f32 %v1153_v16, %v1153_v16  ;;  %v7254_v29 = vand.u32 3, %v2493_v35 }
 0x297   : > { %v1346_v14 = vmul.f32 1.442695, %v7880_v9  ;;  %vm2621_vm1 = vcmp.gt.s32.totalorder %v2620_v60, 0  ;;  %v2568_v42 = vadd.s32 536870912, %v2567_v56  ;;  %v7256_v63 = vand.u32 3, %v4187_v19 }
 0x298   : > { %v2489_v55 = vsel %vm2406_vm11, %v2488_v23, %v2487_v15  ;;  %v2622_v53 = vsel %vm2621_vm1, %v2620_v60, 0  ;;  %v7258_v39 = vadd.f32 %v1258_v54, %v1242_v30  ;;  %v2618_v59 = vor.u32 8388608, %v2617_v38 }
 0x299   : > { %v2492_v40 = vsel %vm7223_vm14, %v6841_v58, %v2489_v55  ;;  %v2624_v33 = vand.u32 31, %v2622_v53  ;;  %v7260_v11 = vshrl.u32 %v2568_v42, 30  ;;  %v7263_v52 = vmul.f32 -10.0, %v7152_v7 }
 0x29a   : > { %5278 = vcosq.f32 %v2492_v40  ;;  %v7266_v21 = vshrl.u32 %v2622_v53, 5  ;;  %v1154_v41 = vadd.f32 %v5597_v0, %v6718_v22  ;;  %vm2502_vm0 = vcmp.eq.s32.totalorder %v7254_v29, 2 }
 0x29b   : > { %5280 = vsinq.f32 %v2492_v40  ;;  %v2625_v5 = vsub.s32 32, %v2624_v33  ;;  %v2570_v27 = vshll.u32 %v7260_v11, 30  ;;  %vm4193_vm2 = vcmp.eq.s32.totalorder %v7256_v63, 2 }
 0x29c   : > { %5282 = vpow2.f32 %v1346_v14  ;;  %v2636_v7 = vshll.u32 %v7827_v10, %v2624_v33  ;;  %vm2499_vm3 = vcmp.eq.s32.totalorder %v7254_v29, 0  ;;  %vm4190_vm4 = vcmp.eq.s32.totalorder %v7256_v63, 0 }
 0x29d   : > { %v2628_v8 = vshrl.u32 %v7825_v46, %v2625_v5  ;;  %v2631_v24 = vshrl.u32 %v7826_v48, %v2625_v5  ;;  %v2634_v35 = vshrl.u32 %v7827_v10, %v2625_v5  ;;  %v2637_v49 = vshrl.u32 %v7837_v45, %v2625_v5 }
 0x29e   : > { %v7279_v15 = vsub.s32 %v2567_v56, %v2570_v27  ;;  %v2627_v22 = vshll.u32 %v7828_v47, %v2624_v33  ;;  %v2630_v44 = vshll.u32 %v7825_v46, %v2624_v33  ;;  %v2633_v61 = vshll.u32 %v7826_v48, %v2624_v33 }
 0x29f   : > { %vm2498_vm5 = vcmp.lt.s32.totalorder %v7254_v29, 2  ;;  %vm4189_vm6 = vcmp.lt.s32.totalorder %v7256_v63, 2  ;;  %v2563_v20 = vadd.s32 %v7215_v6, %v7209_v37  ;;  %v2638_v34 = vor.u32 %v2637_v49, %v2636_v7 }
 0x2a0   : > { %v2640_v60 = vshrl.u32 %v7821_v28, %v2625_v5  ;;  %v7289_v16 = vshll.u32 %v2618_v59, 8  ;;  %vm2496_vm7 = vweird.f32 %v6841_v58  ;;  %v2573_v23 = vsub.s32 0, %v7279_v15 }
 0x2a1   : > { %v2629_v19 = vor.u32 %v2628_v8, %v2627_v22  ;;  %v2632_v57 = vor.u32 %v2631_v24, %v2630_v44  ;;  %v2635_v30 = vor.u32 %v2634_v35, %v2633_v61  ;;  %v2639_v9 = vshll.u32 %v7837_v45, %v2624_v33 }
 0x2a2   : > { %v7294_v14 = vmul.f32 %v1154_v41, %v1154_v41  ;;  %v7298_v56 = vadd.f32 %v5599_v1, %v6797_v13  ;;  %v7302_v37 = vadd.f32 %v5601_v2, %v6800_v36  ;;  %v4974_v6 = vmin.u32 %v2573_v23, %v7279_v15 }
 0x2a3   : > { %v2626_v55 = vshrl.u32 %v7828_v47, %v2625_v5  ;;  %vm2645_vm8 = vcmp.lt.s32.totalorder %v7266_v21, 4  ;;  %v7307_v38 = vmul.f32 10.0, %v1154_v41  ;;  %v2641_v54 = vor.u32 %v2640_v60, %v2639_v9 }
 0x2a4   : > { %v5279_v53 = vpop.eup %5278  ;;  %vm2642_vm9 = vcmp.lt.s32.totalorder %v7266_v21, 1  ;;  %vm2644_vm10 = vcmp.lt.s32.totalorder %v7266_v21, 3  ;;  %v2651_v13 = vsel %vm2645_vm8, %v2638_v34, 920167782  ;;  %v2575_v42 = vclz %v4974_v6 }
 0x2a5   : > { %v5281_v40 = vpop.eup %5280  ;;  %v2503_v36 = vxor.u32 2147483648, %v5279_v53  ;;  %v2650_v33 = vsel %vm2642_vm9, %v2629_v19, %v2632_v57  ;;  %v2652_v5 = vsel %vm2644_vm10, %v2635_v30, %v2651_v13  ;;  %vm2509_vm11 = vcmp.lt.s32.totalorder %v7005_v26, 0 }
 0x2a6   : > { %v5283_v59 = vpop.eup %5282  ;;  %v2500_v27 = vxor.u32 2147483648, %v5281_v40  ;;  %v2593_v8 = vsub.s32 4, %v7260_v11  ;;  %vm2643_vm12 = vcmp.lt.s32.totalorder %v7266_v21, 2  ;;  %v2646_v41 = vsel %vm2642_vm9, %v2626_v55, %v2629_v19 }
 0x2a7   : > { %v2504_v24 = vsel %vm2502_vm0, %v2503_v36, %v5281_v40  ;;  %v4195_v35 = vsel %vm4193_vm2, %v2503_v36, %v5281_v40  ;;  %v4975_v7 = vadd.s32 4294967294, %v2575_v42  ;;  %v2647_v49 = vsel %vm2645_vm8, %v2635_v30, 2102212464 }
 0x2a8   : > { %v2501_v22 = vsel %vm2499_vm3, %v5279_v53, %v2500_v27  ;;  %v4192_v44 = vsel %vm4190_vm4, %v5279_v53, %v2500_v27  ;;  %v2653_v61 = vsel %vm2643_vm12, %v2650_v33, %v2652_v5  ;;  %v2654_v60 = vsel %vm2642_vm9, %v2632_v57, %v2635_v30 }
 0x2a9   : > { %v2505_v23 = vsel %vm2498_vm5, %v2501_v22, %v2504_v24  ;;  %v4196_v19 = vsel %vm4189_vm6, %v4192_v44, %v4195_v35  ;;  %vm4976_vm13 = vcmp.lt.s32.totalorder %v4975_v7, 0  ;;  %v2655_v9 = vsel %vm2645_vm8, %v2641_v54, 1326507024 }
 0x2aa   : > { %v2506_v6 = vsel %vm2496_vm7, nan, %v2505_v23  ;;  %v4197_v55 = vsel %vm2496_vm7, nan, %v4196_v19  ;;  %v2578_v53 = vsel %vm4976_vm13, 0, %v4975_v7  ;;  %v2656_v29 = vsel %vm2644_vm10, %v2638_v34, %v2655_v9 }
 0x2ab   : > { %v3032_v30 = vmul.f32 %v5283_v59, %v2506_v6  ;;  %v4728_v13 = vmul.f32 %v5283_v59, %v4197_v55  ;;  %v2579_v40 = vsub.s32 32, %v2578_v53  ;;  %v2648_v63 = vsel %vm2644_vm10, %v2632_v57, %v2647_v49 }
 0x2ac   : > { %v2583_v36 = vsub.s32 4294967266, %v2578_v53  ;;  %v2657_v54 = vsel %vm2643_vm12, %v2654_v60, %v2656_v29  ;;  %v7353_v42 = vmul.u32.u64.low %v7289_v16, %v2653_v61  ;;  %v7354_v33 = vmul.u32.u64.high %v7289_v16, %v2653_v61, %v7353_v42  ;;  %v7884_v61 = vld [vmem:[#allocation2_spill] sm:$0xff] }
 0x2ad   : > { %3048 = vst [vmem:[%s5950_s20 + $0x50] sm:$0xff] %v3032_v30  ;;  %4744 = vst [vmem:[%s5956_s24 + $0x50] sm:$0xff] %v4728_v13  ;;  %v2580_v58 = vshll.u32 %v7279_v15, %v2578_v53  ;;  %v2581_v5 = vshrl.u32 %v2563_v20, %v2579_v40  ;;  %v7360_v34 = vmul.u32.u64.low %v7289_v16, %v2657_v54  ;;  %v7361_v59 = vmul.u32.u64.high %v7289_v16, %v2657_v54, %v7360_v34 }
 0x2ae   : > { %v2584_v27 = vadd.s32 127, %v2583_v36  ;;  %v2649_v57 = vsel %vm2643_vm12, %v2646_v41, %v2648_v63  ;;  %v7366_v24 = vmul.f32 100.0, %v7258_v39  ;;  %v2716_v35 = vand.u32 2139095040, %v7307_v38 }
 0x2af   : > { %v2582_v7 = vor.u32 %v2581_v5, %v2580_v58  ;;  %v2594_v49 = vsel %vm2509_vm11, %v2593_v8, %v7260_v11  ;;  %v2713_v15 = vand.u32 2147483647, %v7307_v38  ;;  %v1195_v20 = vmul.f32 %v7302_v37, %v7302_v37 }
 0x2b0   : > { %v2585_v22 = vshll.u32 %v2584_v27, 23  ;;  %v2668_v44 = vadd.s32 1, %v7354_v33  ;;  %v1322_v21 = vsub.f32 %v7263_v52, %v7366_v24  ;;  %v2717_v39 = vshrl.u32 %v2716_v35, 23 }
 0x2b1   : > { %v7881_v41 = vand.u32 2147483647, %v7005_v26  ;;  %v2665_v11 = vmul.u32 %v7289_v16, %v2649_v57  ;;  %vm2667_vm15 = vc.u32 %v7361_v59, %v7353_v42  ;;  %v1227_v19 = vmul.f32 %v7298_v56, %v7298_v56 }
 0x2b2   : > { %v2586_v8 = vor.u32 4788187, %v2585_v22  ;;  %v2669_v60 = vsel %vm2667_vm15, %v2668_v44, %v7354_v33  ;;  %v4981_v23 = vadd.s32 4294967169, %v2717_v39  ;;  %v2720_v55 = vand.u32 8388607, %v2713_v15 }
 0x2b3   : > { %vm7380_vm14 = vcmp.le.f32.partialorder %v7881_v41, 0.7853982  ;;  %v2670_v6 = vadd.s32 %v2669_v60, %v2665_v11  ;;  %v1211_v53 = vadd.f32 %v1195_v20, %v7294_v14  ;;  %v2589_v16 = vcvt.s32.f32 %v2582_v7 }
 0x2b4   : > { %v2596_v9 = vsel %vm7380_vm14, 0, %v2594_v49  ;;  %v2587_v29 = vand.u32 2147483647, %v2586_v8  ;;  %v2723_v30 = vadd.s32 1, %v4981_v23  ;;  %v1157_v13 = vadd.f32 %v5603_v3, %v6802_v43 }
 0x2b5   : > { %v2671_v40 = vadd.s32 536870912, %v2670_v6  ;;  %v1243_v63 = vadd.f32 %v1227_v19, %v1211_v53  ;;  %v1348_v56 = vmul.f32 1.442695, %v1321_v25  ;;  %v4291_v33 = vadd.s32 3, %v2596_v9 }
 0x2b6   : > { %v2590_v36 = vmul.f32 %v2589_v16, %v2587_v29  ;;  %vm2724_vm1 = vcmp.gt.s32.totalorder %v2723_v30, 0  ;;  %v1259_v54 = vmul.f32 %v1157_v13, %v1157_v13  ;;  %v2721_v34 = vor.u32 8388608, %v2720_v55 }
 0x2b7   : > { %v7399_v58 = vshrl.u32 %v2671_v40, 30  ;;  %v2725_v5 = vsel %vm2724_vm1, %v2723_v30, 0  ;;  %5284 = vpow2.f32 %v1348_v56  ;;  %v7407_v12 = vand.u32 3, %v2596_v9 }
 0x2b8   : > { %v2591_v14 = vxor.u32 2147483648, %v2590_v36  ;;  %v2727_v27 = vand.u32 31, %v2725_v5  ;;  %v1275_v57 = vadd.f32 %v1259_v54, %v1243_v63  ;;  %v7409_v25 = vand.u32 3, %v4291_v33 }
 0x2b9   : > { %v2673_v35 = vshll.u32 %v7399_v58, 30  ;;  %v7414_v20 = vadd.s32 %v7353_v42, %v7361_v59  ;;  %v7417_v44 = vshll.u32 %v2721_v34, 8  ;;  %v7421_v41 = vmul.f32 -10.0, %v7302_v37 }
 0x2ba   : > { %v2592_v43 = vsel %vm2509_vm11, %v2591_v14, %v2590_v36  ;;  %v2728_v7 = vsub.s32 32, %v2727_v27  ;;  %v7425_v11 = vadd.f32 %v5597_v0, %v7884_v61  ;;  %v2730_v8 = vshll.u32 %v7828_v47, %v2727_v27 }
 0x2bb   : > { %v2595_v17 = vsel %vm7380_vm14, %v7005_v26, %v2592_v43  ;;  %v7411_v49 = vsub.s32 %v2670_v6, %v2673_v35  ;;  %v2733_v60 = vshll.u32 %v7825_v46, %v2727_v27  ;;  %v7432_v19 = vshrl.u32 %v2725_v5, 5 }
 0x2bc   : > { %5286 = vcosq.f32 %v2595_v17  ;;  %v2731_v22 = vshrl.u32 %v7825_v46, %v2728_v7  ;;  %v2734_v42 = vshrl.u32 %v7826_v48, %v2728_v7  ;;  %v2737_v59 = vshrl.u32 %v7827_v10, %v2728_v7 }
 0x2bd   : > { %5288 = vsinq.f32 %v2595_v17  ;;  %v2676_v39 = vsub.s32 0, %v7411_v49  ;;  %v2736_v9 = vshll.u32 %v7826_v48, %v2727_v27  ;;  %v7437_v37 = vadd.f32 %v5599_v1, %v6945_v50 }
 0x2be   : > { %vm2605_vm0 = vcmp.eq.s32.totalorder %v7407_v12, 2  ;;  %vm4297_vm2 = vcmp.eq.s32.totalorder %v7409_v25, 2  ;;  %v2732_v6 = vor.u32 %v2731_v22, %v2730_v8  ;;  %v2735_v55 = vor.u32 %v2734_v42, %v2733_v60 }
 0x2bf   : > { %v4978_v23 = vmin.u32 %v2676_v39, %v7411_v49  ;;  %v2739_v53 = vshll.u32 %v7827_v10, %v2727_v27  ;;  %v2740_v29 = vshrl.u32 %v7837_v45, %v2728_v7  ;;  %vm2602_vm3 = vcmp.eq.s32.totalorder %v7407_v12, 0 }
 0x2c0   : > { %vm4294_vm4 = vcmp.eq.s32.totalorder %v7409_v25, 0  ;;  %v2738_v30 = vor.u32 %v2737_v59, %v2736_v9  ;;  %v2742_v13 = vshll.u32 %v7837_v45, %v2727_v27  ;;  %v2743_v50 = vshrl.u32 %v7821_v28, %v2728_v7 }
 0x2c1   : > { %v2678_v16 = vclz %v4978_v23  ;;  %vm2601_vm5 = vcmp.lt.s32.totalorder %v7407_v12, 2  ;;  %vm4293_vm6 = vcmp.lt.s32.totalorder %v7409_v25, 2  ;;  %v2729_v40 = vshrl.u32 %v7828_v47, %v2728_v7  ;;  %v5285_v14 = vpop.eup %5284 }
 0x2c2   : > { %v2741_v63 = vor.u32 %v2740_v29, %v2739_v53  ;;  %v7451_v36 = vmul.f32 10.0, %v7425_v11  ;;  %v7455_v56 = vadd.f32 %v5601_v2, %v6950_v4  ;;  %vm2599_vm7 = vweird.f32 %v7005_v26 }
 0x2c3   : > { %v4979_v54 = vadd.s32 4294967294, %v2678_v16  ;;  %v2696_v33 = vsub.s32 4, %v7399_v58  ;;  %v2744_v5 = vor.u32 %v2743_v50, %v2742_v13  ;;  %vm2745_vm8 = vcmp.lt.s32.totalorder %v7432_v19, 1 }
 0x2c4   : > { %vm2612_vm9 = vcmp.lt.s32.totalorder %v7130_v62, 0  ;;  %vm2746_vm10 = vcmp.lt.s32.totalorder %v7432_v19, 2  ;;  %vm2747_vm11 = vcmp.lt.s32.totalorder %v7432_v19, 3  ;;  %vm2748_vm12 = vcmp.lt.s32.totalorder %v7432_v19, 4 }
 0x2c5   : > { %v2749_v34 = vsel %vm2745_vm8, %v2729_v40, %v2732_v6  ;;  %vm4980_vm13 = vcmp.lt.s32.totalorder %v4979_v54, 0  ;;  %v2750_v4 = vsel %vm2748_vm12, %v2738_v30, 2102212464  ;;  %v2753_v27 = vsel %vm2745_vm8, %v2732_v6, %v2735_v55 }
 0x2c6   : > { %v2754_v35 = vsel %vm2748_vm12, %v2741_v63, 920167782  ;;  %v5287_v43 = vpop.eup %5286  ;;  %v2681_v7 = vsel %vm4980_vm13, 0, %v4979_v54  ;;  %v2757_v17 = vsel %vm2745_vm8, %v2735_v55, %v2738_v30  ;;  %v2758_v22 = vsel %vm2748_vm12, %v2744_v5, 1326507024 }
 0x2c7   : > { %v7464_v39 = vmul.f32 100.0, %v1275_v57  ;;  %v5289_v61 = vpop.eup %5288  ;;  %v2606_v8 = vxor.u32 2147483648, %v5287_v43  ;;  %vm7468_vm14 = vcmp.le.f32.partialorder %v2610_v18, 0.7853982  ;;  %v2682_v42 = vsub.s32 32, %v2681_v7 }
 0x2c8   : > { %v2686_v59 = vsub.s32 4294967266, %v2681_v7  ;;  %v2755_v23 = vsel %vm2747_vm11, %v2738_v30, %v2754_v35  ;;  %v2603_v9 = vxor.u32 2147483648, %v5289_v61  ;;  %v2683_v6 = vshll.u32 %v7411_v49, %v2681_v7 }
 0x2c9   : > { %v2751_v57 = vsel %vm2747_vm11, %v2735_v55, %v2750_v4  ;;  %v2759_v53 = vsel %vm2747_vm11, %v2741_v63, %v2758_v22  ;;  %v2607_v18 = vsel %vm2605_vm0, %v2606_v8, %v5289_v61  ;;  %v4299_v29 = vsel %vm4297_vm2, %v2606_v8, %v5289_v61 }
 0x2ca   : > { %v2684_v16 = vshrl.u32 %v7414_v20, %v2682_v42  ;;  %v2687_v13 = vadd.s32 127, %v2686_v59  ;;  %v2604_v30 = vsel %vm2602_vm3, %v5287_v43, %v2603_v9  ;;  %v4296_v49 = vsel %vm4294_vm4, %v5287_v43, %v2603_v9 }
 0x2cb   : > { %v2756_v55 = vsel %vm2746_vm10, %v2753_v27, %v2755_v23  ;;  %v2760_v50 = vsel %vm2746_vm10, %v2757_v17, %v2759_v53  ;;  %v2608_v40 = vsel %vm2601_vm5, %v2604_v30, %v2607_v18  ;;  %v4300_v20 = vsel %vm4293_vm6, %v4296_v49, %v4299_v29 }
 0x2cc   : > { %v2685_v63 = vor.u32 %v2684_v16, %v2683_v6  ;;  %v2688_v54 = vshll.u32 %v2687_v13, 23  ;;  %v2609_v5 = vsel %vm2599_vm7, nan, %v2608_v40  ;;  %v4301_v4 = vsel %vm2599_vm7, nan, %v4300_v20 }
 0x2cd   : > { %v7501_v27 = vmul.u32.u64.low %v7417_v44, %v2760_v50  ;;  %v7502_v35 = vmul.u32.u64.high %v7417_v44, %v2760_v50, %v7501_v27  ;;  %v3033_v43 = vmul.f32 %v5285_v14, %v2609_v5  ;;  %v4729_v7 = vmul.f32 %v5285_v14, %v4301_v4 }
 0x2ce   : > { %v2689_v12 = vor.u32 4788187, %v2688_v54  ;;  %v2697_v25 = vsel %vm2612_vm9, %v2696_v33, %v7399_v58  ;;  %v7508_v17 = vmul.u32.u64.low %v7417_v44, %v2756_v55  ;;  %v7509_v22 = vmul.u32.u64.high %v7417_v44, %v2756_v55, %v7508_v17 }
 0x2cf   : > { %v1323_v61 = vsub.f32 %v7421_v41, %v7464_v39  ;;  %v1180_v26 = vmul.f32 %v7425_v11, %v7425_v11  ;;  %3049 = vst [vmem:[%s5950_s20 + $0x58] sm:$0xff] %v3033_v43  ;;  %4745 = vst [vmem:[%s5956_s24 + $0x58] sm:$0xff] %v4729_v7  ;;  %v2692_v42 = vcvt.s32.f32 %v2685_v63  ;;  %v2752_v14 = vsel %vm2746_vm10, %v2749_v34, %v2751_v57 }
 0x2d0   : > { %v2690_v8 = vand.u32 2147483647, %v2689_v12  ;;  %v2819_v59 = vand.u32 2139095040, %v7451_v36  ;;  %v2699_v58 = vsel %vm7468_vm14, 0, %v2697_v25  ;;  %vm2770_vm15 = vc.u32 %v7502_v35, %v7508_v17 }
 0x2d1   : > { %v1196_v9 = vmul.f32 %v7455_v56, %v7455_v56  ;;  %v2768_v11 = vmul.u32 %v7417_v44, %v2752_v14  ;;  %v2771_v6 = vadd.s32 1, %v7509_v22  ;;  %v2816_v53 = vand.u32 2147483647, %v7451_v36 }
 0x2d2   : > { %v2693_v33 = vmul.f32 %v2692_v42, %v2690_v8  ;;  %v2820_v23 = vshrl.u32 %v2819_v59, 23  ;;  %v1161_v19 = vadd.f32 %v5603_v3, %v6952_v32  ;;  %v1228_v18 = vmul.f32 %v7437_v37, %v7437_v37 }
 0x2d3   : > { %v1212_v29 = vadd.f32 %v1196_v9, %v1180_v26  ;;  %v4395_v16 = vadd.s32 3, %v2699_v58  ;;  %v2772_v13 = vsel %vm2770_vm15, %v2771_v6, %v7509_v22  ;;  %v1350_v40 = vmul.f32 1.442695, %v1322_v21 }
 0x2d4   : > { %v2694_v34 = vxor.u32 2147483648, %v2693_v33  ;;  %v4985_v57 = vadd.s32 4294967169, %v2820_v23  ;;  %v1260_v30 = vmul.f32 %v1161_v19, %v1161_v19  ;;  %v2773_v49 = vadd.s32 %v2772_v13, %v2768_v11 }
 0x2d5   : > { %v1244_v50 = vadd.f32 %v1228_v18, %v1212_v29  ;;  %v2823_v37 = vand.u32 8388607, %v2816_v53  ;;  %v7545_v20 = vadd.f32 %v5597_v0, %v6990_v31  ;;  %v2703_v5 = vand.u32 3, %v2699_v58 }
 0x2d6   : > { %v2695_v44 = vsel %vm2612_vm9, %v2694_v34, %v2693_v33  ;;  %v2826_v55 = vadd.s32 1, %v4985_v57  ;;  %v2774_v63 = vadd.s32 536870912, %v2773_v49  ;;  %v4396_v4 = vand.u32 3, %v4395_v16 }
 0x2d7   : > { %v2698_v32 = vsel %vm7468_vm14, %v7130_v62, %v2695_v44  ;;  %v1276_v54 = vadd.f32 %v1260_v30, %v1244_v50  ;;  %v2824_v52 = vor.u32 8388608, %v2823_v37  ;;  %v7551_v7 = vmul.f32 10.0, %v7545_v20 }
 0x2d8   : > { %5290 = vcosq.f32 %v2698_v32  ;;  %vm2827_vm1 = vcmp.gt.s32.totalorder %v2826_v55, 0  ;;  %v7547_v27 = vshrl.u32 %v2774_v63, 30  ;;  %vm2705_vm0 = vcmp.eq.s32.totalorder %v2703_v5, 0 }
 0x2d9   : > { %5292 = vsinq.f32 %v2698_v32  ;;  %v2828_v60 = vsel %vm2827_vm1, %v2826_v55, 0  ;;  %vm2708_vm2 = vcmp.eq.s32.totalorder %v2703_v5, 2  ;;  %vm4398_vm3 = vcmp.eq.s32.totalorder %v4396_v4, 0 }
 0x2da   : > { %v2830_v43 = vand.u32 31, %v2828_v60  ;;  %v2776_v24 = vshll.u32 %v7547_v27, 30  ;;  %5294 = vpow2.f32 %v1350_v40  ;;  %vm2704_vm4 = vcmp.lt.s32.totalorder %v2703_v5, 2 }
 0x2db   : > { %vm4397_vm5 = vcmp.lt.s32.totalorder %v4396_v4, 2  ;;  %vm4401_vm6 = vcmp.eq.s32.totalorder %v4396_v4, 2  ;;  %v2769_v0 = vadd.s32 %v7508_v17, %v7502_v35  ;;  %v7557_v12 = vmul.f32 -10.0, %v7455_v56 }
 0x2dc   : > { %v2831_v21 = vsub.s32 32, %v2830_v43  ;;  %v7554_v31 = vsub.s32 %v2773_v49, %v2776_v24  ;;  %vm2702_vm7 = vweird.f32 %v7130_v62  ;;  %v7560_v25 = vshrl.u32 %v2828_v60, 5 }
 0x2dd   : > { %v7563_v26 = vshll.u32 %v2824_v52, 8  ;;  %v7565_v8 = vmul.f32 100.0, %v1276_v54  ;;  %v2922_v17 = vand.u32 2139095040, %v7551_v7  ;;  %v2799_v56 = vsub.s32 4, %v7547_v27 }
 0x2de   : > { %v2834_v22 = vshrl.u32 %v7825_v46, %v2831_v21  ;;  %v2779_v42 = vsub.s32 0, %v7554_v31  ;;  %v2837_v14 = vshrl.u32 %v7826_v48, %v2831_v21  ;;  %v2840_v35 = vshrl.u32 %v7827_v10, %v2831_v21 }
 0x2df   : > { %v2833_v59 = vshll.u32 %v7828_v47, %v2830_v43  ;;  %v2843_v58 = vshrl.u32 %v7837_v45, %v2831_v21  ;;  %v2846_v33 = vshrl.u32 %v7821_v28, %v2831_v21  ;;  %v2836_v11 = vshll.u32 %v7825_v46, %v2830_v43 }
 0x2e0   : > { %v4982_v9 = vmin.u32 %v2779_v42, %v7554_v31  ;;  %v2839_v6 = vshll.u32 %v7826_v48, %v2830_v43  ;;  %v2842_v19 = vshll.u32 %v7827_v10, %v2830_v43  ;;  %v2832_v18 = vshrl.u32 %v7828_v47, %v2831_v21 }
 0x2e1   : > { %v2835_v29 = vor.u32 %v2834_v22, %v2833_v59  ;;  %v2845_v16 = vshll.u32 %v7837_v45, %v2830_v43  ;;  %v2838_v44 = vor.u32 %v2837_v14, %v2836_v11  ;;  %vm2848_vm8 = vcmp.lt.s32.totalorder %v7560_v25, 1 }
 0x2e2   : > { %v5291_v23 = vpop.eup %5290  ;;  %v2781_v30 = vclz %v4982_v9  ;;  %v2841_v49 = vor.u32 %v2840_v35, %v2839_v6  ;;  %v2844_v32 = vor.u32 %v2843_v58, %v2842_v19  ;;  %vm2849_vm9 = vcmp.lt.s32.totalorder %v7560_v25, 2 }
 0x2e3   : > { %v5293_v34 = vpop.eup %5292  ;;  %v2709_v57 = vxor.u32 2147483648, %v5291_v23  ;;  %v2847_v40 = vor.u32 %v2846_v33, %v2845_v16  ;;  %vm2850_vm10 = vcmp.lt.s32.totalorder %v7560_v25, 3  ;;  %vm2851_vm12 = vcmp.lt.s32.totalorder %v7560_v25, 4 }
 0x2e4   : > { %v2706_v13 = vxor.u32 2147483648, %v5293_v34  ;;  %v4983_v54 = vadd.s32 4294967294, %v2781_v30  ;;  %v5295_v60 = vpop.eup %5294  ;;  %v2852_v4 = vsel %vm2848_vm8, %v2832_v18, %v2835_v29  ;;  %v2853_v58 = vsel %vm2851_vm12, %v2841_v49, 2102212464 }
 0x2e5   : > { %v2710_v55 = vsel %vm2708_vm2, %v2709_v57, %v5293_v34  ;;  %v4403_v50 = vsel %vm4401_vm6, %v2709_v57, %v5293_v34  ;;  %v2856_v62 = vsel %vm2848_vm8, %v2835_v29, %v2838_v44  ;;  %v2857_v33 = vsel %vm2851_vm12, %v2844_v32, 920167782 }
 0x2e6   : > { %v2707_v37 = vsel %vm2705_vm0, %v5291_v23, %v2706_v13  ;;  %v4400_v63 = vsel %vm4398_vm3, %v5291_v23, %v2706_v13  ;;  %vm4984_vm11 = vcmp.lt.s32.totalorder %v4983_v54, 0  ;;  %v2860_v23 = vsel %vm2848_vm8, %v2838_v44, %v2841_v49 }
 0x2e7   : > { %v2711_v43 = vsel %vm2704_vm4, %v2707_v37, %v2710_v55  ;;  %v4404_v52 = vsel %vm4397_vm5, %v4400_v63, %v4403_v50  ;;  %v2784_v42 = vsel %vm4984_vm11, 0, %v4983_v54  ;;  %v2861_v9 = vsel %vm2851_vm12, %v2847_v40, 1326507024  ;;  %v7887_v40 = vld [vmem:[#allocation3_spill] sm:$0xff] }
 0x2e8   : > { %v2712_v24 = vsel %vm2702_vm7, nan, %v2711_v43  ;;  %v4405_v21 = vsel %vm2702_vm7, nan, %v4404_v52  ;;  %v2785_v14 = vsub.s32 32, %v2784_v42  ;;  %v2786_v35 = vshll.u32 %v7554_v31, %v2784_v42 }
 0x2e9   : > { %v3034_v22 = vmul.f32 %v5295_v60, %v2712_v24  ;;  %v4730_v5 = vmul.f32 %v5295_v60, %v4405_v21  ;;  %v2789_v59 = vsub.s32 4294967266, %v2784_v42  ;;  %v2858_v19 = vsel %vm2850_vm10, %v2841_v49, %v2857_v33 }
 0x2ea   : > { %v2787_v11 = vshrl.u32 %v2769_v0, %v2785_v14  ;;  %v2862_v31 = vsel %vm2850_vm10, %v2844_v32, %v2861_v9  ;;  %v2854_v34 = vsel %vm2850_vm10, %v2838_v44, %v2853_v58  ;;  %v2859_v57 = vsel %vm2849_vm9, %v2856_v62, %v2858_v19 }
 0x2eb   : > { %3050 = vst [vmem:[%s5950_s20 + $0x60] sm:$0xff] %v3034_v22  ;;  %4746 = vst [vmem:[%s5956_s24 + $0x60] sm:$0xff] %v4730_v5  ;;  %v2790_v6 = vadd.s32 127, %v2789_v59  ;;  %v2863_v18 = vsel %vm2849_vm9, %v2860_v23, %v2862_v31  ;;  %v1324_v29 = vsub.f32 %v7557_v12, %v7565_v8  ;;  %v2923_v44 = vshrl.u32 %v2922_v17, 23 }
 0x2ec   : > { %v2788_v0 = vor.u32 %v2787_v11, %v2786_v35  ;;  %v7617_v13 = vmul.u32.u64.low %v7563_v26, %v2863_v18  ;;  %v7618_v30 = vmul.u32.u64.high %v7563_v26, %v2863_v18, %v7617_v13  ;;  %vm2715_vm13 = vcmp.lt.s32.totalorder %v7307_v38, 0 }
 0x2ed   : > { %v2791_v16 = vshll.u32 %v2790_v6, 23  ;;  %v7621_v49 = vmul.u32.u64.low %v7563_v26, %v2859_v57  ;;  %v7622_v55 = vmul.u32.u64.high %v7563_v26, %v2859_v57, %v7621_v49  ;;  %v1164_v32 = vadd.f32 %v5599_v1, %v7091_v51 }
 0x2ee   : > { %v7630_v37 = vadd.f32 %v5601_v2, %v7887_v40  ;;  %v2800_v63 = vsel %vm2715_vm13, %v2799_v56, %v7547_v27  ;;  %v2855_v54 = vsel %vm2849_vm9, %v2852_v4, %v2854_v34  ;;  %v1181_v17 = vmul.f32 %v7545_v20, %v7545_v20 }
 0x2ef   : > { %v2792_v50 = vor.u32 4788187, %v2791_v16  ;;  %v4989_v60 = vadd.s32 4294967169, %v2923_v44  ;;  %v2795_v52 = vcvt.s32.f32 %v2788_v0  ;;  %vm2873_vm14 = vc.u32 %v7618_v30, %v7621_v49 }
 0x2f0   : > { %vm7645_vm15 = vcmp.le.f32.partialorder %v2713_v15, 0.7853982  ;;  %v2874_v2 = vadd.s32 1, %v7622_v55  ;;  %v1197_v27 = vmul.f32 %v7630_v37, %v7630_v37  ;;  %v2871_v56 = vmul.u32 %v7563_v26, %v2855_v54 }
 0x2f1   : > { %v2793_v43 = vand.u32 2147483647, %v2792_v50  ;;  %v2929_v51 = vadd.s32 1, %v4989_v60  ;;  %v2802_v20 = vsel %vm7645_vm15, 0, %v2800_v63  ;;  %v1229_v21 = vmul.f32 %v1164_v32, %v1164_v32 }
 0x2f2   : > { %v2875_v24 = vsel %vm2873_vm14, %v2874_v2, %v7622_v55  ;;  %v1213_v15 = vadd.f32 %v1197_v27, %v1181_v17  ;;  %v2919_v42 = vand.u32 2147483647, %v7551_v7  ;;  %v4499_v14 = vadd.s32 3, %v2802_v20 }
 0x2f3   : > { %v2796_v25 = vmul.f32 %v2795_v52, %v2793_v43  ;;  %vm2930_vm1 = vcmp.gt.s32.totalorder %v2929_v51, 0  ;;  %v2876_v5 = vadd.s32 %v2875_v24, %v2871_v56  ;;  %v1352_v26 = vmul.f32 1.442695, %v1323_v61  ;;  %v7890_v61 = vld [vmem:[#allocation4_spill] sm:$0xff] }
 0x2f4   : > { %v2931_v4 = vsel %vm2930_vm1, %v2929_v51, 0  ;;  %v1245_v59 = vadd.f32 %v1229_v21, %v1213_v15  ;;  %v7665_v9 = vand.u32 3, %v2802_v20  ;;  %v2926_v6 = vand.u32 8388607, %v2919_v42 }
 0x2f5   : > { %v2797_v22 = vxor.u32 2147483648, %v2796_v25  ;;  %v2933_v35 = vand.u32 31, %v2931_v4  ;;  %v2877_v62 = vadd.s32 536870912, %v2876_v5  ;;  %v7671_v19 = vand.u32 3, %v4499_v14 }
 0x2f6   : > { %v1165_v31 = vadd.f32 %v5603_v3, %v7890_v61  ;;  %vm2811_vm0 = vcmp.eq.s32.totalorder %v7665_v9, 2  ;;  %v2927_v13 = vor.u32 8388608, %v2926_v6  ;;  %vm2808_vm2 = vcmp.eq.s32.totalorder %v7665_v9, 0 }
 0x2f7   : > { %v2798_v58 = vsel %vm2715_vm13, %v2797_v22, %v2796_v25  ;;  %v2934_v23 = vsub.s32 32, %v2933_v35  ;;  %v7667_v11 = vshrl.u32 %v2877_v62, 30  ;;  %v2945_v55 = vshll.u32 %v7827_v10, %v2933_v35 }
 0x2f8   : > { %v2801_v33 = vsel %vm7645_vm15, %v7307_v38, %v2798_v58  ;;  %v2948_v44 = vshll.u32 %v7837_v45, %v2933_v35  ;;  %vm4502_vm3 = vcmp.eq.s32.totalorder %v7671_v19, 0  ;;  %v7688_v3 = vshrl.u32 %v2931_v4, 5 }
 0x2f9   : > { %5296 = vcosq.f32 %v2801_v33  ;;  %v2879_v41 = vshll.u32 %v7667_v11, 30  ;;  %v2946_v39 = vshrl.u32 %v7837_v45, %v2934_v23  ;;  %v2937_v34 = vshrl.u32 %v7825_v46, %v2934_v23 }
 0x2fa   : > { %5298 = vsinq.f32 %v2801_v33  ;;  %v2940_v57 = vshrl.u32 %v7826_v48, %v2934_v23  ;;  %v2943_v18 = vshrl.u32 %v7827_v10, %v2934_v23  ;;  %v2949_v0 = vshrl.u32 %v7821_v28, %v2934_v23 }
 0x2fb   : > { %5300 = vpow2.f32 %v1352_v26  ;;  %v7682_v16 = vsub.s32 %v2876_v5, %v2879_v41  ;;  %v2936_v50 = vshll.u32 %v7828_v47, %v2933_v35  ;;  %v2939_v32 = vshll.u32 %v7825_v46, %v2933_v35 }
 0x2fc   : > { %v2942_v28 = vshll.u32 %v7826_v48, %v2933_v35  ;;  %vm2807_vm4 = vcmp.lt.s32.totalorder %v7665_v9, 2  ;;  %vm4501_vm5 = vcmp.lt.s32.totalorder %v7671_v19, 2  ;;  %vm4505_vm6 = vcmp.eq.s32.totalorder %v7671_v19, 2 }
 0x2fd   : > { %v2882_v10 = vsub.s32 0, %v7682_v16  ;;  %v2947_v45 = vor.u32 %v2946_v39, %v2945_v55  ;;  %v2950_v40 = vor.u32 %v2949_v0, %v2948_v44  ;;  %vm2805_vm7 = vweird.f32 %v7307_v38 }
 0x2fe   : > { %v2938_v63 = vor.u32 %v2937_v34, %v2936_v50  ;;  %v2941_v54 = vor.u32 %v2940_v57, %v2939_v32  ;;  %v2944_v17 = vor.u32 %v2943_v18, %v2942_v28  ;;  %v1261_v60 = vmul.f32 %v1165_v31, %v1165_v31 }
 0x2ff   : > { %v2872_v46 = vadd.s32 %v7621_v49, %v7618_v30  ;;  %v4986_v48 = vmin.u32 %v2882_v10, %v7682_v16  ;;  %v2967_v43 = vshll.u32 %v2927_v13, 8  ;;  %v7702_v52 = vmul.f32 -10.0, %v7630_v37 }
 0x300   : > { %v2935_v1 = vshrl.u32 %v7828_v47, %v2934_v23  ;;  %vm2951_vm8 = vcmp.lt.s32.totalorder %v7688_v3, 1  ;;  %vm2954_vm9 = vcmp.lt.s32.totalorder %v7688_v3, 4  ;;  %v1277_v2 = vadd.f32 %v1261_v60, %v1245_v59 }
 0x301   : > { %v2884_v27 = vclz %v4986_v48  ;;  %vm2952_vm10 = vcmp.lt.s32.totalorder %v7688_v3, 2  ;;  %v2960_v25 = vsel %vm2954_vm9, %v2947_v45, 920167782  ;;  %v2964_v20 = vsel %vm2954_vm9, %v2950_v40, 1326507024 }
 0x302   : > { %vm2953_vm11 = vcmp.lt.s32.totalorder %v7688_v3, 3  ;;  %v2955_v37 = vsel %vm2951_vm8, %v2935_v1, %v2938_v63  ;;  %v2963_v47 = vsel %vm2951_vm8, %v2941_v54, %v2944_v17  ;;  %v2956_v15 = vsel %vm2954_vm9, %v2944_v17, 2102212464 }
 0x303   : > { %v5297_v51 = vpop.eup %5296  ;;  %v4987_v21 = vadd.s32 4294967294, %v2884_v27  ;;  %v2959_v22 = vsel %vm2951_vm8, %v2938_v63, %v2941_v54  ;;  %v2961_v14 = vsel %vm2953_vm11, %v2944_v17, %v2960_v25  ;;  %v2965_v35 = vsel %vm2953_vm11, %v2947_v45, %v2964_v20 }
 0x304   : > { %v5299_v30 = vpop.eup %5298  ;;  %v2812_v49 = vxor.u32 2147483648, %v5297_v51  ;;  %v2966_v26 = vsel %vm2952_vm10, %v2963_v47, %v2965_v35  ;;  %v7733_v6 = vmul.f32 100.0, %v1277_v2  ;;  %v2962_v31 = vsel %vm2952_vm10, %v2959_v22, %v2961_v14 }
 0x305   : > { %v5301_v56 = vpop.eup %5300  ;;  %v2809_v24 = vxor.u32 2147483648, %v5299_v30  ;;  %vm4988_vm12 = vcmp.lt.s32.totalorder %v4987_v21, 0  ;;  %v2957_v0 = vsel %vm2953_vm11, %v2941_v54, %v2956_v15  ;;  %v2902_v1 = vsub.s32 4, %v7667_v11 }
 0x306   : > { %v2813_v5 = vsel %vm2811_vm0, %v2812_v49, %v5299_v30  ;;  %v4507_v4 = vsel %vm4505_vm6, %v2812_v49, %v5299_v30  ;;  %v2887_v23 = vsel %vm4988_vm12, 0, %v4987_v21  ;;  %v1325_v19 = vsub.f32 %v7702_v52, %v7733_v6 }
 0x307   : > { %v2810_v59 = vsel %vm2808_vm2, %v5297_v51, %v2809_v24  ;;  %v4504_v58 = vsel %vm4502_vm3, %v5297_v51, %v2809_v24  ;;  %v2888_v61 = vsub.s32 32, %v2887_v23  ;;  %v2892_v57 = vsub.s32 4294967266, %v2887_v23 }
 0x308   : > { %v2814_v62 = vsel %vm2807_vm4, %v2810_v59, %v2813_v5  ;;  %v4508_v33 = vsel %vm4501_vm5, %v4504_v58, %v4507_v4  ;;  %v7745_v13 = vmul.u32.u64.low %v2967_v43, %v2966_v26  ;;  %v7746_v55 = vmul.u32.u64.high %v2967_v43, %v2966_v26, %v7745_v13 }
 0x309   : > { %v2815_v41 = vsel %vm2805_vm7, nan, %v2814_v62  ;;  %v4509_v39 = vsel %vm2805_vm7, nan, %v4508_v33  ;;  %v2890_v18 = vshrl.u32 %v2872_v46, %v2888_v61  ;;  %v2889_v38 = vshll.u32 %v7682_v16, %v2887_v23 }
 0x30a   : > { %v3035_v9 = vmul.f32 %v5301_v56, %v2815_v41  ;;  %v4731_v34 = vmul.f32 %v5301_v56, %v4509_v39  ;;  %v2893_v44 = vadd.s32 127, %v2892_v57  ;;  %v2958_v45 = vsel %vm2952_vm10, %v2955_v37, %v2957_v0 }
 0x30b   : > { %v7751_v50 = vmul.u32.u64.low %v2967_v43, %v2962_v31  ;;  %v7752_v32 = vmul.u32.u64.high %v2967_v43, %v2962_v31, %v7751_v50  ;;  %v2891_v28 = vor.u32 %v2890_v18, %v2889_v38  ;;  %v2974_v54 = vmul.u32 %v2967_v43, %v2958_v45 }
 0x30c   : > { %3051 = vst [vmem:[%s5950_s20 + $0x68] sm:$0xff] %v3035_v9  ;;  %4747 = vst [vmem:[%s5956_s24 + $0x68] sm:$0xff] %v4731_v34  ;;  %v2894_v10 = vshll.u32 %v2893_v44, 23  ;;  %vm2818_vm14 = vcmp.lt.s32.totalorder %v7451_v36, 0  ;;  %vm2817_vm15 = vcmp.le.f32.partialorder %v2816_v53, 0.7853982  ;;  %vm2908_vm7 = vweird.f32 %v7451_v36 }
 0x30d   : > { %vm2976_vm13 = vc.u32 %v7746_v55, %v7751_v50  ;;  %v2977_v63 = vadd.s32 1, %v7752_v32  ;;  %v2898_v60 = vcvt.s32.f32 %v2891_v28  ;;  %v2903_v43 = vsel %vm2818_vm14, %v2902_v1, %v7667_v11 }
 0x30e   : > { %v2895_v40 = vor.u32 4788187, %v2894_v10  ;;  %v2905_v30 = vsel %vm2817_vm15, 0, %v2903_v43  ;;  %v1354_v37 = vmul.f32 1.442695, %v1324_v29  ;;  %v2975_v35 = vadd.s32 %v7751_v50, %v7746_v55 }
 0x30f   : > { %v2978_v46 = vsel %vm2976_vm13, %v2977_v63, %v7752_v32  ;;  %v4603_v56 = vadd.s32 3, %v2905_v30  ;;  %v2909_v21 = vand.u32 3, %v2905_v30  ;;  %vm2921_vm8 = vcmp.lt.s32.totalorder %v7551_v7, 0 }
 0x310   : > { %v2896_v17 = vand.u32 2147483647, %v2895_v40  ;;  %v2979_v16 = vadd.s32 %v2978_v46, %v2974_v54  ;;  %vm2920_vm9 = vcmp.le.f32.partialorder %v2919_v42, 0.7853982  ;;  %v1356_v63 = vmul.f32 1.442695, %v1325_v19 }
 0x311   : > { %v4604_v15 = vand.u32 3, %v4603_v56  ;;  %vm2910_vm1 = vcmp.lt.s32.totalorder %v2909_v21, 2  ;;  %vm2911_vm0 = vcmp.eq.s32.totalorder %v2909_v21, 0  ;;  %vm2914_vm2 = vcmp.eq.s32.totalorder %v2909_v21, 2 }
 0x312   : > { %v2899_v48 = vmul.f32 %v2898_v60, %v2896_v17  ;;  %v2980_v2 = vadd.s32 536870912, %v2979_v16 }
 0x313   : > { %vm4606_vm4 = vcmp.eq.s32.totalorder %v4604_v15, 0  ;;  %vm4609_vm5 = vcmp.eq.s32.totalorder %v4604_v15, 2  ;;  %vm4605_vm6 = vcmp.lt.s32.totalorder %v4604_v15, 2 }
 0x314   : > { %v2900_v51 = vxor.u32 2147483648, %v2899_v48  ;;  %v7761_v3 = vshrl.u32 %v2980_v2, 30 }
 0x316   : > { %v2901_v27 = vsel %vm2818_vm14, %v2900_v51, %v2899_v48  ;;  %v2982_v20 = vshll.u32 %v7761_v3, 30 }
 0x317   : > { %v2904_v25 = vsel %vm2817_vm15, %v7451_v36, %v2901_v27  ;;  %v3005_v36 = vsub.s32 4, %v7761_v3 }
 0x318   : > { %5302 = vcosq.f32 %v2904_v25  ;;  %v2983_v49 = vsub.s32 %v2979_v16, %v2982_v20 }
 0x319   : > { %5304 = vsinq.f32 %v2904_v25  ;;  %v3006_v10 = vsel %vm2921_vm8, %v3005_v36, %v7761_v3 }
 0x31a   : > { %v2985_v47 = vsub.s32 0, %v2983_v49  ;;  %5306 = vpow2.f32 %v1354_v37  ;;  %v3008_v40 = vsel %vm2920_vm9, 0, %v3006_v10 }
 0x31b   : > { %v4707_v54 = vadd.s32 3, %v3008_v40  ;;  %v3012_v17 = vand.u32 3, %v3008_v40 }
 0x31c   : > { %v4990_v24 = vmin.u32 %v2985_v47, %v2983_v49 }
 0x31d   : > { %v4708_v60 = vand.u32 3, %v4707_v54  ;;  %vm3017_vm10 = vcmp.eq.s32.totalorder %v3012_v17, 2  ;;  %vm3014_vm12 = vcmp.eq.s32.totalorder %v3012_v17, 0  ;;  %vm3013_vm14 = vcmp.lt.s32.totalorder %v3012_v17, 2 }
 0x31e   : > { %v2987_v53 = vclz %v4990_v24 }
 0x31f   : > { %vm4713_vm11 = vcmp.eq.s32.totalorder %v4708_v60, 2  ;;  %vm4710_vm13 = vcmp.eq.s32.totalorder %v4708_v60, 0  ;;  %vm4709_vm15 = vcmp.lt.s32.totalorder %v4708_v60, 2 }
 0x320   : > { %v4991_v11 = vadd.s32 4294967294, %v2987_v53 }
 0x322   : > { %v5303_v22 = vpop.eup %5302  ;;  %vm4992_vm3 = vcmp.lt.s32.totalorder %v4991_v11, 0 }
 0x323   : > { %v5305_v5 = vpop.eup %5304  ;;  %v2915_v4 = vxor.u32 2147483648, %v5303_v22  ;;  %v2990_v12 = vsel %vm4992_vm3, 0, %v4991_v11 }
 0x324   : > { %v2912_v14 = vxor.u32 2147483648, %v5305_v5  ;;  %v2991_v59 = vsub.s32 32, %v2990_v12  ;;  %v2995_v62 = vsub.s32 4294967266, %v2990_v12  ;;  %v5307_v39 = vpop.eup %5306  ;;  %v2992_v9 = vshll.u32 %v2983_v49, %v2990_v12 }
 0x325   : > { %v2916_v8 = vsel %vm2914_vm2, %v2915_v4, %v5305_v5  ;;  %v4611_v29 = vsel %vm4609_vm5, %v2915_v4, %v5305_v5 }
 0x326   : > { %v2913_v58 = vsel %vm2911_vm0, %v5303_v22, %v2912_v14  ;;  %v4608_v26 = vsel %vm4606_vm4, %v5303_v22, %v2912_v14  ;;  %v2993_v41 = vshrl.u32 %v2975_v35, %v2991_v59  ;;  %v2996_v34 = vadd.s32 127, %v2995_v62 }
 0x327   : > { %v2917_v33 = vsel %vm2910_vm1, %v2913_v58, %v2916_v8  ;;  %v4612_v23 = vsel %vm4605_vm6, %v4608_v26, %v4611_v29  ;;  %vm3011_vm1 = vweird.f32 %v7551_v7 }
 0x328   : > { %v2918_v61 = vsel %vm2908_vm7, nan, %v2917_v33  ;;  %v4613_v31 = vsel %vm2908_vm7, nan, %v4612_v23  ;;  %v2994_v0 = vor.u32 %v2993_v41, %v2992_v9  ;;  %v2997_v13 = vshll.u32 %v2996_v34, 23 }
 0x329   : > { %v3036_v57 = vmul.f32 %v5307_v39, %v2918_v61  ;;  %v4732_v18 = vmul.f32 %v5307_v39, %v4613_v31 }
 0x32a   : > { %v2998_v55 = vor.u32 4788187, %v2997_v13  ;;  %v3001_v44 = vcvt.s32.f32 %v2994_v0 }
 0x32b   : > { %3052 = vst [vmem:[%s5950_s20 + $0x70] sm:$0xff] %v3036_v57  ;;  %4748 = vst [vmem:[%s5956_s24 + $0x70] sm:$0xff] %v4732_v18 }
 0x32c   : > { %v2999_v38 = vand.u32 2147483647, %v2998_v55 }
 0x32e   : > { %v3002_v50 = vmul.f32 %v3001_v44, %v2999_v38 }
 0x330   : > { %v3003_v32 = vxor.u32 2147483648, %v3002_v50 }
 0x332   : > { %v3004_v28 = vsel %vm2921_vm8, %v3003_v32, %v3002_v50 }
 0x333   : > { %v3007_v45 = vsel %vm2920_vm9, %v7551_v7, %v3004_v28 }
 0x334   : > { %5308 = vcosq.f32 %v3007_v45 }
 0x335   : > { %5310 = vsinq.f32 %v3007_v45 }
 0x336   : > { %5312 = vpow2.f32 %v1356_v63 }
 0x33e   : > { %v5309_v46 = vpop.eup %5308 }
 0x33f   : > { %v5311_v16 = vpop.eup %5310  ;;  %v3018_v48 = vxor.u32 2147483648, %v5309_v46 }
 0x340   : > { %v3015_v42 = vxor.u32 2147483648, %v5311_v16  ;;  %v5313_v3 = vpop.eup %5312 }
 0x341   : > { %v3019_v1 = vsel %vm3017_vm10, %v3018_v48, %v5311_v16  ;;  %v4715_v2 = vsel %vm4713_vm11, %v3018_v48, %v5311_v16 }
 0x342   : > { %v3016_v51 = vsel %vm3014_vm12, %v5309_v46, %v3015_v42  ;;  %v4712_v52 = vsel %vm4710_vm13, %v5309_v46, %v3015_v42 }
 0x343   : > { %v3020_v6 = vsel %vm3013_vm14, %v3016_v51, %v3019_v1  ;;  %v4716_v19 = vsel %vm4709_vm15, %v4712_v52, %v4715_v2 }
 0x344   : > { %v3021_v27 = vsel %vm3011_vm1, nan, %v3020_v6  ;;  %v4717_v43 = vsel %vm3011_vm1, nan, %v4716_v19 }
 0x345   : > { %v3037_v25 = vmul.f32 %v5313_v3, %v3021_v27  ;;  %v4733_v20 = vmul.f32 %v5313_v3, %v4717_v43 }
 0x347   : > { %3053 = vst [vmem:[%s5950_s20 + $0x78] sm:$0xff] %v3037_v25  ;;  %4749 = vst [vmem:[%s5956_s24 + $0x78] sm:$0xff] %v4733_v20 }
 0x348 PF: > { %s17_s21 = sadd.s32 1, %s5320_s21  }
 0x349   : > { %p14_p4 = scmp.ge.s32.totalorder %s17_s21, 4  }
 0x34b   :  { %16 = sbr.rel (!%p14_p4) target bundleno = 1 (0x1), region = 85 }

</bundles_post_ra>
